<compile_context>
chip_gen: v6e
topology: v6e:2x2x1
jax: 0.10.0
libtpu: 0.0.40
codegen_flags: <defaults>
</compile_context>

<pallas_src>
import numpy as np
import jax
import jax.numpy as jnp
from jax.experimental import pallas as pl
from jax.experimental.pallas import tpu as pltpu

BN_EPS = 1e-5


# --------------------------------------------------------------------------------------
# small helpers
# --------------------------------------------------------------------------------------
def _nbytes(shape, dtype):
    n = 1
    for d in shape:
        n *= int(d)
    return n * np.dtype(dtype).itemsize


def _vmem_limit(tiled, whole, scratch_bytes):
    """Derive vmem_limit_bytes from the actual per-grid-step block + scratch sizes."""
    blk = sum(_nbytes(a.shape[1:], a.dtype) for a in tiled)      # per-image blocks
    blk += sum(_nbytes(a.shape, a.dtype) for a in whole)         # resident weights / scales
    need = 2 * blk + int(scratch_bytes)                          # pipeline double-buffers blocks
    # 2x headroom for compiler temporaries / relayouts; cap at 40 MiB so the same budget
    # also fits v7x's 64 MiB-per-TensorCore VMEM.
    return int(min(40 * 1024 * 1024, max(8 * 1024 * 1024, 2 * need)))


def _cost(flops, arrays):
    return pl.CostEstimate(
        flops=int(flops), transcendentals=0,
        bytes_accessed=int(sum(_nbytes(a.shape, a.dtype) for a in arrays)))


def _per_image_spec(shape):
    """Block = one image (leading batch dim squeezed); the grid axis walks the batch."""
    zeros = (0,) * (len(shape) - 1)
    return pl.BlockSpec((None,) + tuple(shape[1:]), lambda n, z=zeros: (n,) + z)


def _resident_spec(shape):
    """Full-array block, identical for every grid step (weights / BN scale+shift)."""
    zeros = (0,) * len(shape)
    return pl.BlockSpec(tuple(shape), lambda n, z=zeros: z)


def _use_fat_k():
    # v7x's MXU result buffer (MRB) accumulates in place, so 9 accumulating dots cost the
    # same as one fat-K matmul, and dropping the (Mt, 9*C) packing scratch matters under
    # its 64 MiB VMEM.  v5e/v6e (result FIFO) keep the single fat-K matmul.
    try:
        kind = jax.devices()[0].device_kind.lower()
    except Exception:
        return True
    return "7" not in kind


def _store_image_and_stats(img_ref, stat_ref, acc_f32, Hout, Wout):
    """Write a (Mt, C) f32 conv result as an image block + its partial BN sums."""
    img_ref[...] = acc_f32.reshape(Hout, Wout, acc_f32.shape[-1])
    stat_ref[0:1, :] = jnp.sum(acc_f32, axis=0, keepdims=True)
    stat_ref[1:2, :] = jnp.sum(acc_f32 * acc_f32, axis=0, keepdims=True)


def _bn_scale_shift(stat, gamma, beta, m):
    """Combine per-image partial sums and fold BN into per-channel scale/shift (f32)."""
    tot = jnp.sum(stat.astype(jnp.float32), axis=0)             # (2, C)
    mean = tot[0] / m
    var = jnp.maximum(tot[1] / m - mean * mean, 0.0)            # clamp E[x^2]-mean^2 >= 0
    scale = gamma.astype(jnp.float32) * jax.lax.rsqrt(var + BN_EPS)
    shift = beta.astype(jnp.float32) - mean * scale
    return scale.reshape(1, -1), shift.reshape(1, -1)


# --------------------------------------------------------------------------------------
# stage kernels
# --------------------------------------------------------------------------------------
def _make_stage1_kernel(s, Hout, Wout, Cin, Cout, use_projection, fat_k):
    Mt = Hout * Wout

    def tap(xs_ref, kh, kw):
        # Output pixel (i, j), tap (kh, kw) reads padded position (s*i+kh, s*j+kw), i.e.
        # phase (kh%s, kw%s) of the space-to-depth input, rows kh//s .. kh//s+Hout-1.
        ph = (kh % s) * s + (kw % s)
        r0, c0 = kh // s, kw // s
        return xs_ref[ph, r0:r0 + Hout, c0:c0 + Wout, :].reshape(Mt, Cin)

    def kernel(*refs):
        idx = 0
        xs_ref = refs[idx]; idx += 1
        w1_ref = refs[idx]; idx += 1
        if use_projection:
            wsc_ref = refs[idx]; idx += 1
        acc1_ref = refs[idx]; idx += 1
        stat1_ref = refs[idx]; idx += 1
        if use_projection:
            accsc_ref = refs[idx]; idx += 1
            statsc_ref = refs[idx]; idx += 1

        if fat_k:
            # v5e/v6e: pack the 9 taps into a lane-packed (Mt, 9*Cin) scratch -> one fat-K dot
            p1_ref = refs[idx]
            for kh in range(3):
                for kw in range(3):
                    t = kh * 3 + kw
                    p1_ref[:, t * Cin:(t + 1) * Cin] = tap(xs_ref, kh, kw)
            acc1 = jnp.dot(p1_ref[...], w1_ref[...], preferred_element_type=jnp.float32)
            # center tap already sits lane-packed in the scratch -- no re-gather
            center = p1_ref[:, 4 * Cin:5 * Cin]
        else:
            # v7x: 9 accumulating dots (MRB accumulates in place), no packing scratch
            acc1 = None
            center = None
            for kh in range(3):
                for kw in range(3):
                    x_t = tap(xs_ref, kh, kw)
                    if kh == 1 and kw == 1:
                        center = x_t
                    d = jnp.dot(x_t, w1_ref[kh * 3 + kw],
                                preferred_element_type=jnp.float32)
                    acc1 = d if acc1 is None else acc1 + d

        _store_image_and_stats(acc1_ref, stat1_ref, acc1, Hout, Wout)

        if use_projection:
            # 1x1 projection shortcut (stride handled by the strided center tap)
            accsc = jnp.dot(center, wsc_ref[...], preferred_element_type=jnp.float32)
            _store_image_and_stats(accsc_ref, statsc_ref, accsc, Hout, Wout)

    return kernel


def _make_stage2_kernel(Hout, Wout, Cout, fat_k):
    Mt = Hout * Wout

    def kernel(acc1_ref, sc1_ref, sh1_ref, w2_ref, acc2_ref, stat2_ref, *scratch):
        if fat_k:
            y1p_ref, p2_ref = scratch
        else:
            (y1p_ref,) = scratch

        # BN1 folded to scale/shift (+ ReLU), cast to bf16 for the MXU
        y1 = jnp.maximum(acc1_ref[...] * sc1_ref[...] + sh1_ref[...], 0.0
                         ).astype(jnp.bfloat16)

        # pad for conv2 (padding=1): zero only the 1-pixel halo, write the interior once
        y1p_ref[0:1, :, :] = jnp.zeros((1, Wout + 2, Cout), jnp.bfloat16)
        y1p_ref[Hout + 1:Hout + 2, :, :] = jnp.zeros((1, Wout + 2, Cout), jnp.bfloat16)
        y1p_ref[1:Hout + 1, 0:1, :] = jnp.zeros((Hout, 1, Cout), jnp.bfloat16)
        y1p_ref[1:Hout + 1, Wout + 1:Wout + 2, :] = jnp.zeros((Hout, 1, Cout), jnp.bfloat16)
        y1p_ref[1:Hout + 1, 1:Wout + 1, :] = y1

        if fat_k:
            for kh in range(3):
                for kw in range(3):
                    t = kh * 3 + kw
                    p2_ref[:, t * Cout:(t + 1) * Cout] = (
                        y1p_ref[kh:kh + Hout, kw:kw + Wout, :].reshape(Mt, Cout))
            acc2 = jnp.dot(p2_ref[...], w2_ref[...], preferred_element_type=jnp.float32)
        else:
            acc2 = None
            for kh in range(3):
                for kw in range(3):
                    y_t = y1p_ref[kh:kh + Hout, kw:kw + Wout, :].reshape(Mt, Cout)
                    d = jnp.dot(y_t, w2_ref[kh * 3 + kw],
                                preferred_element_type=jnp.float32)
                    acc2 = d if acc2 is None else acc2 + d

        _store_image_and_stats(acc2_ref, stat2_ref, acc2, Hout, Wout)

    return kernel


def _make_stage3_kernel(use_projection):
    if use_projection:
        def kernel(acc2_ref, sc2_ref, sh2_ref, accsc_ref, scsc_ref, shsc_ref, y_ref):
            y2 = acc2_ref[...] * sc2_ref[...] + sh2_ref[...]
            sc = accsc_ref[...] * scsc_ref[...] + shsc_ref[...]
            y_ref[...] = jnp.maximum(y2 + sc, 0.0).astype(jnp.bfloat16)
    else:
        def kernel(acc2_ref, sc2_ref, sh2_ref, x_ref, y_ref):
            y2 = acc2_ref[...] * sc2_ref[...] + sh2_ref[...]
            y_ref[...] = jnp.maximum(y2 + x_ref[...].astype(jnp.float32), 0.0
                                     ).astype(jnp.bfloat16)
    return kernel


# --------------------------------------------------------------------------------------
# public wrappers
# --------------------------------------------------------------------------------------
def basic_block_nhwc(x_nhwc, params, stride=1):
    """One BasicBlock, NHWC in -> NHWC bf16 out, so consecutive blocks chain directly."""
    N, H, W, Cin = x_nhwc.shape
    Cout = int(params["w1"].shape[0])
    s = int(stride)
    Hout = (H - 1) // s + 1
    Wout = (W - 1) // s + 1
    Mt = Hout * Wout
    M = N * Mt
    use_projection = (s != 1) or (Cin != Cout)
    fat_k = _use_fat_k()

    x = x_nhwc.astype(jnp.bfloat16)

    # conv1 input: pad once, then space-to-depth by the stride (1x activation traffic; for
    # s == 1 this is just a reshape).  Every 3x3 tap becomes a plain static slice in-kernel.
    xp = jnp.pad(x, ((0, 0), (1, 1), (1, 1), (0, 0)))
    Hp, Wp = H + 2, W + 2
    Hp2, Wp2 = -(-Hp // s) * s, -(-Wp // s) * s
    if (Hp2, Wp2) != (Hp, Wp):
        xp = jnp.pad(xp, ((0, 0), (0, Hp2 - Hp), (0, Wp2 - Wp), (0, 0)))
    Hph, Wph = Hp2 // s, Wp2 // s
    xs = xp.reshape(N, Hph, s, Wph, s, Cin).transpose(0, 2, 4, 1, 3, 5).reshape(
        N, s * s, Hph, Wph, Cin)

    # torch conv weights (Cout, Cin, kh, kw) -> tap-major, bf16
    w1_hwio = jnp.transpose(params["w1"], (2, 3, 1, 0)).astype(jnp.bfloat16)
    w2_hwio = jnp.transpose(params["w2"], (2, 3, 1, 0)).astype(jnp.bfloat16)
    if fat_k:
        w1 = w1_hwio.reshape(9 * Cin, Cout)
        w2 = w2_hwio.reshape(9 * Cout, Cout)
    else:
        w1 = w1_hwio.reshape(9, Cin, Cout)
        w2 = w2_hwio.reshape(9, Cout, Cout)

    img_shape = (N, Hout, Wout, Cout)
    stat_shape = (N, 2, Cout)

    # ---------------- stage 1: conv1 (+ projection conv) + partial BN sums ----------------
    in1 = [xs, w1]
    in1_specs = [_per_image_spec(xs.shape), _resident_spec(w1.shape)]
    if use_projection:
        wsc = jnp.transpose(params["w_sc"].reshape(Cout, Cin), (1, 0)).astype(jnp.bfloat16)
        in1.append(wsc)
        in1_specs.append(_resident_spec(wsc.shape))

    out1_shapes = [jax.ShapeDtypeStruct(img_shape, jnp.float32),
                   jax.ShapeDtypeStruct(stat_shape, jnp.float32)]
    if use_projection:
        out1_shapes += [jax.ShapeDtypeStruct(img_shape, jnp.float32),
                        jax.ShapeDtypeStruct(stat_shape, jnp.float32)]
    out1_shapes = tuple(out1_shapes)
    out1_specs = tuple(_per_image_spec(o.shape) for o in out1_shapes)

    scratch1 = [pltpu.VMEM((Mt, 9 * Cin), jnp.bfloat16)] if fat_k else []
    scratch1_bytes = _nbytes((Mt, 9 * Cin), jnp.bfloat16) if fat_k else 0

    flops1 = 2 * M * 9 * Cin * Cout + (2 * M * Cin * Cout if use_projection else 0)
    res1 = pl.pallas_call(
        _make_stage1_kernel(s, Hout, Wout, Cin, Cout, use_projection, fat_k),
        grid=(N,),
        in_specs=in1_specs,
        out_specs=out1_specs,
        out_shape=out1_shapes,
        scratch_shapes=scratch1,
        compiler_params=pltpu.CompilerParams(
            dimension_semantics=("parallel",),
            vmem_limit_bytes=_vmem_limit([xs] + list(out1_shapes), in1[1:], scratch1_bytes)),
        cost_estimate=_cost(flops1, in1 + list(out1_shapes)),
    )(*in1)

    if use_projection:
        acc1, stat1, accsc, statsc = res1
    else:
        acc1, stat1 = res1

    scale1, shift1 = _bn_scale_shift(stat1, params["g1"], params["b1"], float(M))

    # ---------------- stage 2: BN1+ReLU -> conv2 + partial BN2 sums ----------------
    in2 = [acc1, scale1, shift1, w2]
    in2_specs = [_per_image_spec(acc1.shape), _resident_spec(scale1.shape),
                 _resident_spec(shift1.shape), _resident_spec(w2.shape)]
    out2_shapes = (jax.ShapeDtypeStruct(img_shape, jnp.float32),
                   jax.ShapeDtypeStruct(stat_shape, jnp.float32))
    out2_specs = tuple(_per_image_spec(o.shape) for o in out2_shapes)

    scratch2 = [pltpu.VMEM((Hout + 2, Wout + 2, Cout), jnp.bfloat16)]
    scratch2_bytes = _nbytes((Hout + 2, Wout + 2, Cout), jnp.bfloat16)
    if fat_k:
        scratch2.append(pltpu.VMEM((Mt, 9 * Cout), jnp.bfloat16))
        scratch2_bytes += _nbytes((Mt, 9 * Cout), jnp.bfloat16)

    acc2, stat2 = pl.pallas_call(
        _make_stage2_kernel(Hout, Wout, Cout, fat_k),
        grid=(N,),
        in_specs=in2_specs,
        out_specs=out2_specs,
        out_shape=out2_shapes,
        scratch_shapes=scratch2,
        compiler_params=pltpu.CompilerParams(
            dimension_semantics=("parallel",),
            vmem_limit_bytes=_vmem_limit([acc1] + list(out2_shapes),
                                         [scale1, shift1, w2], scratch2_bytes)),
        cost_estimate=_cost(2 * M * 9 * Cout * Cout, in2 + list(out2_shapes)),
    )(*in2)

    scale2, shift2 = _bn_scale_shift(stat2, params["g2"], params["b2"], float(M))

    # ---------------- stage 3: BN2 (+ BN_sc) + residual add + ReLU ----------------
    if use_projection:
        scale_sc, shift_sc = _bn_scale_shift(statsc, params["g_sc"], params["b_sc"], float(M))
        in3 = [acc2, scale2, shift2, accsc, scale_sc, shift_sc]
        in3_specs = [_per_image_spec(acc2.shape), _resident_spec(scale2.shape),
                     _resident_spec(shift2.shape), _per_image_spec(accsc.shape),
                     _resident_spec(scale_sc.shape), _resident_spec(shift_sc.shape)]
        tiled3, whole3 = [acc2, accsc], [scale2, shift2, scale_sc, shift_sc]
    else:
        in3 = [acc2, scale2, shift2, x]
        in3_specs = [_per_image_spec(acc2.shape), _resident_spec(scale2.shape),
                     _resident_spec(shift2.shape), _per_image_spec(x.shape)]
        tiled3, whole3 = [acc2, x], [scale2, shift2]

    out3_shape = jax.ShapeDtypeStruct(img_shape, jnp.bfloat16)
    y = pl.pallas_call(
        _make_stage3_kernel(use_projection),
        grid=(N,),
        in_specs=in3_specs,
        out_specs=_per_image_spec(img_shape),
        out_shape=out3_shape,
        compiler_params=pltpu.CompilerParams(
            dimension_semantics=("parallel",),
            vmem_limit_bytes=_vmem_limit(tiled3 + [out3_shape], whole3, 0)),
    )(*in3)
    return y


def basic_block_forward(x_nchw, params, stride=1):
    """PyTorch-layout wrapper: NCHW f32 in -> NCHW f32 out."""
    x_nhwc = jnp.transpose(x_nchw, (0, 2, 3, 1))
    y = basic_block_nhwc(x_nhwc, params, stride)
    return jnp.transpose(y.astype(jnp.float32), (0, 3, 1, 2))


# --------------------------------------------------------------------------------------
# pure-JAX (XLA, f32) reference with identical semantics, for correctness checks
# --------------------------------------------------------------------------------------
def basic_block_reference(x_nchw, params, stride=1):
    N, Cin, H, W = x_nchw.shape
    Cout = params["w1"].shape[0]
    x = jnp.transpose(x_nchw, (0, 2, 3, 1)).astype(jnp.float32)

    def conv(inp, w_oihw, s):
        w = jnp.transpose(w_oihw, (2, 3, 1, 0))                # HWIO
        p = w.shape[0] // 2
        return jax.lax.conv_general_dilated(
            inp, w, window_strides=(s, s), padding=((p, p), (p, p)),
            dimension_numbers=("NHWC", "HWIO", "NHWC"))

    def bn(inp, g, b):
        mean = jnp.mean(inp, axis=(0, 1, 2), keepdims=True)
        var = jnp.mean((inp - mean) ** 2, axis=(0, 1, 2), keepdims=True)
        return (inp - mean) * jax.lax.rsqrt(var + BN_EPS) * g + b

    y = jax.nn.relu(bn(conv(x, params["w1"], stride), params["g1"], params["b1"]))
    y = bn(conv(y, params["w2"], 1), params["g2"], params["b2"])
    if stride != 1 or Cin != Cout:
        sc = bn(conv(x, params["w_sc"], stride), params["g_sc"], params["b_sc"])
    else:
        sc = x
    return jnp.transpose(jax.nn.relu(y + sc), (0, 3, 1, 2))


if __name__ == "__main__":
    key = jax.random.PRNGKey(0)

    def make_params(k, Cin, Cout, need_proj):
        ks = jax.random.split(k, 9)
        p = {
            "w1": 0.1 * jax.random.normal(ks[0], (Cout, Cin, 3, 3), jnp.float32),
            "g1": 1.0 + 0.1 * jax.random.normal(ks[1], (Cout,), jnp.float32),
            "b1": 0.1 * jax.random.normal(ks[2], (Cout,), jnp.float32),
            "w2": 0.1 * jax.random.normal(ks[3], (Cout, Cout, 3, 3), jnp.float32),
            "g2": 1.0 + 0.1 * jax.random.normal(ks[4], (Cout,), jnp.float32),
            "b2": 0.1 * jax.random.normal(ks[5], (Cout,), jnp.float32),
        }
        if need_proj:
            p["w_sc"] = 0.1 * jax.random.normal(ks[6], (Cout, Cin, 1, 1), jnp.float32)
            p["g_sc"] = 1.0 + 0.1 * jax.random.normal(ks[7], (Cout,), jnp.float32)
            p["b_sc"] = 0.1 * jax.random.normal(ks[8], (Cout,), jnp.float32)
        return p

    cases = [
        # (N, Cin, Cout, H, W, stride)
        (2, 4, 8, 16, 16, 1),    # projection shortcut (channel change), stride 1
        (2, 8, 8, 16, 16, 1),    # identity shortcut
        (2, 8, 16, 16, 16, 2),   # stride-2 downsampling block (in-kernel strided taps)
    ]
    for idx, (N, Cin, Cout, H, W, stride) in enumerate(cases):
        kp, kx, key = jax.random.split(key, 3)
        need_proj = (stride != 1) or (Cin != Cout)
        params = make_params(kp, Cin, Cout, need_proj)
        x = jax.random.normal(kx, (N, Cin, H, W), jnp.float32)

        out = jax.block_until_ready(basic_block_forward(x, params, stride))
        ref = jax.block_until_ready(basic_block_reference(x, params, stride))

        Hout = (H - 1) // stride + 1
        Wout = (W - 1) // stride + 1
        assert out.shape == (N, Cout, Hout, Wout)
        err = float(jnp.max(jnp.abs(out - ref)))
        # bf16 MXU operands vs. f32 XLA reference -> loosened tolerance.
        assert jnp.allclose(out, ref, atol=5e-2, rtol=5e-2), \
            f"case {idx}: max abs err = {err}"

    # chained blocks in NHWC/bf16 (no per-block NCHW<->NHWC transposes between blocks)
    kpA, kpB, kx, key = jax.random.split(key, 4)
    pA = make_params(kpA, 8, 8, False)
    pB = make_params(kpB, 8, 16, True)
    xc = jax.random.normal(kx, (2, 8, 16, 16), jnp.float32)
    x_nhwc = jnp.transpose(xc, (0, 2, 3, 1)).astype(jnp.bfloat16)
    y_nhwc = basic_block_nhwc(basic_block_nhwc(x_nhwc, pA, 1), pB, 2)
    out = jax.block_until_ready(jnp.transpose(y_nhwc.astype(jnp.float32), (0, 3, 1, 2)))
    ref = jax.block_until_ready(
        basic_block_reference(basic_block_reference(xc, pA, 1), pB, 2))
    assert out.shape == (2, 16, 8, 8)
    errc = float(jnp.max(jnp.abs(out - ref)))
    assert jnp.allclose(out, ref, atol=1e-1, rtol=1e-1), f"chained: max abs err = {errc}"

    print("KERNEL_OK")
</pallas_src>

<mosaic_0001>
module attributes {stable_mosaic.version = 11 : i64} {
  func.func @kernel(%arg0: i32, %arg1: memref<1x1x18x18x4xbf16, #tpu.memory_space<vmem>>, %arg2: memref<36x8xbf16, #tpu.memory_space<vmem>>, %arg3: memref<4x8xbf16, #tpu.memory_space<vmem>>, %arg4: memref<1x16x16x8xf32, #tpu.memory_space<vmem>>, %arg5: memref<1x2x8xf32, #tpu.memory_space<vmem>>, %arg6: memref<1x16x16x8xf32, #tpu.memory_space<vmem>>, %arg7: memref<1x2x8xf32, #tpu.memory_space<vmem>>, %arg8: memref<256x36xbf16, #tpu.memory_space<vmem>>) attributes {dimension_semantics = [#tpu.dimension_semantics<parallel>], iteration_bounds = array<i64: 2>, scalar_prefetch = 0 : i64, scratch_operands = 1 : i64, tpu.core_type = #tpu.core_type<tc>, window_params = [{transform_indices = @transform_0, window_bounds = array<i64: 1, 1, 18, 18, 4>}, {pipeline_mode = #tpu.pipeline_mode<synchronous>, transform_indices = @transform_1, window_bounds = array<i64: 36, 8>}, {pipeline_mode = #tpu.pipeline_mode<synchronous>, transform_indices = @transform_2, window_bounds = array<i64: 4, 8>}, {transform_indices = @transform_3, window_bounds = array<i64: 1, 16, 16, 8>}, {transform_indices = @transform_4, window_bounds = array<i64: 1, 2, 8>}, {transform_indices = @transform_5, window_bounds = array<i64: 1, 16, 16, 8>}, {transform_indices = @transform_6, window_bounds = array<i64: 1, 2, 8>}]} {
    %c0 = arith.constant 0 : index
    %c0_0 = arith.constant 0 : index
    %c0_1 = arith.constant 0 : index
    %c0_2 = arith.constant 0 : index
    %c0_3 = arith.constant 0 : index
    %0 = vector.load %arg1[%c0, %c0_0, %c0_1, %c0_2, %c0_3] : memref<1x1x18x18x4xbf16, #tpu.memory_space<vmem>>, vector<1x1x16x16x4xbf16>
    %1 = vector.shape_cast %0 : vector<1x1x16x16x4xbf16> to vector<16x16x4xbf16>
    %2 = vector.shape_cast %1 : vector<16x16x4xbf16> to vector<256x4xbf16>
    %c0_4 = arith.constant 0 : index
    %c0_5 = arith.constant 0 : index
    %3 = vector.load %arg8[%c0_4, %c0_5] : memref<256x36xbf16, #tpu.memory_space<vmem>>, vector<256x4xbf16>
    tpu.vector_store %arg8[%c0_4, %c0_5], %2 {strides = array<i32>} : memref<256x36xbf16, #tpu.memory_space<vmem>>, vector<256x4xbf16>,
    %c0_6 = arith.constant 0 : index
    %c0_7 = arith.constant 0 : index
    %c0_8 = arith.constant 0 : index
    %c1 = arith.constant 1 : index
    %c0_9 = arith.constant 0 : index
    %4 = vector.load %arg1[%c0_6, %c0_7, %c0_8, %c1, %c0_9] : memref<1x1x18x18x4xbf16, #tpu.memory_space<vmem>>, vector<1x1x16x16x4xbf16>
    %5 = vector.shape_cast %4 : vector<1x1x16x16x4xbf16> to vector<16x16x4xbf16>
    %6 = vector.shape_cast %5 : vector<16x16x4xbf16> to vector<256x4xbf16>
    %c0_10 = arith.constant 0 : index
    %c4 = arith.constant 4 : index
    %7 = vector.load %arg8[%c0_10, %c4] : memref<256x36xbf16, #tpu.memory_space<vmem>>, vector<256x4xbf16>
    tpu.vector_store %arg8[%c0_10, %c4], %6 {strides = array<i32>} : memref<256x36xbf16, #tpu.memory_space<vmem>>, vector<256x4xbf16>,
    %c0_11 = arith.constant 0 : index
    %c0_12 = arith.constant 0 : index
    %c0_13 = arith.constant 0 : index
    %c2 = arith.constant 2 : index
    %c0_14 = arith.constant 0 : index
    %8 = vector.load %arg1[%c0_11, %c0_12, %c0_13, %c2, %c0_14] : memref<1x1x18x18x4xbf16, #tpu.memory_space<vmem>>, vector<1x1x16x16x4xbf16>
    %9 = vector.shape_cast %8 : vector<1x1x16x16x4xbf16> to vector<16x16x4xbf16>
    %10 = vector.shape_cast %9 : vector<16x16x4xbf16> to vector<256x4xbf16>
    %c0_15 = arith.constant 0 : index
    %c8 = arith.constant 8 : index
    %11 = vector.load %arg8[%c0_15, %c8] : memref<256x36xbf16, #tpu.memory_space<vmem>>, vector<256x4xbf16>
    tpu.vector_store %arg8[%c0_15, %c8], %10 {strides = array<i32>} : memref<256x36xbf16, #tpu.memory_space<vmem>>, vector<256x4xbf16>,
    %c0_16 = arith.constant 0 : index
    %c0_17 = arith.constant 0 : index
    %c1_18 = arith.constant 1 : index
    %c0_19 = arith.constant 0 : index
    %c0_20 = arith.constant 0 : index
    %12 = vector.load %arg1[%c0_16, %c0_17, %c1_18, %c0_19, %c0_20] : memref<1x1x18x18x4xbf16, #tpu.memory_space<vmem>>, vector<1x1x16x16x4xbf16>
    %13 = vector.shape_cast %12 : vector<1x1x16x16x4xbf16> to vector<16x16x4xbf16>
    %14 = vector.shape_cast %13 : vector<16x16x4xbf16> to vector<256x4xbf16>
    %c0_21 = arith.constant 0 : index
    %c12 = arith.constant 12 : index
    %15 = vector.load %arg8[%c0_21, %c12] : memref<256x36xbf16, #tpu.memory_space<vmem>>, vector<256x4xbf16>
    tpu.vector_store %arg8[%c0_21, %c12], %14 {strides = array<i32>} : memref<256x36xbf16, #tpu.memory_space<vmem>>, vector<256x4xbf16>,
    %c0_22 = arith.constant 0 : index
    %c0_23 = arith.constant 0 : index
    %c1_24 = arith.constant 1 : index
    %c1_25 = arith.constant 1 : index
    %c0_26 = arith.constant 0 : index
    %16 = vector.load %arg1[%c0_22, %c0_23, %c1_24, %c1_25, %c0_26] : memref<1x1x18x18x4xbf16, #tpu.memory_space<vmem>>, vector<1x1x16x16x4xbf16>
    %17 = vector.shape_cast %16 : vector<1x1x16x16x4xbf16> to vector<16x16x4xbf16>
    %18 = vector.shape_cast %17 : vector<16x16x4xbf16> to vector<256x4xbf16>
    %c0_27 = arith.constant 0 : index
    %c16 = arith.constant 16 : index
    %19 = vector.load %arg8[%c0_27, %c16] : memref<256x36xbf16, #tpu.memory_space<vmem>>, vector<256x4xbf16>
    tpu.vector_store %arg8[%c0_27, %c16], %18 {strides = array<i32>} : memref<256x36xbf16, #tpu.memory_space<vmem>>, vector<256x4xbf16>,
    %c0_28 = arith.constant 0 : index
    %c0_29 = arith.constant 0 : index
    %c1_30 = arith.constant 1 : index
    %c2_31 = arith.constant 2 : index
    %c0_32 = arith.constant 0 : index
    %20 = vector.load %arg1[%c0_28, %c0_29, %c1_30, %c2_31, %c0_32] : memref<1x1x18x18x4xbf16, #tpu.memory_space<vmem>>, vector<1x1x16x16x4xbf16>
    %21 = vector.shape_cast %20 : vector<1x1x16x16x4xbf16> to vector<16x16x4xbf16>
    %22 = vector.shape_cast %21 : vector<16x16x4xbf16> to vector<256x4xbf16>
    %c0_33 = arith.constant 0 : index
    %c20 = arith.constant 20 : index
    %23 = vector.load %arg8[%c0_33, %c20] : memref<256x36xbf16, #tpu.memory_space<vmem>>, vector<256x4xbf16>
    tpu.vector_store %arg8[%c0_33, %c20], %22 {strides = array<i32>} : memref<256x36xbf16, #tpu.memory_space<vmem>>, vector<256x4xbf16>,
    %c0_34 = arith.constant 0 : index
    %c0_35 = arith.constant 0 : index
    %c2_36 = arith.constant 2 : index
    %c0_37 = arith.constant 0 : index
    %c0_38 = arith.constant 0 : index
    %24 = vector.load %arg1[%c0_34, %c0_35, %c2_36, %c0_37, %c0_38] : memref<1x1x18x18x4xbf16, #tpu.memory_space<vmem>>, vector<1x1x16x16x4xbf16>
    %25 = vector.shape_cast %24 : vector<1x1x16x16x4xbf16> to vector<16x16x4xbf16>
    %26 = vector.shape_cast %25 : vector<16x16x4xbf16> to vector<256x4xbf16>
    %c0_39 = arith.constant 0 : index
    %c24 = arith.constant 24 : index
    %27 = vector.load %arg8[%c0_39, %c24] : memref<256x36xbf16, #tpu.memory_space<vmem>>, vector<256x4xbf16>
    tpu.vector_store %arg8[%c0_39, %c24], %26 {strides = array<i32>} : memref<256x36xbf16, #tpu.memory_space<vmem>>, vector<256x4xbf16>,
    %c0_40 = arith.constant 0 : index
    %c0_41 = arith.constant 0 : index
    %c2_42 = arith.constant 2 : index
    %c1_43 = arith.constant 1 : index
    %c0_44 = arith.constant 0 : index
    %28 = vector.load %arg1[%c0_40, %c0_41, %c2_42, %c1_43, %c0_44] : memref<1x1x18x18x4xbf16, #tpu.memory_space<vmem>>, vector<1x1x16x16x4xbf16>
    %29 = vector.shape_cast %28 : vector<1x1x16x16x4xbf16> to vector<16x16x4xbf16>
    %30 = vector.shape_cast %29 : vector<16x16x4xbf16> to vector<256x4xbf16>
    %c0_45 = arith.constant 0 : index
    %c28 = arith.constant 28 : index
    %31 = vector.load %arg8[%c0_45, %c28] : memref<256x36xbf16, #tpu.memory_space<vmem>>, vector<256x4xbf16>
    tpu.vector_store %arg8[%c0_45, %c28], %30 {strides = array<i32>} : memref<256x36xbf16, #tpu.memory_space<vmem>>, vector<256x4xbf16>,
    %c0_46 = arith.constant 0 : index
    %c0_47 = arith.constant 0 : index
    %c2_48 = arith.constant 2 : index
    %c2_49 = arith.constant 2 : index
    %c0_50 = arith.constant 0 : index
    %32 = vector.load %arg1[%c0_46, %c0_47, %c2_48, %c2_49, %c0_50] : memref<1x1x18x18x4xbf16, #tpu.memory_space<vmem>>, vector<1x1x16x16x4xbf16>
    %33 = vector.shape_cast %32 : vector<1x1x16x16x4xbf16> to vector<16x16x4xbf16>
    %34 = vector.shape_cast %33 : vector<16x16x4xbf16> to vector<256x4xbf16>
    %c0_51 = arith.constant 0 : index
    %c32 = arith.constant 32 : index
    %35 = vector.load %arg8[%c0_51, %c32] : memref<256x36xbf16, #tpu.memory_space<vmem>>, vector<256x4xbf16>
    tpu.vector_store %arg8[%c0_51, %c32], %34 {strides = array<i32>} : memref<256x36xbf16, #tpu.memory_space<vmem>>, vector<256x4xbf16>,
    %c0_52 = arith.constant 0 : index
    %c0_53 = arith.constant 0 : index
    %36 = vector.load %arg8[%c0_52, %c0_53] : memref<256x36xbf16, #tpu.memory_space<vmem>>, vector<256x36xbf16>
    %c0_54 = arith.constant 0 : index
    %c0_55 = arith.constant 0 : index
    %37 = vector.load %arg2[%c0_54, %c0_55] : memref<36x8xbf16, #tpu.memory_space<vmem>>, vector<36x8xbf16>
    %cst = arith.constant dense<0.000000e+00> : vector<256x8xf32>
    %38 = tpu.matmul %36, %37, %cst {dimension_numbers = #tpu.dot_dimension_numbers<[1], [0], [0], [1], [0, 0, 1, 1], [], []>} : vector<256x36xbf16>, vector<36x8xbf16>, vector<256x8xf32> -> vector<256x8xf32>
    %c0_56 = arith.constant 0 : index
    %c16_57 = arith.constant 16 : index
    %39 = vector.load %arg8[%c0_56, %c16_57] : memref<256x36xbf16, #tpu.memory_space<vmem>>, vector<256x4xbf16>
    %40 = vector.shape_cast %38 : vector<256x8xf32> to vector<16x16x8xf32>
    %c0_58 = arith.constant 0 : index
    %c0_59 = arith.constant 0 : index
    %c0_60 = arith.constant 0 : index
    %c0_61 = arith.constant 0 : index
    %41 = vector.load %arg4[%c0_58, %c0_59, %c0_60, %c0_61] : memref<1x16x16x8xf32, #tpu.memory_space<vmem>>, vector<1x16x16x8xf32>
    %42 = vector.shape_cast %41 : vector<1x16x16x8xf32> to vector<16x16x8xf32>
    %43 = vector.shape_cast %40 : vector<16x16x8xf32> to vector<1x16x16x8xf32>
    tpu.vector_store %arg4[%c0_58, %c0_59, %c0_60, %c0_61], %43 {strides = array<i32>} : memref<1x16x16x8xf32, #tpu.memory_space<vmem>>, vector<1x16x16x8xf32>,
    %cst_62 = arith.constant dense<0.000000e+00> : vector<8xf32>
    %44 = vector.multi_reduction <add>, %38, %cst_62 [0] : vector<256x8xf32> to vector<8xf32>
    %45 = vector.shape_cast %44 : vector<8xf32> to vector<1x8xf32>
    %c0_63 = arith.constant 0 : index
    %c0_64 = arith.constant 0 : index
    %c0_65 = arith.constant 0 : index
    %46 = vector.load %arg5[%c0_63, %c0_64, %c0_65] : memref<1x2x8xf32, #tpu.memory_space<vmem>>, vector<1x1x8xf32>
    %47 = vector.shape_cast %46 : vector<1x1x8xf32> to vector<1x8xf32>
    %48 = vector.shape_cast %45 : vector<1x8xf32> to vector<1x1x8xf32>
    tpu.vector_store %arg5[%c0_63, %c0_64, %c0_65], %48 {strides = array<i32>} : memref<1x2x8xf32, #tpu.memory_space<vmem>>, vector<1x1x8xf32>,
    %49 = arith.mulf %38, %38 : vector<256x8xf32>
    %cst_66 = arith.constant dense<0.000000e+00> : vector<8xf32>
    %50 = vector.multi_reduction <add>, %49, %cst_66 [0] : vector<256x8xf32> to vector<8xf32>
    %51 = vector.shape_cast %50 : vector<8xf32> to vector<1x8xf32>
    %c0_67 = arith.constant 0 : index
    %c1_68 = arith.constant 1 : index
    %c0_69 = arith.constant 0 : index
    %52 = vector.load %arg5[%c0_67, %c1_68, %c0_69] : memref<1x2x8xf32, #tpu.memory_space<vmem>>, vector<1x1x8xf32>
    %53 = vector.shape_cast %52 : vector<1x1x8xf32> to vector<1x8xf32>
    %54 = vector.shape_cast %51 : vector<1x8xf32> to vector<1x1x8xf32>
    tpu.vector_store %arg5[%c0_67, %c1_68, %c0_69], %54 {strides = array<i32>} : memref<1x2x8xf32, #tpu.memory_space<vmem>>, vector<1x1x8xf32>,
    %c0_70 = arith.constant 0 : index
    %c0_71 = arith.constant 0 : index
    %55 = vector.load %arg3[%c0_70, %c0_71] : memref<4x8xbf16, #tpu.memory_space<vmem>>, vector<4x8xbf16>
    %cst_72 = arith.constant dense<0.000000e+00> : vector<256x8xf32>
    %56 = tpu.matmul %39, %55, %cst_72 {dimension_numbers = #tpu.dot_dimension_numbers<[1], [0], [0], [1], [0, 0, 1, 1], [], []>} : vector<256x4xbf16>, vector<4x8xbf16>, vector<256x8xf32> -> vector<256x8xf32>
    %57 = vector.shape_cast %56 : vector<256x8xf32> to vector<16x16x8xf32>
    %c0_73 = arith.constant 0 : index
    %c0_74 = arith.constant 0 : index
    %c0_75 = arith.constant 0 : index
    %c0_76 = arith.constant 0 : index
    %58 = vector.load %arg6[%c0_73, %c0_74, %c0_75, %c0_76] : memref<1x16x16x8xf32, #tpu.memory_space<vmem>>, vector<1x16x16x8xf32>
    %59 = vector.shape_cast %58 : vector<1x16x16x8xf32> to vector<16x16x8xf32>
    %60 = vector.shape_cast %57 : vector<16x16x8xf32> to vector<1x16x16x8xf32>
    tpu.vector_store %arg6[%c0_73, %c0_74, %c0_75, %c0_76], %60 {strides = array<i32>} : memref<1x16x16x8xf32, #tpu.memory_space<vmem>>, vector<1x16x16x8xf32>,
    %cst_77 = arith.constant dense<0.000000e+00> : vector<8xf32>
    %61 = vector.multi_reduction <add>, %56, %cst_77 [0] : vector<256x8xf32> to vector<8xf32>
    %62 = vector.shape_cast %61 : vector<8xf32> to vector<1x8xf32>
    %c0_78 = arith.constant 0 : index
    %c0_79 = arith.constant 0 : index
    %c0_80 = arith.constant 0 : index
    %63 = vector.load %arg7[%c0_78, %c0_79, %c0_80] : memref<1x2x8xf32, #tpu.memory_space<vmem>>, vector<1x1x8xf32>
    %64 = vector.shape_cast %63 : vector<1x1x8xf32> to vector<1x8xf32>
    %65 = vector.shape_cast %62 : vector<1x8xf32> to vector<1x1x8xf32>
    tpu.vector_store %arg7[%c0_78, %c0_79, %c0_80], %65 {strides = array<i32>} : memref<1x2x8xf32, #tpu.memory_space<vmem>>, vector<1x1x8xf32>,
    %66 = arith.mulf %56, %56 : vector<256x8xf32>
    %cst_81 = arith.constant dense<0.000000e+00> : vector<8xf32>
    %67 = vector.multi_reduction <add>, %66, %cst_81 [0] : vector<256x8xf32> to vector<8xf32>
    %68 = vector.shape_cast %67 : vector<8xf32> to vector<1x8xf32>
    %c0_82 = arith.constant 0 : index
    %c1_83 = arith.constant 1 : index
    %c0_84 = arith.constant 0 : index
    %69 = vector.load %arg7[%c0_82, %c1_83, %c0_84] : memref<1x2x8xf32, #tpu.memory_space<vmem>>, vector<1x1x8xf32>
    %70 = vector.shape_cast %69 : vector<1x1x8xf32> to vector<1x8xf32>
    %71 = vector.shape_cast %68 : vector<1x8xf32> to vector<1x1x8xf32>
    tpu.vector_store %arg7[%c0_82, %c1_83, %c0_84], %71 {strides = array<i32>} : memref<1x2x8xf32, #tpu.memory_space<vmem>>, vector<1x1x8xf32>,
    return
  }
  func.func @transform_0(%arg0: i32) -> (i32, i32, i32, i32, i32) {
    %c0_i32 = arith.constant 0 : i32
    %c0_i32_0 = arith.constant 0 : i32
    %c0_i32_1 = arith.constant 0 : i32
    %c0_i32_2 = arith.constant 0 : i32
    %c0_i32_3 = arith.constant 0 : i32
    return %arg0, %c0_i32, %c0_i32_0, %c0_i32_1, %c0_i32_2 : i32, i32, i32, i32, i32
  }
  func.func @transform_1(%arg0: i32) -> (i32, i32) {
    %c0_i32 = arith.constant 0 : i32
    %c0_i32_0 = arith.constant 0 : i32
    %c0_i32_1 = arith.constant 0 : i32
    return %c0_i32, %c0_i32_0 : i32, i32
  }
  func.func @transform_2(%arg0: i32) -> (i32, i32) {
    %c0_i32 = arith.constant 0 : i32
    %c0_i32_0 = arith.constant 0 : i32
    %c0_i32_1 = arith.constant 0 : i32
    return %c0_i32, %c0_i32_0 : i32, i32
  }
  func.func @transform_3(%arg0: i32) -> (i32, i32, i32, i32) {
    %c0_i32 = arith.constant 0 : i32
    %c0_i32_0 = arith.constant 0 : i32
    %c0_i32_1 = arith.constant 0 : i32
    %c0_i32_2 = arith.constant 0 : i32
    return %arg0, %c0_i32, %c0_i32_0, %c0_i32_1 : i32, i32, i32, i32
  }
  func.func @transform_4(%arg0: i32) -> (i32, i32, i32) {
    %c0_i32 = arith.constant 0 : i32
    %c0_i32_0 = arith.constant 0 : i32
    %c0_i32_1 = arith.constant 0 : i32
    return %arg0, %c0_i32, %c0_i32_0 : i32, i32, i32
  }
  func.func @transform_5(%arg0: i32) -> (i32, i32, i32, i32) {
    %c0_i32 = arith.constant 0 : i32
    %c0_i32_0 = arith.constant 0 : i32
    %c0_i32_1 = arith.constant 0 : i32
    %c0_i32_2 = arith.constant 0 : i32
    return %arg0, %c0_i32, %c0_i32_0, %c0_i32_1 : i32, i32, i32, i32
  }
  func.func @transform_6(%arg0: i32) -> (i32, i32, i32) {
    %c0_i32 = arith.constant 0 : i32
    %c0_i32_0 = arith.constant 0 : i32
    %c0_i32_1 = arith.constant 0 : i32
    return %arg0, %c0_i32, %c0_i32_0 : i32, i32, i32
  }
}

</mosaic_0001>

<bundles_post_ra>
// kernel: tpu_custom_call.1
= control target key start
LH: loop header
LB: loop body
LE: loop exit
PB: predicated region body
PF: predicated region fallthrough
CT: control target
= control target key end

     0   :  { %12 = vsyncpa [#allocation4], 0  ;;  %s7209_s0 = inlined_call_operand.vmem [shape: bf16[2,1,18,18,4], index: 0, kind: input, shape index: {}]   ;;  %s7210_s1 = inlined_call_operand.vmem [shape: bf16[36,8], index: 1, kind: input, shape index: {}]   ;;  %s7211_s2 = inlined_call_operand.vmem [shape: bf16[4,8], index: 2, kind: input, shape index: {}]   ;;  %s7212_s3 = inlined_call_operand.vmem [shape: f32[2,16,16,8], index: 3, kind: output, shape index: {0}]   ;;  %s7213_s4 = inlined_call_operand.hbm [shape: f32[2,2,8], index: 4, kind: output, shape index: {1}]   ;;  %s7214_s5 = inlined_call_operand.vmem [shape: f32[2,16,16,8], index: 5, kind: output, shape index: {2}]   ;;  %s7215_s6 = inlined_call_operand.hbm [shape: f32[2,2,8], index: 6, kind: output, shape index: {3}]  }
   0x1   :  { %14 = vsyncpa [#allocation4 + $0x1], 0 }
   0x2   :  { %15 = vsyncpa [#allocation6], 0 }
   0x3   :  { %17 = vsyncpa [#allocation6 + $0x1], 0  ;;  %s5331_s21 = smov 0   ;;  %s5333_s22 = smov 0  }
   0x4   :  { %s5335_s23 = smov 0   ;;  %s5337_s24 = smov 0  }
   0x5 LB: > { %s5352_s25 = sadd.s32 4294967295, %s5283_s24   ;;  %s4630_s26 = sadd.s32 4294967294, %s5283_s24   ;;  %s5283_s24 = sphi %s5337_s24, %s7227_s24   ;;  %s5279_s23 = sphi %s5335_s23, %s7226_s23   ;;  %s5275_s22 = sphi %s5333_s22, %s7225_s22   ;;  %s5271_s21 = sphi %s5331_s21, %s7224_s21  }
   0x6   : > { %s5356_s27 = sadd.s32 1, %s5283_s24   ;;  %s124_s28 = sadd.s32 1, %s5279_s23 }
   0x7   : > { %s121_s29 = ssub.s32 %s5283_s24, %s5356_s27  ;;  %p134_p0 = scmp.ne.s32.totalorder %s5279_s23, %s5275_s22 }
   0x8   : > { %p122_p1 = scmp.eq.s32.totalorder %s121_s29, 0  ;;  %p135_p2 = scmp.eq.s32.totalorder %s5352_s25, 1 }
   0x9   : > { %p140_p3 = scmp.ne.s32.totalorder %s5275_s22, %s5271_s21  ;;  %p141_p4 = scmp.eq.s32.totalorder %s4630_s26, 1 }
   0xa   : > { %s5367_s30 = scalar_select %p122_p1, %s5279_s23, %s124_s28  }
   0xb   : > { %p5369_p5 = por %p135_p2, %p134_p0  ;;  %p5373_p6 = por %p141_p4, %p140_p3 }
   0xc   : > { %p4633_p7 = scmp.ge.s32.totalorder %s5283_s24, 1  ;;  %p225_p8 = scmp.lt.s32.totalorder %s5283_s24, 3 }
   0xe   : > { %p226_p9 = pnand %p4633_p7, %p225_p8 }
   0xf   : > { %p270_p10 = scmp.lt.s32.totalorder (!%p226_p9), %s5352_s25, 1  ;;  %s5285_s14 = smov (!%p226_p9), 4  }
  0x10   : > { %229 = sbr.rel (%p226_p9) target bundleno = 1016 (0x3f8), region = 32  ;;  %s5286_s15 = smov (!%p226_p9), 8  }
  0x11   : > { %s5287_s16 = smov (!%p226_p9), 12   ;;  %s5288_s17 = smov (!%p226_p9), 16  }
  0x12   : > { %s5289_s18 = smov (!%p226_p9), 20   ;;  %s5290_s19 = smov (!%p226_p9), 24  }
  0x13   : > { %s7216_s11 = sshll.u32 (!%p226_p9), %s5352_s25, 5  ;;  %s5294_s20 = smov (!%p226_p9), [#allocation3]  }
  0x15   : > { %s5381_s9 = scalar_select %p270_p10, %s5352_s25, 1  ;;  %vm399_vm0 = vsmask.f32 3328  ;;  %vm400_vm1 = vsmask.f32 7440  ;;  %vm318_vm3 = vcmask 27648  }
  0x16   : > { %vm5398_vm2 = vmor %vm399_vm0, %vm400_vm1  ;;  %vm1011_vm4 = vcmask 1042432   ;;  %vm1012_vm5 = vcmask 1046532   ;;  %vm882_vm7 = vcmask 60448   ;;  %vm3620_vm8 = vcmask 1041408  }
  0x17   : > { %s5114_s10 = smul.u32 216, %s5381_s9  ;;  %vm5542_vm6 = vmor %vm1011_vm4, %vm1012_vm5  ;;  %vm1222_vm9 = vcmask 93248   ;;  %vm1416_vm10 = vcmask 126048   ;;  %vm1977_vm11 = vcmask 158848   ;;  %vm2314_vm12 = vcmask 191648  }
  0x18   : > { %vm2508_vm13 = vcmask 224448   ;;  %vm3069_vm14 = vcmask 257248   ;;  %vm3406_vm15 = vcmask 290048   ;;  %vm3571_vm0 = vcmask 293888  }
  0x19   : > { %s5387_s13 = scalar_lea.vmem %s7209_s0, %s5114_s10  ;;  %s5291_s10 = smov 28   ;;  %vm3785_vm1 = vcmask 64512  }
  0x1a   : > { %v354_v0 = vld [vmem:[%s5387_s13 + $0xc] sm:$0xf]  ;;  %v355_v1 = vld [vmem:[%s5387_s13 + $0x10] sm:$0xf]  ;;  %v351_v2 = vld [vmem:[%s5387_s13] sm:$0xf] }
  0x1b   : > { %v427_v3 = vshrl.u32 %v354_v0, 16  ;;  %v430_v4 = vshll.u32 %v354_v0, 16  ;;  %v436_v5 = vshll.u32 %v355_v1, 16  ;;  %v440_v6 = vshrl.u32 %v355_v1, 16  ;;  %v352_v7 = vld [vmem:[%s5387_s13 + $0x4] sm:$0xf] }
  0x1c   : > { %v403_v8 = vshrl.u32 %v351_v2, 16  ;;  %v406_v9 = vshll.u32 %v351_v2, 16  ;;  %v412_v10 = vshll.u32 %v352_v7, 16  ;;  %v416_v11 = vshrl.u32 %v352_v7, 16  ;;  %v356_v12 = vld [vmem:[%s5387_s13 + $0x14] sm:$0x1] }
  0x1d   : > { %v429_v13 = vrot.slane %v427_v3, 4  ;;  %v432_v14 = vrot.slane %v430_v4, 5  ;;  %v438_v15 = vrot.slane %v436_v5, 5  ;;  %v442_v16 = vrot.slane %v440_v6, 4  ;;  %v353_v17 = vld [vmem:[%s5387_s13 + $0x8] sm:$0x1] }
  0x1e   : > { %v405_v18 = vrot.slane %v403_v8, 4  ;;  %v408_v19 = vrot.slane %v406_v9, 5  ;;  %v414_v20 = vrot.slane %v412_v10, 5  ;;  %v418_v21 = vrot.slane %v416_v11, 4  ;;  %v358_v22 = vld [vmem:[%s5387_s13 + $0x1c] sm:$0xf] }
  0x1f   : > { %v433_v23 = vor.u32 %v432_v14, %v429_v13  ;;  %v443_v24 = vor.u32 %v442_v16, %v438_v15  ;;  %v446_v25 = vshll.u32 %v356_v12, 16  ;;  %v422_v26 = vshll.u32 %v353_v17, 16  ;;  %v359_v30 = vld [vmem:[%s5387_s13 + $0x20] sm:$0x1]  ;;  %v357_v33 = vld [vmem:[%s5387_s13 + $0x18] sm:$0xf] }
  0x20   : > { %v409_v28 = vor.u32 %v408_v19, %v405_v18  ;;  %v419_v29 = vor.u32 %v418_v21, %v414_v20  ;;  %v460_v31 = vshll.u32 %v358_v22, 16  ;;  %v464_v32 = vshrl.u32 %v358_v22, 16  ;;  %v361_v42 = vld [vmem:[%s5387_s13 + $0x28] sm:$0xf]  ;;  %v362_v47 = vld [vmem:[%s5387_s13 + $0x2c] sm:$0x1] }
  0x21   : > { %v434_v34 = vrot.slane %v433_v23, 4  ;;  %v444_v35 = vrot.slane %v443_v24, 4  ;;  %v448_v36 = vrot.slane %v446_v25, 5  ;;  %v424_v37 = vrot.slane %v422_v26, 5  ;;  %v360_v48 = vld [vmem:[%s5387_s13 + $0x24] sm:$0xf] }
  0x22   : > { %v410_v38 = vrot.slane %v409_v28, 4  ;;  %v420_v39 = vrot.slane %v419_v29, 4  ;;  %v462_v40 = vrot.slane %v460_v31, 5  ;;  %v466_v41 = vrot.slane %v464_v32, 4  ;;  %v364_v53 = vld [vmem:[%s5387_s13 + $0x34] sm:$0xf] }
  0x23   : > { %v439_v43 = vsel %vm5398_vm2, %v434_v34, %v438_v15  ;;  %v449_v44 = vsel %vm5398_vm2, %v444_v35, %v448_v36  ;;  %v470_v45 = vshll.u32 %v359_v30, 16  ;;  %v451_v46 = vshrl.u32 %v357_v33, 16  ;;  %v365_v62 = vld [vmem:[%s5387_s13 + $0x38] sm:$0x1]  ;;  %v363_v3 = vld [vmem:[%s5387_s13 + $0x30] sm:$0xf] }
  0x24   : > { %790 = vrot.lane.b32.xlu1 %v439_v43, %s5285_s14  ;;  %v415_v49 = vsel %vm5398_vm2, %v410_v38, %v414_v20  ;;  %v425_v50 = vsel %vm5398_vm2, %v420_v39, %v424_v37  ;;  %v467_v51 = vor.u32 %v466_v41, %v462_v40  ;;  %v454_v52 = vshll.u32 %v357_v33, 16  ;;  %v367_v8 = vld [vmem:[%s5387_s13 + $0x40] sm:$0xf]  ;;  %v368_v17 = vld [vmem:[%s5387_s13 + $0x44] sm:$0x1] }
  0x25   : > { %786 = vrot.lane.b32.xlu0 %v415_v49, %s5285_s14  ;;  %v472_v54 = vrot.slane %v470_v45, 5  ;;  %v453_v55 = vrot.slane %v451_v46, 4  ;;  %v484_v56 = vshll.u32 %v361_v42, 16  ;;  %v488_v57 = vshrl.u32 %v361_v42, 16  ;;  %v366_v22 = vld [vmem:[%s5387_s13 + $0x3c] sm:$0xf] }
  0x26   : > { %v468_v58 = vrot.slane %v467_v51, 4  ;;  %v456_v59 = vrot.slane %v454_v52, 5  ;;  %v494_v60 = vshll.u32 %v362_v47, 16  ;;  %v475_v61 = vshrl.u32 %v360_v48, 16  ;;  %v370_v28 = vld [vmem:[%s5387_s13 + $0x4c] sm:$0xf] }
  0x27   : > { %v486_v63 = vrot.slane %v484_v56, 5  ;;  %v490_v0 = vrot.slane %v488_v57, 4  ;;  %v478_v1 = vshll.u32 %v360_v48, 16  ;;  %v508_v2 = vshll.u32 %v364_v53, 16  ;;  %v371_v37 = vld [vmem:[%s5387_s13 + $0x50] sm:$0x1] }
  0x28   : > { %792 = vrot.lane.b32.xlu1 %v449_v44, %s5285_s14  ;;  %v473_v4 = vsel %vm5398_vm2, %v468_v58, %v472_v54  ;;  %v457_v5 = vor.u32 %v456_v59, %v453_v55  ;;  %v496_v6 = vrot.slane %v494_v60, 5  ;;  %v477_v7 = vrot.slane %v475_v61, 4  ;;  %v369_v42 = vld [vmem:[%s5387_s13 + $0x48] sm:$0xf]  ;;  %v373_v47 = vld [vmem:[%s5387_s13 + $0x58] sm:$0xf] }
  0x29   : > { %788 = vrot.lane.b32.xlu0 %v425_v50, %s5285_s14  ;;  %v491_v9 = vor.u32 %v490_v0, %v486_v63  ;;  %v480_v10 = vrot.slane %v478_v1, 5  ;;  %v510_v11 = vrot.slane %v508_v2, 5  ;;  %v512_v12 = vshrl.u32 %v364_v53, 16  ;;  %v374_v56 = vld [vmem:[%s5387_s13 + $0x5c] sm:$0x1] }
  0x2a   : > { %v458_v13 = vrot.slane %v457_v5, 4  ;;  %v518_v14 = vshll.u32 %v365_v62, 16  ;;  %v499_v15 = vshrl.u32 %v363_v3, 16  ;;  %v502_v16 = vshll.u32 %v363_v3, 16  ;;  %v372_v61 = vld [vmem:[%s5387_s13 + $0x54] sm:$0xf] }
  0x2b   : > { %v492_v18 = vrot.slane %v491_v9, 4  ;;  %v481_v19 = vor.u32 %v480_v10, %v477_v7  ;;  %v514_v20 = vrot.slane %v512_v12, 4  ;;  %v532_v21 = vshll.u32 %v367_v8, 16 }
  0x2c   : > { %796 = vrot.lane.b32.xlu1 %v473_v4, %s5285_s14  ;;  %v463_v23 = vsel %vm5398_vm2, %v458_v13, %v462_v40  ;;  %v520_v24 = vrot.slane %v518_v14, 5  ;;  %v501_v25 = vrot.slane %v499_v15, 4  ;;  %v504_v26 = vrot.slane %v502_v16, 5  ;;  %v377_v15 = vld [vmem:[%s5387_s13 + $0x68] sm:$0x1] }
  0x2d   : > { %794 = vrot.lane.b32.xlu0 %v463_v23, %s5285_s14  ;;  %v497_v29 = vsel %vm5398_vm2, %v492_v18, %v496_v6  ;;  %v482_v30 = vrot.slane %v481_v19, 4  ;;  %v515_v31 = vor.u32 %v514_v20, %v510_v11  ;;  %v534_v32 = vrot.slane %v532_v21, 5  ;;  %v376_v6 = vld [vmem:[%s5387_s13 + $0x64] sm:$0xf]  ;;  %v375_v16 = vld [vmem:[%s5387_s13 + $0x60] sm:$0xf] }
  0x2e   : > { %v505_v33 = vor.u32 %v504_v26, %v501_v25  ;;  %v536_v34 = vshrl.u32 %v367_v8, 16  ;;  %v542_v35 = vshll.u32 %v368_v17, 16  ;;  %v523_v36 = vshrl.u32 %v366_v22, 16  ;;  %v379_v25 = vld [vmem:[%s5387_s13 + $0x70] sm:$0xf] }
  0x2f   : > { %v487_v38 = vsel %vm5398_vm2, %v482_v30, %v486_v63  ;;  %v516_v39 = vrot.slane %v515_v31, 4  ;;  %v526_v40 = vshll.u32 %v366_v22, 16  ;;  %v556_v41 = vshll.u32 %v370_v28, 16 }
  0x30   : > { %800 = vrot.lane.b32.xlu1 %v497_v29, %s5285_s14  ;;  %v506_v43 = vrot.slane %v505_v33, 4  ;;  %v538_v44 = vrot.slane %v536_v34, 4  ;;  %v544_v45 = vrot.slane %v542_v35, 5  ;;  %v525_v46 = vrot.slane %v523_v36, 4  ;;  %v380_v35 = vld [vmem:[%s5387_s13 + $0x74] sm:$0x1] }
  0x31   : > { %798 = vrot.lane.b32.xlu0 %v487_v38, %s5285_s14  ;;  %v521_v48 = vsel %vm5398_vm2, %v516_v39, %v520_v24  ;;  %v528_v49 = vrot.slane %v526_v40, 5  ;;  %v558_v50 = vrot.slane %v556_v41, 5  ;;  %v560_v51 = vshrl.u32 %v370_v28, 16  ;;  %v378_v36 = vld [vmem:[%s5387_s13 + $0x6c] sm:$0xf] }
  0x32   : > { %v511_v52 = vsel %vm5398_vm2, %v506_v43, %v510_v11  ;;  %v539_v53 = vor.u32 %v538_v44, %v534_v32  ;;  %v566_v54 = vshll.u32 %v371_v37, 16  ;;  %v547_v55 = vshrl.u32 %v369_v42, 16 }
  0x33   : > { %v529_v57 = vor.u32 %v528_v49, %v525_v46  ;;  %v562_v58 = vrot.slane %v560_v51, 4  ;;  %v550_v59 = vshll.u32 %v369_v42, 16  ;;  %v580_v60 = vshll.u32 %v373_v47, 16 }
  0x34   : > { %804 = vrot.lane.b32.xlu1 %v521_v48, %s5285_s14  ;;  %v540_v62 = vrot.slane %v539_v53, 4  ;;  %v568_v63 = vrot.slane %v566_v54, 5  ;;  %v549_v0 = vrot.slane %v547_v55, 4  ;;  %v584_v1 = vshrl.u32 %v373_v47, 16  ;;  %v383_v54 = vld [vmem:[%s5387_s13 + $0x80] sm:$0x1] }
  0x35   : > { %802 = vrot.lane.b32.xlu0 %v511_v52, %s5285_s14  ;;  %v530_v2 = vrot.slane %v529_v57, 4  ;;  %v563_v3 = vor.u32 %v562_v58, %v558_v50  ;;  %v552_v4 = vrot.slane %v550_v59, 5  ;;  %v582_v5 = vrot.slane %v580_v60, 5  ;;  %v381_v55 = vld [vmem:[%s5387_s13 + $0x78] sm:$0xf] }
  0x36   : > { %v545_v7 = vsel %vm5398_vm2, %v540_v62, %v544_v45  ;;  %v586_v8 = vrot.slane %v584_v1, 4  ;;  %v590_v9 = vshll.u32 %v374_v56, 16  ;;  %v571_v10 = vshrl.u32 %v372_v61, 16  ;;  %v382_v45 = vld [vmem:[%s5387_s13 + $0x7c] sm:$0xf] }
  0x37   : > { %v535_v11 = vsel %vm5398_vm2, %v530_v2, %v534_v32  ;;  %v564_v12 = vrot.slane %v563_v3, 4  ;;  %v553_v13 = vor.u32 %v552_v4, %v549_v0  ;;  %v574_v14 = vshll.u32 %v372_v61, 16  ;;  %v385_v0 = vld [vmem:[%s5387_s13 + $0x88] sm:$0xf] }
  0x38   : > { %808 = vrot.lane.b32.xlu1 %v545_v7, %s5285_s14  ;;  %v587_v17 = vor.u32 %v586_v8, %v582_v5  ;;  %v592_v18 = vrot.slane %v590_v9, 5  ;;  %v573_v19 = vrot.slane %v571_v10, 4  ;;  %v604_v20 = vshll.u32 %v376_v6, 16  ;;  %v384_v10 = vld [vmem:[%s5387_s13 + $0x84] sm:$0xf] }
  0x39   : > { %806 = vrot.lane.b32.xlu0 %v535_v11, %s5285_s14  ;;  %v569_v21 = vsel %vm5398_vm2, %v564_v12, %v568_v63  ;;  %v554_v22 = vrot.slane %v553_v13, 4  ;;  %v576_v23 = vrot.slane %v574_v14, 5  ;;  %v608_v24 = vshrl.u32 %v376_v6, 16 }
  0x3a   : > { %v588_v26 = vrot.slane %v587_v17, 4  ;;  %v606_v28 = vrot.slane %v604_v20, 5  ;;  %v614_v29 = vshll.u32 %v377_v15, 16  ;;  %v595_v30 = vshrl.u32 %v375_v16, 16 }
  0x3b   : > { %v559_v31 = vsel %vm5398_vm2, %v554_v22, %v558_v50  ;;  %v577_v32 = vor.u32 %v576_v23, %v573_v19  ;;  %v610_v33 = vrot.slane %v608_v24, 4  ;;  %v598_v34 = vshll.u32 %v375_v16, 16  ;;  %v388_v19 = vld [vmem:[%s5387_s13 + $0x94] sm:$0xf]  ;;  %v389_v24 = vld [vmem:[%s5387_s13 + $0x98] sm:$0x1] }
  0x3c   : > { %812 = vrot.lane.b32.xlu1 %v569_v21, %s5285_s14  ;;  %v593_v37 = vsel %vm5398_vm2, %v588_v26, %v592_v18  ;;  %v616_v38 = vrot.slane %v614_v29, 5  ;;  %v597_v39 = vrot.slane %v595_v30, 4  ;;  %v628_v40 = vshll.u32 %v379_v25, 16  ;;  %v387_v30 = vld [vmem:[%s5387_s13 + $0x90] sm:$0xf] }
  0x3d   : > { %810 = vrot.lane.b32.xlu0 %v559_v31, %s5285_s14  ;;  %v578_v41 = vrot.slane %v577_v32, 4  ;;  %v611_v42 = vor.u32 %v610_v33, %v606_v28  ;;  %v600_v43 = vrot.slane %v598_v34, 5  ;;  %v632_v44 = vshrl.u32 %v379_v25, 16 }
  0x3e   : > { %v630_v46 = vrot.slane %v628_v40, 5  ;;  %v638_v47 = vshll.u32 %v380_v35, 16  ;;  %v619_v48 = vshrl.u32 %v378_v36, 16  ;;  %v622_v49 = vshll.u32 %v378_v36, 16 }
  0x3f   : > { %v583_v50 = vsel %vm5398_vm2, %v578_v41, %v582_v5  ;;  %v612_v51 = vrot.slane %v611_v42, 4  ;;  %v601_v52 = vor.u32 %v600_v43, %v597_v39  ;;  %v634_v53 = vrot.slane %v632_v44, 4  ;;  %v386_v5 = vld [vmem:[%s5387_s13 + $0x8c] sm:$0x1]  ;;  %v391_v39 = vld [vmem:[%s5387_s13 + $0xa0] sm:$0xf] }
  0x40   : > { %816 = vrot.lane.b32.xlu1 %v593_v37, %s5285_s14  ;;  %v640_v56 = vrot.slane %v638_v47, 5  ;;  %v621_v57 = vrot.slane %v619_v48, 4  ;;  %v624_v58 = vrot.slane %v622_v49, 5  ;;  %v652_v59 = vshll.u32 %v382_v45, 16  ;;  %v392_v48 = vld [vmem:[%s5387_s13 + $0xa4] sm:$0x1] }
  0x41   : > { %814 = vrot.lane.b32.xlu0 %v583_v50, %s5285_s14  ;;  %v617_v60 = vsel %vm5398_vm2, %v612_v51, %v616_v38  ;;  %v602_v61 = vrot.slane %v601_v52, 4  ;;  %v635_v62 = vor.u32 %v634_v53, %v630_v46  ;;  %v656_v63 = vshrl.u32 %v382_v45, 16  ;;  %v390_v49 = vld [vmem:[%s5387_s13 + $0x9c] sm:$0xf] }
  0x42   : > { %v625_v1 = vor.u32 %v624_v58, %v621_v57  ;;  %v654_v2 = vrot.slane %v652_v59, 5  ;;  %v662_v3 = vshll.u32 %v383_v54, 16  ;;  %v643_v4 = vshrl.u32 %v381_v55, 16  ;;  %v394_v58 = vld [vmem:[%s5387_s13 + $0xac] sm:$0xf] }
  0x43   : > { %v607_v6 = vsel %vm5398_vm2, %v602_v61, %v606_v28  ;;  %v636_v7 = vrot.slane %v635_v62, 4  ;;  %v658_v8 = vrot.slane %v656_v63, 4  ;;  %v646_v9 = vshll.u32 %v381_v55, 16 }
  0x44   : > { %820 = vrot.lane.b32.xlu1 %v617_v60, %s5285_s14  ;;  %v626_v11 = vrot.slane %v625_v1, 4  ;;  %v664_v12 = vrot.slane %v662_v3, 5  ;;  %v645_v13 = vrot.slane %v643_v4, 4  ;;  %v676_v14 = vshll.u32 %v385_v0, 16  ;;  %v395_v3 = vld [vmem:[%s5387_s13 + $0xb0] sm:$0x1] }
  0x45   : > { %818 = vrot.lane.b32.xlu0 %v607_v6, %s5285_s14  ;;  %v641_v15 = vsel %vm5398_vm2, %v636_v7, %v640_v56  ;;  %v659_v16 = vor.u32 %v658_v8, %v654_v2  ;;  %v648_v17 = vrot.slane %v646_v9, 5  ;;  %v680_v18 = vshrl.u32 %v385_v0, 16  ;;  %v393_v4 = vld [vmem:[%s5387_s13 + $0xa8] sm:$0xf] }
  0x46   : > { %v631_v20 = vsel %vm5398_vm2, %v626_v11, %v630_v46  ;;  %v678_v21 = vrot.slane %v676_v14, 5  ;;  %v686_v22 = vshll.u32 %v386_v5, 16  ;;  %v667_v23 = vshrl.u32 %v384_v10, 16 }
  0x47   : > { %v660_v25 = vrot.slane %v659_v16, 4  ;;  %v649_v26 = vor.u32 %v648_v17, %v645_v13  ;;  %v682_v28 = vrot.slane %v680_v18, 4  ;;  %v670_v29 = vshll.u32 %v384_v10, 16  ;;  %v397_v13 = vld [vmem:[%s5387_s13 + $0xb8] sm:$0xf] }
  0x48   : > { %824 = vrot.lane.b32.xlu1 %v641_v15, %s5285_s14  ;;  %v688_v31 = vrot.slane %v686_v22, 5  ;;  %v669_v32 = vrot.slane %v667_v23, 4  ;;  %v700_v33 = vshll.u32 %v388_v19, 16  ;;  %v704_v34 = vshrl.u32 %v388_v19, 16  ;;  %v398_v22 = vld [vmem:[%s5387_s13 + $0xbc] sm:$0x1] }
  0x49   : > { %822 = vrot.lane.b32.xlu0 %v631_v20, %s5285_s14  ;;  %v665_v35 = vsel %vm5398_vm2, %v660_v25, %v664_v12  ;;  %v650_v36 = vrot.slane %v649_v26, 4  ;;  %v683_v37 = vor.u32 %v682_v28, %v678_v21  ;;  %v672_v38 = vrot.slane %v670_v29, 5  ;;  %v396_v23 = vld [vmem:[%s5387_s13 + $0xb4] sm:$0xf] }
  0x4a   : > { %v702_v40 = vrot.slane %v700_v33, 5  ;;  %v706_v41 = vrot.slane %v704_v34, 4  ;;  %v710_v42 = vshll.u32 %v389_v24, 16  ;;  %v691_v43 = vshrl.u32 %v387_v30, 16 }
  0x4b   : > { %v655_v44 = vsel %vm5398_vm2, %v650_v36, %v654_v2  ;;  %v684_v45 = vrot.slane %v683_v37, 4  ;;  %v673_v46 = vor.u32 %v672_v38, %v669_v32  ;;  %v694_v47 = vshll.u32 %v387_v30, 16  ;;  %v916_v37 = vld [vmem:[%s5387_s13 + $0x4] sm:$0xf] }
  0x4c   : > { %828 = vrot.lane.b32.xlu1 %v665_v35, %s5285_s14  ;;  %v707_v50 = vor.u32 %v706_v41, %v702_v40  ;;  %v712_v51 = vrot.slane %v710_v42, 5  ;;  %v693_v52 = vrot.slane %v691_v43, 4  ;;  %v724_v53 = vshll.u32 %v391_v39, 16 }
  0x4d   : > { %826 = vrot.lane.b32.xlu0 %v655_v44, %s5285_s14  ;;  %v689_v54 = vsel %vm5398_vm2, %v684_v45, %v688_v31  ;;  %v674_v55 = vrot.slane %v673_v46, 4  ;;  %v696_v56 = vrot.slane %v694_v47, 5  ;;  %v728_v57 = vshrl.u32 %v391_v39, 16 }
  0x4e   : > { %v708_v59 = vrot.slane %v707_v50, 4  ;;  %v726_v60 = vrot.slane %v724_v53, 5  ;;  %v734_v61 = vshll.u32 %v392_v48, 16  ;;  %v715_v62 = vshrl.u32 %v390_v49, 16  ;;  %v917_v48 = vld [vmem:[%s5387_s13 + $0x8] sm:$0x1] }
  0x4f   : > { %v679_v63 = vsel %vm5398_vm2, %v674_v55, %v678_v21  ;;  %v697_v0 = vor.u32 %v696_v56, %v693_v52  ;;  %v730_v1 = vrot.slane %v728_v57, 4  ;;  %v718_v2 = vshll.u32 %v390_v49, 16  ;;  %v288_v56 = vld [vmem:[%s5387_s13 + $0xc] sm:$0xf] }
  0x50   : > { %832 = vrot.lane.b32.xlu1 %v689_v54, %s5285_s14  ;;  %v713_v5 = vsel %vm5398_vm2, %v708_v59, %v712_v51  ;;  %v736_v6 = vrot.slane %v734_v61, 5  ;;  %v717_v7 = vrot.slane %v715_v62, 4  ;;  %v748_v8 = vshll.u32 %v394_v58, 16  ;;  %v919_v51 = vld [vmem:[%s5387_s13 + $0x10] sm:$0xf] }
  0x51   : > { %830 = vrot.lane.b32.xlu0 %v679_v63, %s5285_s14  ;;  %v698_v9 = vrot.slane %v697_v0, 4  ;;  %v731_v10 = vor.u32 %v730_v1, %v726_v60  ;;  %v720_v11 = vrot.slane %v718_v2, 5  ;;  %v752_v12 = vshrl.u32 %v394_v58, 16  ;;  %v915_v54 = vld [vmem:[%s5387_s13] sm:$0xe] }
  0x52   : > { %v750_v14 = vrot.slane %v748_v8, 5  ;;  %v758_v15 = vshll.u32 %v395_v3, 16  ;;  %v739_v16 = vshrl.u32 %v393_v4, 16  ;;  %v742_v17 = vshll.u32 %v393_v4, 16  ;;  %321 = vst.msk [vmem:[#allocation2 + $0x8] sm:$0xf] %vm318_vm3, %v288_v56 }
  0x53   : > { %v703_v18 = vsel %vm5398_vm2, %v698_v9, %v702_v40  ;;  %v732_v19 = vrot.slane %v731_v10, 4  ;;  %v721_v20 = vor.u32 %v720_v11, %v717_v7  ;;  %v754_v21 = vrot.slane %v752_v12, 4  ;;  %v286_v61 = vld [vmem:[%s5387_s13] sm:$0xf]  ;;  %v920_v0 = vld [vmem:[%s5387_s13 + $0x14] sm:$0x1] }
  0x54   : > { %836 = vrot.lane.b32.xlu1 %v713_v5, %s5285_s14  ;;  %v760_v24 = vrot.slane %v758_v15, 5  ;;  %v741_v25 = vrot.slane %v739_v16, 4  ;;  %v744_v26 = vrot.slane %v742_v17, 5  ;;  %v772_v28 = vshll.u32 %v397_v13, 16  ;;  %v922_v1 = vld [vmem:[%s5387_s13 + $0x1c] sm:$0xf] }
  0x55   : > { %834 = vrot.lane.b32.xlu0 %v703_v18, %s5285_s14  ;;  %v737_v29 = vsel %vm5398_vm2, %v732_v19, %v736_v6  ;;  %v722_v30 = vrot.slane %v721_v20, 4  ;;  %v755_v31 = vor.u32 %v754_v21, %v750_v14  ;;  %v776_v32 = vshrl.u32 %v397_v13, 16  ;;  %319 = vst.msk [vmem:[#allocation2] sm:$0xf] %vm318_vm3, %v286_v61  ;;  %v918_v3 = vld [vmem:[%s5387_s13 + $0xc] sm:$0xe] }
  0x56   : > { %v745_v33 = vor.u32 %v744_v26, %v741_v25  ;;  %v774_v34 = vrot.slane %v772_v28, 5  ;;  %v782_v35 = vshll.u32 %v398_v22, 16  ;;  %v763_v36 = vshrl.u32 %v396_v23, 16  ;;  %v289_v4 = vld [vmem:[%s5387_s13 + $0x10] sm:$0xf] }
  0x57   : > { %v727_v38 = vsel %vm5398_vm2, %v722_v30, %v726_v60  ;;  %v756_v39 = vrot.slane %v755_v31, 4  ;;  %v778_v40 = vrot.slane %v776_v32, 4  ;;  %v766_v41 = vshll.u32 %v396_v23, 16  ;;  %v287_v5 = vld [vmem:[%s5387_s13 + $0x4] sm:$0xf] }
  0x58   : > { %840 = vrot.lane.b32.xlu1 %v737_v29, %s5285_s14  ;;  %v746_v42 = vrot.slane %v745_v33, 4  ;;  %v784_v43 = vrot.slane %v782_v35, 5  ;;  %v765_v44 = vrot.slane %v763_v36, 4  ;;  %v1016_v49 = vrot.slane %v916_v37, 5  ;;  %322 = vst.msk [vmem:[#allocation2 + $0xc] sm:$0xf] %vm318_vm3, %v289_v4 }
  0x59   : > { %838 = vrot.lane.b32.xlu0 %v727_v38, %s5285_s14  ;;  %v761_v45 = vsel %vm5398_vm2, %v756_v39, %v760_v24  ;;  %v779_v46 = vor.u32 %v778_v40, %v774_v34  ;;  %v768_v47 = vrot.slane %v766_v41, 5  ;;  %v1019_v55 = vrot.slane %v917_v48, 5  ;;  %320 = vst.msk [vmem:[#allocation2 + $0x4] sm:$0xf] %vm318_vm3, %v287_v5  ;;  %v923_v12 = vld [vmem:[%s5387_s13 + $0x20] sm:$0x1] }
  0x5a   : > { %v751_v50 = vsel %vm5398_vm2, %v746_v42, %v750_v14  ;;  %v1018_v59 = vrot.slane %v1016_v49, 4  ;;  %v1023_v60 = vrot.slane %v919_v51, 5  ;;  %v4641_v63 = vrot.slane %v915_v54, 9  ;;  %v925_v13 = vld [vmem:[%s5387_s13 + $0x28] sm:$0xf] }
  0x5b   : > { %v780_v52 = vrot.slane %v779_v46, 4  ;;  %v769_v53 = vor.u32 %v768_v47, %v765_v44  ;;  %v1026_v8 = vrot.slane %v920_v0, 5  ;;  %v1030_v9 = vrot.slane %v922_v1, 5  ;;  %v921_v14 = vld [vmem:[%s5387_s13 + $0x18] sm:$0xe] }
  0x5c   : > { %844 = vrot.lane.b32.xlu1 %v761_v45, %s5285_s14  ;;  %v1020_v6 = vsel %vm5542_vm6, %v1018_v59, %v1019_v55  ;;  %v1025_v7 = vrot.slane %v1023_v60, 4  ;;  %v1017_v10 = vsel %vm5542_vm6, %v4641_v63, %v1016_v49  ;;  %v4642_v11 = vrot.slane %v918_v3, 9  ;;  %v291_v15 = vld [vmem:[%s5387_s13 + $0x1c] sm:$0xf]  ;;  %v290_v16 = vld [vmem:[%s5387_s13 + $0x18] sm:$0xf] }
  0x5d   : > { %842 = vrot.lane.b32.xlu0 %v751_v50, %s5285_s14  ;;  %v785_v57 = vsel %vm5398_vm2, %v780_v52, %v784_v43  ;;  %v770_v58 = vrot.slane %v769_v53, 4  ;;  %324 = vst.msk [vmem:[#allocation2 + $0x14] sm:$0xf] %vm318_vm3, %v291_v15  ;;  %v1032_v18 = vrot.slane %v1030_v9, 4  ;;  %v1033_v19 = vrot.slane %v923_v12, 5 }
  0x5e   : > { %v1027_v17 = vsel %vm5542_vm6, %v1025_v7, %v1026_v8  ;;  %v1037_v20 = vrot.slane %v925_v13, 5  ;;  %323 = vst.msk [vmem:[#allocation2 + $0x10] sm:$0xf] %vm318_vm3, %v290_v16  ;;  %v1024_v21 = vsel %vm5542_vm6, %v4642_v11, %v1023_v60  ;;  %v4643_v22 = vrot.slane %v921_v14, 9  ;;  %v926_v23 = vld [vmem:[%s5387_s13 + $0x2c] sm:$0x1] }
  0x5f   : > { %v775_v2 = vsel %vm5398_vm2, %v770_v58, %v774_v34  ;;  %v928_v24 = vld [vmem:[%s5387_s13 + $0x34] sm:$0xf]  ;;  %v924_v25 = vld [vmem:[%s5387_s13 + $0x24] sm:$0xe]  ;;  %v293_v26 = vld [vmem:[%s5387_s13 + $0x28] sm:$0xf]  ;;  %v1034_v29 = vsel %vm5542_vm6, %v1032_v18, %v1033_v19 }
  0x60   : > { %848 = vrot.lane.b32.xlu1 %v785_v57, %s5285_s14  ;;  %326 = vst.msk [vmem:[#allocation2 + $0x1c] sm:$0xf] %vm318_vm3, %v293_v26  ;;  %v292_v28 = vld [vmem:[%s5387_s13 + $0x24] sm:$0xf]  ;;  %v1039_v30 = vrot.slane %v1037_v20, 4  ;;  %v1040_v31 = vrot.slane %v926_v23, 5  ;;  %v1031_v34 = vsel %vm5542_vm6, %v4643_v22, %v1030_v9 }
  0x61   : > { %846 = vrot.lane.b32.xlu0 %v775_v2, %s5285_s14  ;;  %v929_v32 = vld [vmem:[%s5387_s13 + $0x38] sm:$0x1]  ;;  %v1044_v33 = vrot.slane %v928_v24, 5  ;;  %325 = vst.msk [vmem:[#allocation2 + $0x18] sm:$0xf] %vm318_vm3, %v292_v28  ;;  %v4644_v35 = vrot.slane %v924_v25, 9 }
  0x62   : > { %v931_v36 = vld [vmem:[%s5387_s13 + $0x40] sm:$0xf]  ;;  %v295_v37 = vld [vmem:[%s5387_s13 + $0x34] sm:$0xf]  ;;  %v927_v38 = vld [vmem:[%s5387_s13 + $0x30] sm:$0xe]  ;;  %v1041_v41 = vsel %vm5542_vm6, %v1039_v30, %v1040_v31 }
  0x63   : > { %328 = vst.msk [vmem:[#allocation2 + $0x24] sm:$0xf] %vm318_vm3, %v295_v37  ;;  %v294_v39 = vld [vmem:[%s5387_s13 + $0x30] sm:$0xf]  ;;  %v932_v40 = vld [vmem:[%s5387_s13 + $0x44] sm:$0x1]  ;;  %v1038_v46 = vsel %vm5542_vm6, %v4644_v35, %v1037_v20 }
  0x64   : > { %1128 = vrot.lane.b32.xlu1 %v1020_v6, %s5286_s15  ;;  %327 = vst.msk [vmem:[#allocation2 + $0x20] sm:$0xf] %vm318_vm3, %v294_v39  ;;  %v1046_v42 = vrot.slane %v1044_v33, 4  ;;  %v1047_v43 = vrot.slane %v929_v32, 5  ;;  %v1051_v44 = vrot.slane %v931_v36, 5  ;;  %v4645_v47 = vrot.slane %v927_v38, 9 }
  0x65   : > { %1126 = vrot.lane.b32.xlu0 %v1017_v10, %s5286_s15  ;;  %v297_v45 = vld [vmem:[%s5387_s13 + $0x40] sm:$0xf]  ;;  %v934_v48 = vld [vmem:[%s5387_s13 + $0x4c] sm:$0xf]  ;;  %v296_v49 = vld [vmem:[%s5387_s13 + $0x3c] sm:$0xf] }
  0x66   : > { %330 = vst.msk [vmem:[#allocation2 + $0x2c] sm:$0xf] %vm318_vm3, %v297_v45  ;;  %v930_v50 = vld [vmem:[%s5387_s13 + $0x3c] sm:$0xe]  ;;  %329 = vst.msk [vmem:[#allocation2 + $0x28] sm:$0xf] %vm318_vm3, %v296_v49  ;;  %v1048_v52 = vsel %vm5542_vm6, %v1046_v42, %v1047_v43  ;;  %v1045_v57 = vsel %vm5542_vm6, %v4645_v47, %v1044_v33 }
  0x67   : > { %v935_v51 = vld [vmem:[%s5387_s13 + $0x50] sm:$0x1]  ;;  %v1053_v53 = vrot.slane %v1051_v44, 4  ;;  %v1054_v54 = vrot.slane %v932_v40, 5  ;;  %v1058_v55 = vrot.slane %v934_v48, 5  ;;  %v4646_v58 = vrot.slane %v930_v50, 9 }
  0x68   : > { %1132 = vrot.lane.b32.xlu1 %v1027_v17, %s5286_s15  ;;  %v299_v56 = vld [vmem:[%s5387_s13 + $0x4c] sm:$0xf]  ;;  %v937_v59 = vld [vmem:[%s5387_s13 + $0x58] sm:$0xf]  ;;  %v298_v60 = vld [vmem:[%s5387_s13 + $0x48] sm:$0xf] }
  0x69   : > { %1130 = vrot.lane.b32.xlu0 %v1024_v21, %s5286_s15  ;;  %332 = vst.msk [vmem:[#allocation2 + $0x34] sm:$0xf] %vm318_vm3, %v299_v56  ;;  %v933_v61 = vld [vmem:[%s5387_s13 + $0x48] sm:$0xe]  ;;  %331 = vst.msk [vmem:[#allocation2 + $0x30] sm:$0xf] %vm318_vm3, %v298_v60  ;;  %v1055_v0 = vsel %vm5542_vm6, %v1053_v53, %v1054_v54  ;;  %v1052_v5 = vsel %vm5542_vm6, %v4646_v58, %v1051_v44 }
  0x6a   : > { %v938_v63 = vld [vmem:[%s5387_s13 + $0x5c] sm:$0x1]  ;;  %v1060_v1 = vrot.slane %v1058_v55, 4  ;;  %v1061_v2 = vrot.slane %v935_v51, 5  ;;  %v1065_v3 = vrot.slane %v937_v59, 5  ;;  %v4647_v6 = vrot.slane %v933_v61, 9 }
  0x6b   : > { %v301_v4 = vld [vmem:[%s5387_s13 + $0x58] sm:$0xf]  ;;  %v940_v7 = vld [vmem:[%s5387_s13 + $0x64] sm:$0xf]  ;;  %v300_v8 = vld [vmem:[%s5387_s13 + $0x54] sm:$0xf] }
  0x6c   : > { %1136 = vrot.lane.b32.xlu1 %v1034_v29, %s5286_s15  ;;  %334 = vst.msk [vmem:[#allocation2 + $0x3c] sm:$0xf] %vm318_vm3, %v301_v4  ;;  %v936_v9 = vld [vmem:[%s5387_s13 + $0x54] sm:$0xe]  ;;  %333 = vst.msk [vmem:[#allocation2 + $0x38] sm:$0xf] %vm318_vm3, %v300_v8  ;;  %v1062_v11 = vsel %vm5542_vm6, %v1060_v1, %v1061_v2  ;;  %v1059_v16 = vsel %vm5542_vm6, %v4647_v6, %v1058_v55 }
  0x6d   : > { %1134 = vrot.lane.b32.xlu0 %v1031_v34, %s5286_s15  ;;  %v941_v10 = vld [vmem:[%s5387_s13 + $0x68] sm:$0x1]  ;;  %v1067_v12 = vrot.slane %v1065_v3, 4  ;;  %v1068_v13 = vrot.slane %v938_v63, 5  ;;  %v1072_v14 = vrot.slane %v940_v7, 5  ;;  %v4648_v17 = vrot.slane %v936_v9, 9 }
  0x6e   : > { %v303_v15 = vld [vmem:[%s5387_s13 + $0x64] sm:$0xf]  ;;  %v943_v18 = vld [vmem:[%s5387_s13 + $0x70] sm:$0xf]  ;;  %v302_v19 = vld [vmem:[%s5387_s13 + $0x60] sm:$0xf] }
  0x6f   : > { %336 = vst.msk [vmem:[#allocation2 + $0x44] sm:$0xf] %vm318_vm3, %v303_v15  ;;  %v939_v20 = vld [vmem:[%s5387_s13 + $0x60] sm:$0xe]  ;;  %335 = vst.msk [vmem:[#allocation2 + $0x40] sm:$0xf] %vm318_vm3, %v302_v19  ;;  %v1069_v22 = vsel %vm5542_vm6, %v1067_v12, %v1068_v13  ;;  %v1066_v28 = vsel %vm5542_vm6, %v4648_v17, %v1065_v3 }
  0x70   : > { %1140 = vrot.lane.b32.xlu1 %v1041_v41, %s5286_s15  ;;  %v305_v21 = vld [vmem:[%s5387_s13 + $0x70] sm:$0xf]  ;;  %v1074_v23 = vrot.slane %v1072_v14, 4  ;;  %v1075_v24 = vrot.slane %v941_v10, 5  ;;  %v1079_v25 = vrot.slane %v943_v18, 5  ;;  %v4649_v29 = vrot.slane %v939_v20, 9 }
  0x71   : > { %1138 = vrot.lane.b32.xlu0 %v1038_v46, %s5286_s15  ;;  %338 = vst.msk [vmem:[#allocation2 + $0x4c] sm:$0xf] %vm318_vm3, %v305_v21  ;;  %v304_v26 = vld [vmem:[%s5387_s13 + $0x6c] sm:$0xf]  ;;  %v944_v30 = vld [vmem:[%s5387_s13 + $0x74] sm:$0x1] }
  0x72   : > { %v946_v31 = vld [vmem:[%s5387_s13 + $0x7c] sm:$0xf]  ;;  %337 = vst.msk [vmem:[#allocation2 + $0x48] sm:$0xf] %vm318_vm3, %v304_v26  ;;  %v942_v32 = vld [vmem:[%s5387_s13 + $0x6c] sm:$0xe]  ;;  %v1076_v37 = vsel %vm5542_vm6, %v1074_v23, %v1075_v24  ;;  %v1073_v42 = vsel %vm5542_vm6, %v4649_v29, %v1072_v14 }
  0x73   : > { %v307_v33 = vld [vmem:[%s5387_s13 + $0x7c] sm:$0xf]  ;;  %v306_v34 = vld [vmem:[%s5387_s13 + $0x78] sm:$0xf]  ;;  %v309_v35 = vld [vmem:[%s5387_s13 + $0x88] sm:$0xf] }
  0x74   : > { %1144 = vrot.lane.b32.xlu1 %v1048_v52, %s5286_s15  ;;  %340 = vst.msk [vmem:[#allocation2 + $0x54] sm:$0xf] %vm318_vm3, %v307_v33  ;;  %339 = vst.msk [vmem:[#allocation2 + $0x50] sm:$0xf] %vm318_vm3, %v306_v34  ;;  %v308_v36 = vld [vmem:[%s5387_s13 + $0x84] sm:$0xf] }
  0x75   : > { %1142 = vrot.lane.b32.xlu0 %v1045_v57, %s5286_s15  ;;  %v1081_v38 = vrot.slane %v1079_v25, 4  ;;  %v1082_v39 = vrot.slane %v944_v30, 5  ;;  %v947_v40 = vld [vmem:[%s5387_s13 + $0x80] sm:$0x1]  ;;  %v1086_v41 = vrot.slane %v946_v31, 5  ;;  %v4650_v43 = vrot.slane %v942_v32, 9 }
  0x76   : > { %342 = vst.msk [vmem:[#allocation2 + $0x5c] sm:$0xf] %vm318_vm3, %v309_v35  ;;  %341 = vst.msk [vmem:[#allocation2 + $0x58] sm:$0xf] %vm318_vm3, %v308_v36  ;;  %v949_v44 = vld [vmem:[%s5387_s13 + $0x88] sm:$0xf] }
  0x77   : > { %v311_v45 = vld [vmem:[%s5387_s13 + $0x94] sm:$0xf]  ;;  %v945_v46 = vld [vmem:[%s5387_s13 + $0x78] sm:$0xe]  ;;  %v310_v47 = vld [vmem:[%s5387_s13 + $0x90] sm:$0xf]  ;;  %v1083_v49 = vsel %vm5542_vm6, %v1081_v38, %v1082_v39  ;;  %v1080_v54 = vsel %vm5542_vm6, %v4650_v43, %v1079_v25 }
  0x78   : > { %1148 = vrot.lane.b32.xlu1 %v1055_v0, %s5286_s15  ;;  %344 = vst.msk [vmem:[#allocation2 + $0x64] sm:$0xf] %vm318_vm3, %v311_v45  ;;  %v950_v48 = vld [vmem:[%s5387_s13 + $0x8c] sm:$0x1]  ;;  %343 = vst.msk [vmem:[#allocation2 + $0x60] sm:$0xf] %vm318_vm3, %v310_v47 }
  0x79   : > { %1146 = vrot.lane.b32.xlu0 %v1052_v5, %s5286_s15  ;;  %v1088_v50 = vrot.slane %v1086_v41, 4  ;;  %v1089_v51 = vrot.slane %v947_v40, 5  ;;  %v1093_v52 = vrot.slane %v949_v44, 5  ;;  %v952_v53 = vld [vmem:[%s5387_s13 + $0x94] sm:$0xf]  ;;  %v4651_v55 = vrot.slane %v945_v46, 9 }
  0x7a   : > { %v313_v56 = vld [vmem:[%s5387_s13 + $0xa0] sm:$0xf]  ;;  %v312_v57 = vld [vmem:[%s5387_s13 + $0x9c] sm:$0xf]  ;;  %v948_v58 = vld [vmem:[%s5387_s13 + $0x84] sm:$0xe] }
  0x7b   : > { %346 = vst.msk [vmem:[#allocation2 + $0x6c] sm:$0xf] %vm318_vm3, %v313_v56  ;;  %345 = vst.msk [vmem:[#allocation2 + $0x68] sm:$0xf] %vm318_vm3, %v312_v57  ;;  %v953_v59 = vld [vmem:[%s5387_s13 + $0x98] sm:$0x1]  ;;  %v1090_v60 = vsel %vm5542_vm6, %v1088_v50, %v1089_v51  ;;  %v1087_v2 = vsel %vm5542_vm6, %v4651_v55, %v1086_v41 }
  0x7c   : > { %1152 = vrot.lane.b32.xlu1 %v1062_v11, %s5286_s15  ;;  %v1095_v61 = vrot.slane %v1093_v52, 4  ;;  %v1096_v63 = vrot.slane %v950_v48, 5  ;;  %v1100_v0 = vrot.slane %v952_v53, 5  ;;  %v315_v1 = vld [vmem:[%s5387_s13 + $0xac] sm:$0xf]  ;;  %v4652_v3 = vrot.slane %v948_v58, 9 }
  0x7d   : > { %1150 = vrot.lane.b32.xlu0 %v1059_v16, %s5286_s15  ;;  %v955_v4 = vld [vmem:[%s5387_s13 + $0xa0] sm:$0xf]  ;;  %348 = vst.msk [vmem:[#allocation2 + $0x74] sm:$0xf] %vm318_vm3, %v315_v1  ;;  %v314_v5 = vld [vmem:[%s5387_s13 + $0xa8] sm:$0xf] }
  0x7e   : > { %v951_v6 = vld [vmem:[%s5387_s13 + $0x90] sm:$0xe]  ;;  %347 = vst.msk [vmem:[#allocation2 + $0x70] sm:$0xf] %vm318_vm3, %v314_v5  ;;  %v317_v7 = vld [vmem:[%s5387_s13 + $0xb8] sm:$0xf]  ;;  %v1097_v9 = vsel %vm5542_vm6, %v1095_v61, %v1096_v63  ;;  %v1094_v13 = vsel %vm5542_vm6, %v4652_v3, %v1093_v52 }
  0x7f   : > { %v316_v8 = vld [vmem:[%s5387_s13 + $0xb4] sm:$0xf]  ;;  %v1102_v10 = vrot.slane %v1100_v0, 4  ;;  %v1103_v11 = vrot.slane %v953_v59, 5  ;;  %v1107_v12 = vrot.slane %v955_v4, 5  ;;  %v4653_v14 = vrot.slane %v951_v6, 9 }
  0x80   : > { %1156 = vrot.lane.b32.xlu1 %v1069_v22, %s5286_s15  ;;  %350 = vst.msk [vmem:[#allocation2 + $0x7c] sm:$0xf] %vm318_vm3, %v317_v7  ;;  %349 = vst.msk [vmem:[#allocation2 + $0x78] sm:$0xf] %vm318_vm3, %v316_v8  ;;  %v956_v15 = vld [vmem:[%s5387_s13 + $0xa4] sm:$0x1] }
  0x81   : > { %1154 = vrot.lane.b32.xlu0 %v1066_v28, %s5286_s15  ;;  %v958_v16 = vld [vmem:[%s5387_s13 + $0xac] sm:$0xf]  ;;  %v954_v17 = vld [vmem:[%s5387_s13 + $0x9c] sm:$0xe]  ;;  %v1104_v18 = vsel %vm5542_vm6, %v1102_v10, %v1103_v11  ;;  %v1109_v19 = vrot.slane %v1107_v12, 4  ;;  %v1110_v20 = vrot.slane %v956_v15, 5  ;;  %v1101_v22 = vsel %vm5542_vm6, %v4653_v14, %v1100_v0 }
  0x82   : > { %v1114_v21 = vrot.slane %v958_v16, 5  ;;  %v4654_v23 = vrot.slane %v954_v17, 9  ;;  %v959_v24 = vld [vmem:[%s5387_s13 + $0xb0] sm:$0x1]  ;;  %v961_v25 = vld [vmem:[%s5387_s13 + $0xb8] sm:$0xf] }
  0x83   : > { %v957_v26 = vld [vmem:[%s5387_s13 + $0xa8] sm:$0xe]  ;;  %v960_v28 = vld [vmem:[%s5387_s13 + $0xb4] sm:$0xe]  ;;  %v1111_v29 = vsel %vm5542_vm6, %v1109_v19, %v1110_v20  ;;  %v1117_v31 = vrot.slane %v959_v24, 5  ;;  %v1121_v32 = vrot.slane %v961_v25, 5 }
  0x84   : > { %1160 = vrot.lane.b32.xlu1 %v1076_v37, %s5286_s15  ;;  %v1116_v30 = vrot.slane %v1114_v21, 4  ;;  %v4690_v33 = vld [vmem:[%s5387_s13 + $0x10] sm:$0xf]  ;;  %v1108_v35 = vsel %vm5542_vm6, %v4654_v23, %v1107_v12  ;;  %v4655_v36 = vrot.slane %v957_v26, 9  ;;  %v962_v37 = vld [vmem:[%s5387_s13 + $0xbc] sm:$0x1] }
  0x85   : > { %1158 = vrot.lane.b32.xlu0 %v1073_v42, %s5286_s15  ;;  %v4689_v39 = vld [vmem:[%s5387_s13 + $0xc] sm:$0xf]  ;;  %v4656_v40 = vrot.slane %v960_v28, 9  ;;  %v1507_v41 = vshll.u32 %v4690_v33, 16  ;;  %v1123_v43 = vrot.slane %v1121_v32, 4  ;;  %v1124_v44 = vrot.slane %v962_v37, 5 }
  0x86   : > { %v1118_v42 = vsel %vm5542_vm6, %v1116_v30, %v1117_v31  ;;  %v1511_v45 = vshrl.u32 %v4690_v33, 16  ;;  %v1115_v47 = vsel %vm5542_vm6, %v4655_v36, %v1114_v21  ;;  %v1498_v48 = vshrl.u32 %v4689_v39, 16  ;;  %v4693_v50 = vld [vmem:[%s5387_s13 + $0x1c] sm:$0xf]  ;;  %v4692_v52 = vld [vmem:[%s5387_s13 + $0x18] sm:$0xf] }
  0x87   : > { %v1122_v53 = vsel %vm5542_vm6, %v4656_v40, %v1121_v32  ;;  %v1125_v55 = vsel %vm5542_vm6, %v1123_v43, %v1124_v44  ;;  %v1531_v57 = vshll.u32 %v4693_v50, 16  ;;  %v1535_v58 = vshrl.u32 %v4693_v50, 16  ;;  %v4658_v3 = vld [vmem:[%s5387_s13 + $0x10] sm:$0xf]  ;;  %v4694_v11 = vld [vmem:[%s5387_s13 + $0x20] sm:$0x1] }
  0x88   : > { %1164 = vrot.lane.b32.xlu1 %v1083_v49, %s5286_s15  ;;  %v1501_v49 = vshll.u32 %v4689_v39, 16  ;;  %v1513_v56 = vrot.slane %v1511_v45, 4  ;;  %v1500_v61 = vrot.slane %v1498_v48, 4  ;;  %v1522_v0 = vshrl.u32 %v4692_v52, 16  ;;  %v4660_v15 = vld [vmem:[%s5387_s13 + $0x1c] sm:$0xf] }
  0x89   : > { %1162 = vrot.lane.b32.xlu0 %v1080_v54, %s5286_s15  ;;  %v5754_v54 = vrot.slane %v1507_v41, 5  ;;  %v1525_v1 = vshll.u32 %v4692_v52, 16  ;;  %v5766_v6 = vrot.slane %v1531_v57, 5  ;;  %v1537_v7 = vrot.slane %v1535_v58, 4  ;;  %v4659_v21 = vld [vmem:[%s5387_s13 + $0x18] sm:$0xf] }
  0x8a   : > { %v1503_v63 = vrot.slane %v1501_v49, 5  ;;  %v1524_v12 = vrot.slane %v1522_v0, 4  ;;  %v1541_v19 = vshll.u32 %v4694_v11, 16  ;;  %v4738_v24 = vld [vmem:[%s5387_s13 + $0x10] sm:$0xf]  ;;  %s5292_s14 = smov 32  }
  0x8b   : > { %v1514_v4 = vor.u32 %v1513_v56, %v5754_v54  ;;  %v2108_v30 = vrot.slane %v4738_v24, 5  ;;  %v4741_v31 = vld [vmem:[%s5387_s13 + $0x1c] sm:$0xf]  ;;  %v4737_v37 = vld [vmem:[%s5387_s13 + $0xc] sm:$0xe]  ;;  %vm3887_vm3 = vcmask 57344  }
  0x8c   : > { %1168 = vrot.lane.b32.xlu1 %v1090_v60, %s5286_s15  ;;  %v4691_v60 = vld [vmem:[%s5387_s13 + $0x14] sm:$0x1]  ;;  %v1504_v10 = vor.u32 %v1503_v63, %v1500_v61  ;;  %v4740_v43 = vld [vmem:[%s5387_s13 + $0x18] sm:$0xe]  ;;  %v4836_v63 = vld [vmem:[%s5387_s13 + $0x24] sm:$0xf] }
  0x8d   : > { %1166 = vrot.lane.b32.xlu0 %v1087_v2, %s5286_s15  ;;  %v1517_v5 = vshll.u32 %v4691_v60, 16  ;;  %v1515_v16 = vrot.slane %v1514_v4, 4  ;;  %v2110_v40 = vrot.slane %v2108_v30, 4  ;;  %v4833_v49 = vld [vmem:[%s5387_s13 + $0x18] sm:$0xf]  ;;  %v4786_v52 = vrot.slane %v4740_v43, 9 }
  0x8e   : > { %v2590_v58 = vshrl.u32 %v4833_v49, 16  ;;  %v4837_v60 = vld [vmem:[%s5387_s13 + $0x28] sm:$0xf]  ;;  %v2617_v11 = vshll.u32 %v4836_v63, 16 }
  0x8f   : > { %v1519_v17 = vrot.slane %v1517_v5, 5  ;;  %v2623_v4 = vshll.u32 %v4837_v60, 16  ;;  %v2627_v5 = vshrl.u32 %v4837_v60, 16  ;;  %v4696_v60 = vld [vmem:[%s5387_s13 + $0x28] sm:$0xf] }
  0x90   : > { %1172 = vrot.lane.b32.xlu1 %v1097_v9, %s5286_s15  ;;  %v4657_v9 = vld [vmem:[%s5387_s13 + $0xc] sm:$0xf] }
  0x91   : > { %1170 = vrot.lane.b32.xlu0 %v1094_v13, %s5286_s15  ;;  %v1527_v13 = vrot.slane %v1525_v1, 5  ;;  %v1520_v26 = vsel %vm5398_vm2, %v1515_v16, %v1519_v17  ;;  %v5830_v16 = vrot.slane %v2623_v4, 5  ;;  %v2629_v17 = vrot.slane %v2627_v5, 4 }
  0x92   : > { %v1555_v5 = vshll.u32 %v4696_v60, 16 }
  0x93   : > { %v1528_v23 = vor.u32 %v1527_v13, %v1524_v12  ;;  %v4802_v13 = vld [vmem:[%s5387_s13 + $0x1c] sm:$0xf] }
  0x94   : > { %1176 = vrot.lane.b32.xlu1 %v1104_v18, %s5286_s15  ;;  %v1538_v18 = vor.u32 %v1537_v7, %v5766_v6  ;;  %v4835_v7 = vld [vmem:[%s5387_s13 + $0x20] sm:$0x1] }
  0x95   : > { %1174 = vrot.lane.b32.xlu0 %v1101_v22, %s5286_s15  ;;  %v1505_v22 = vrot.slane %v1504_v10, 4  ;;  %v2614_v10 = vshrl.u32 %v4836_v63, 16  ;;  %v4695_v63 = vld [vmem:[%s5387_s13 + $0x24] sm:$0xf] }
  0x96   : > { %v791_v34 = vpop.permute.xlu1 %790  ;;  %v1539_v28 = vrot.slane %v1538_v18, 4 }
  0x97   : > { %885 = vst.msk [vmem:[#allocation2 + $0x8] sm:$0xf] %vm882_vm7, %v791_v34  ;;  %v787_v38 = vpop.permute.xlu0 %786  ;;  %v1510_v33 = vsel %vm5398_vm2, %v1505_v22, %v5754_v54  ;;  %v1529_v34 = vrot.slane %v1528_v23, 4  ;;  %v2616_v22 = vrot.slane %v2614_v10, 4  ;;  %v2619_v23 = vrot.slane %v2617_v11, 5 }
  0x98   : > { %883 = vst.msk [vmem:[#allocation2] sm:$0xf] %vm882_vm7, %v787_v38  ;;  %1180 = vrot.lane.b32.xlu1 %v1111_v29, %s5286_s15  ;;  %v1543_v29 = vrot.slane %v1541_v19, 5  ;;  %v2115_v38 = vrot.slane %v4741_v31, 5  ;;  %v4801_v19 = vld [vmem:[%s5387_s13 + $0x18] sm:$0xf] }
  0x99   : > { %1178 = vrot.lane.b32.xlu0 %v1108_v35, %s5286_s15  ;;  %v4739_v35 = vld [vmem:[%s5387_s13 + $0x14] sm:$0x1]  ;;  %v1534_v45 = vsel %vm5398_vm2, %v1529_v34, %v5766_v6  ;;  %v2620_v34 = vor.u32 %v2619_v23, %v2616_v22  ;;  %v1549_v10 = vshll.u32 %v4695_v63, 16 }
  0x9a   : > { %v793_v46 = vpop.permute.xlu1 %792  ;;  %v1544_v39 = vsel %vm5398_vm2, %v1539_v28, %v1543_v29  ;;  %v2111_v41 = vrot.slane %v4739_v35, 5  ;;  %v2117_v50 = vrot.slane %v2115_v38, 4  ;;  %v2116_v1 = vsel %vm5542_vm6, %v4786_v52, %v2115_v38  ;;  %v4882_v35 = vld [vmem:[%s5387_s13 + $0x1c] sm:$0xf]  ;;  %v4699_v11 = vld [vmem:[%s5387_s13 + $0x34] sm:$0xf] }
  0x9b   : > { %886 = vst.msk [vmem:[#allocation2 + $0xc] sm:$0xf] %vm882_vm7, %v793_v46  ;;  %v789_v51 = vpop.permute.xlu0 %788  ;;  %v4785_v46 = vrot.slane %v4737_v37, 9  ;;  %v2630_v29 = vor.u32 %v2629_v17, %v5830_v16  ;;  %v1551_v23 = vrot.slane %v1549_v10, 5  ;;  %v4839_v10 = vld [vmem:[%s5387_s13 + $0x30] sm:$0xf] }
  0x9c   : > { %884 = vst.msk [vmem:[#allocation2 + $0x4] sm:$0xf] %vm882_vm7, %v789_v51  ;;  %1184 = vrot.lane.b32.xlu1 %v1118_v42, %s5286_s15  ;;  %v4742_v42 = vld [vmem:[%s5387_s13 + $0x20] sm:$0x1] }
  0x9d   : > { %1182 = vrot.lane.b32.xlu0 %v1115_v47, %s5286_s15  ;;  %v4834_v47 = vld [vmem:[%s5387_s13 + $0x1c] sm:$0xf]  ;;  %v2118_v51 = vrot.slane %v4742_v42, 5  ;;  %v2109_v57 = vsel %vm5542_vm6, %v4785_v46, %v2108_v30  ;;  %v2631_v38 = vrot.slane %v2630_v29, 4 }
  0x9e   : > { %v797_v59 = vpop.permute.xlu1 %796  ;;  %v2599_v54 = vshll.u32 %v4834_v47, 16  ;;  %v5168_v46 = vld [vmem:[%s7210_s1 + $0x10] ss:$0 sps:$4 sm:$0x33]  }
  0x9f   : > { %888 = vst.msk [vmem:[#allocation2 + $0x14] sm:$0xf] %vm882_vm7, %v797_v59  ;;  %v795_v2 = vpop.permute.xlu0 %794  ;;  %v2593_v59 = vshll.u32 %v4833_v49, 16  ;;  %v2119_v0 = vsel %vm5542_vm6, %v2117_v50, %v2118_v51  ;;  %v5169_v49 = vld [vmem:[%s7210_s1 + $0x8] sm:$0xff]   ;;  %5112 = vmatprep.subr.msk.bf16.mxu0 %vm3620_vm8, %v5168_v46  ;;  %v3622_v51 = vsel %vm3620_vm8, %v5168_v46, 0 }
  0xa0   : > { %887 = vst.msk [vmem:[#allocation2 + $0x10] sm:$0xf] %vm882_vm7, %v795_v2  ;;  %1188 = vrot.lane.b32.xlu1 %v1125_v55, %s5286_s15  ;;  %v2603_v55 = vshrl.u32 %v4834_v47, 16  ;;  %v5821_v2 = vrot.slane %v2599_v54, 5  ;;  %5041 = vmatpush3.bf16.msra.mxu0 %v3622_v51  ;;  %v4663_v46 = vld [vmem:[%s5387_s13 + $0x30] sm:$0xf] }
  0xa1   : > { %1186 = vrot.lane.b32.xlu0 %v1122_v53, %s5286_s15  ;;  %v2112_v53 = vsel %vm5542_vm6, %v2110_v40, %v2111_v41  ;;  %v3200_v40 = vrot.slane %v4882_v35, 5  ;;  %v4885_v41 = vld [vmem:[%s5387_s13 + $0x28] sm:$0xf]  ;;  %5042 = vmatprep.subr.bf16.mxu0 %v5169_v49  ;;  %s5002_s15 = sshll.u32 %s5381_s9, 8  ;;  %s7043_s9 = sand.u32 1, %s5275_s22  }
  0xa2   : > { %v801_v8 = vpop.permute.xlu1 %800  ;;  %v3207_v50 = vrot.slane %v4885_v41, 5  ;;  %s6981_s29 = scalar_lea.vmem %s7214_s5, %s5002_s15 }
  0xa3   : > { %890 = vst.msk [vmem:[#allocation2 + $0x1c] sm:$0xf] %vm882_vm7, %v801_v8  ;;  %v799_v14 = vpop.permute.xlu0 %798  ;;  %v2592_v8 = vrot.slane %v2590_v58, 4 }
  0xa4   : > { %889 = vst.msk [vmem:[#allocation2 + $0x18] sm:$0xf] %vm882_vm7, %v799_v14  ;;  %1322 = vrot.lane.b32.xlu1 %v4658_v3, %s5287_s16  ;;  %v2605_v3 = vrot.slane %v2603_v55, 4  ;;  %v4886_v55 = vld [vmem:[%s5387_s13 + $0x2c] sm:$0x1]  ;;  %5043 = vmatpush3.bf16.msra.mxu0 %v5169_v49 }
  0xa5   : > { %1320 = vrot.lane.b32.xlu0 %v4657_v9, %s5287_s16  ;;  %v2595_v9 = vrot.slane %v2593_v59, 5  ;;  %v4744_v49 = vld [vmem:[%s5387_s13 + $0x28] sm:$0xf] }
  0xa6   : > { %v805_v20 = vpop.permute.xlu1 %804  ;;  %v2606_v14 = vor.u32 %v2605_v3, %v5821_v2 }
  0xa7   : > { %892 = vst.msk [vmem:[#allocation2 + $0x24] sm:$0xf] %vm882_vm7, %v805_v20  ;;  %v803_v25 = vpop.permute.xlu0 %802  ;;  %v2596_v20 = vor.u32 %v2595_v9, %v2592_v8  ;;  %v1546_v9 = vshrl.u32 %v4695_v63, 16 }
  0xa8   : > { %891 = vst.msk [vmem:[#allocation2 + $0x20] sm:$0xf] %vm882_vm7, %v803_v25  ;;  %1326 = vrot.lane.b32.xlu1 %v4660_v15, %s5287_s16  ;;  %v2609_v15 = vshll.u32 %v4835_v7, 16  ;;  %v4804_v25 = vld [vmem:[%s5387_s13 + $0x28] sm:$0xf] }
  0xa9   : > { %1324 = vrot.lane.b32.xlu0 %v4659_v21, %s5287_s16  ;;  %v4838_v21 = vld [vmem:[%s5387_s13 + $0x2c] sm:$0x1]  ;;  %v1548_v22 = vrot.slane %v1546_v9, 4 }
  0xaa   : > { %v809_v32 = vpop.permute.xlu1 %808  ;;  %v2611_v28 = vrot.slane %v2609_v15, 5  ;;  %v2633_v30 = vshll.u32 %v4838_v21, 16  ;;  %v4697_v21 = vld [vmem:[%s5387_s13 + $0x2c] sm:$0x1] }
  0xab   : > { %894 = vst.msk [vmem:[#allocation2 + $0x2c] sm:$0xf] %vm882_vm7, %v809_v32  ;;  %v807_v36 = vpop.permute.xlu0 %806  ;;  %v4803_v32 = vld [vmem:[%s5387_s13 + $0x24] sm:$0xf]  ;;  %v1552_v35 = vor.u32 %v1551_v23, %v1548_v22  ;;  %v4842_v23 = vld [vmem:[%s5387_s13 + $0x3c] sm:$0xf] }
  0xac   : > { %893 = vst.msk [vmem:[#allocation2 + $0x28] sm:$0xf] %vm882_vm7, %v807_v36  ;;  %1883 = vrot.lane.b32.xlu1 %v1520_v26, %s5288_s17  ;;  %v2607_v26 = vrot.slane %v2606_v14, 4 }
  0xad   : > { %1881 = vrot.lane.b32.xlu0 %v1510_v33, %s5288_s17  ;;  %v2597_v33 = vrot.slane %v2596_v20, 4 }
  0xae   : > { %v813_v44 = vpop.permute.xlu1 %812  ;;  %v2612_v37 = vsel %vm5398_vm2, %v2607_v26, %v2611_v28  ;;  %v4662_v28 = vld [vmem:[%s5387_s13 + $0x28] sm:$0xf] }
  0xaf   : > { %896 = vst.msk [vmem:[#allocation2 + $0x34] sm:$0xf] %vm882_vm7, %v813_v44  ;;  %v811_v48 = vpop.permute.xlu0 %810  ;;  %v2602_v43 = vsel %vm5398_vm2, %v2597_v33, %v5821_v2  ;;  %v2621_v44 = vrot.slane %v2620_v34, 4  ;;  %v3210_v2 = vrot.slane %v4886_v55, 5  ;;  %v4661_v34 = vld [vmem:[%s5387_s13 + $0x24] sm:$0xf] }
  0xb0   : > { %895 = vst.msk [vmem:[#allocation2 + $0x30] sm:$0xf] %vm882_vm7, %v811_v48  ;;  %1887 = vrot.lane.b32.xlu1 %v1544_v39, %s5288_s17  ;;  %v2635_v39 = vrot.slane %v2633_v30, 5  ;;  %v4881_v48 = vld [vmem:[%s5387_s13 + $0x18] sm:$0xe]  ;;  %v1565_v30 = vshll.u32 %v4697_v21, 16 }
  0xb1   : > { %1885 = vrot.lane.b32.xlu0 %v1534_v45, %s5288_s17  ;;  %v4883_v45 = vld [vmem:[%s5387_s13 + $0x20] sm:$0x1]  ;;  %v2626_v58 = vsel %vm5398_vm2, %v2621_v44, %v5830_v16  ;;  %v4929_v59 = vrot.slane %v4881_v48, 9  ;;  %v5896_v16 = vrot.slane %v1555_v5, 5  ;;  %v4747_v55 = vld [vmem:[%s5387_s13 + $0x34] sm:$0xf] }
  0xb2   : > { %v817_v56 = vpop.permute.xlu1 %816  ;;  %v2636_v52 = vsel %vm5398_vm2, %v2631_v38, %v2635_v39  ;;  %v3203_v54 = vrot.slane %v4883_v45, 5  ;;  %v2129_v63 = vrot.slane %v4747_v55, 5  ;;  %v4843_v21 = vld [vmem:[%s5387_s13 + $0x40] sm:$0xf] }
  0xb3   : > { %898 = vst.msk [vmem:[#allocation2 + $0x3c] sm:$0xf] %vm882_vm7, %v817_v56  ;;  %v815_v61 = vpop.permute.xlu0 %814  ;;  %v4884_v56 = vld [vmem:[%s5387_s13 + $0x24] sm:$0xe]  ;;  %v3201_v8 = vsel %vm5542_vm6, %v4929_v59, %v3200_v40  ;;  %v4745_v59 = vld [vmem:[%s5387_s13 + $0x2c] sm:$0x1] }
  0xb4   : > { %897 = vst.msk [vmem:[#allocation2 + $0x38] sm:$0xf] %vm882_vm7, %v815_v61  ;;  %2220 = vrot.lane.b32.xlu1 %v2112_v53, %s5289_s18  ;;  %v3202_v53 = vrot.slane %v3200_v40, 4  ;;  %v4930_v3 = vrot.slane %v4884_v56, 9  ;;  %v4664_v40 = vld [vmem:[%s5387_s13 + $0x34] sm:$0xf] }
  0xb5   : > { %2218 = vrot.lane.b32.xlu0 %v2109_v57, %s5289_s18 }
  0xb6   : > { %v821_v6 = vpop.permute.xlu1 %820  ;;  %v3204_v4 = vsel %vm5542_vm6, %v3202_v53, %v3203_v54  ;;  %v3208_v15 = vsel %vm5542_vm6, %v4930_v3, %v3207_v50  ;;  %v2122_v54 = vrot.slane %v4744_v49, 5  ;;  %v4748_v3 = vld [vmem:[%s5387_s13 + $0x38] sm:$0x1] }
  0xb7   : > { %900 = vst.msk [vmem:[#allocation2 + $0x44] sm:$0xf] %vm882_vm7, %v821_v6  ;;  %v819_v12 = vpop.permute.xlu0 %818  ;;  %v1559_v6 = vshrl.u32 %v4696_v60, 16 }
  0xb8   : > { %899 = vst.msk [vmem:[#allocation2 + $0x40] sm:$0xf] %vm882_vm7, %v819_v12  ;;  %2224 = vrot.lane.b32.xlu1 %v2119_v0, %s5289_s18  ;;  %v5170_v0 = vld [vmem:[%s7210_s1] sm:$0xff]  }
  0xb9   : > { %2222 = vrot.lane.b32.xlu0 %v2116_v1, %s5289_s18  ;;  %v3209_v1 = vrot.slane %v3207_v50, 4  ;;  %5044 = vmatprep.subr.bf16.mxu0 %v5170_v0  ;;  %v1561_v17 = vrot.slane %v1559_v6, 4 }
  0xba   : > { %v825_v18 = vpop.permute.xlu1 %824  ;;  %5045 = vmatpush3.bf16.msra.mxu0 %v5170_v0 }
  0xbb   : > { %902 = vst.msk [vmem:[#allocation2 + $0x4c] sm:$0xf] %vm882_vm7, %v825_v18  ;;  %v823_v24 = vpop.permute.xlu0 %822  ;;  %v3211_v14 = vsel %vm5542_vm6, %v3209_v1, %v3210_v2  ;;  %v1579_v18 = vshll.u32 %v4699_v11, 16  ;;  %v1562_v29 = vor.u32 %v1561_v17, %v5896_v16  ;;  %v2124_v1 = vrot.slane %v2122_v54, 4 }
  0xbc   : > { %901 = vst.msk [vmem:[#allocation2 + $0x48] sm:$0xf] %vm882_vm7, %v823_v24  ;;  %2414 = vrot.lane.b32.xlu1 %v4802_v13, %s5290_s19  ;;  %v4698_v13 = vld [vmem:[%s5387_s13 + $0x30] sm:$0xf]  ;;  %v2125_v2 = vrot.slane %v4745_v59, 5 }
  0xbd   : > { %2412 = vrot.lane.b32.xlu0 %v4801_v19, %s5290_s19  ;;  %v1583_v19 = vshrl.u32 %v4699_v11, 16  ;;  %v1570_v24 = vshrl.u32 %v4698_v13, 16  ;;  %v1563_v41 = vrot.slane %v1562_v29, 4  ;;  %v2131_v11 = vrot.slane %v2129_v63, 4  ;;  %v4888_v59 = vld [vmem:[%s5387_s13 + $0x34] sm:$0xf] }
  0xbe   : > { %v829_v31 = vpop.permute.xlu1 %828  ;;  %v2671_v29 = vshll.u32 %v4843_v21, 16 }
  0xbf   : > { %904 = vst.msk [vmem:[#allocation2 + $0x54] sm:$0xf] %vm882_vm7, %v829_v31  ;;  %v827_v36 = vpop.permute.xlu0 %826  ;;  %v1581_v31 = vrot.slane %v1579_v18, 5 }
  0xc0   : > { %903 = vst.msk [vmem:[#allocation2 + $0x50] sm:$0xf] %vm882_vm7, %v827_v36  ;;  %2418 = vrot.lane.b32.xlu1 %v4804_v25, %s5290_s19  ;;  %v1573_v25 = vshll.u32 %v4698_v13, 16  ;;  %v4700_v36 = vld [vmem:[%s5387_s13 + $0x38] sm:$0x1] }
  0xc1   : > { %2416 = vrot.lane.b32.xlu0 %v4803_v32, %s5290_s19  ;;  %v1585_v32 = vrot.slane %v1583_v19, 4  ;;  %v1589_v44 = vshll.u32 %v4700_v36, 16  ;;  %v2638_v19 = vshrl.u32 %v4839_v10, 16  ;;  %v2665_v36 = vshll.u32 %v4842_v23, 16 }
  0xc2   : > { %v833_v42 = vpop.permute.xlu1 %832  ;;  %v1575_v38 = vrot.slane %v1573_v25, 5 }
  0xc3   : > { %906 = vst.msk [vmem:[#allocation2 + $0x5c] sm:$0xf] %vm882_vm7, %v833_v42  ;;  %v831_v47 = vpop.permute.xlu0 %830  ;;  %v1567_v42 = vrot.slane %v1565_v30, 5  ;;  %v1591_v53 = vrot.slane %v1589_v44, 5  ;;  %v2675_v30 = vshrl.u32 %v4843_v21, 16 }
  0xc4   : > { %905 = vst.msk [vmem:[#allocation2 + $0x58] sm:$0xf] %vm882_vm7, %v831_v47  ;;  %2975 = vrot.lane.b32.xlu1 %v2612_v37, %s5291_s10  ;;  %v1572_v37 = vrot.slane %v1570_v24, 4  ;;  %v1553_v47 = vrot.slane %v1552_v35, 4  ;;  %v2662_v35 = vshrl.u32 %v4842_v23, 16 }
  0xc5   : > { %2973 = vrot.lane.b32.xlu0 %v2602_v43, %s5291_s10  ;;  %v1586_v43 = vor.u32 %v1585_v32, %v1581_v31  ;;  %v1568_v51 = vsel %vm5398_vm2, %v1563_v41, %v1567_v42  ;;  %v4841_v32 = vld [vmem:[%s5387_s13 + $0x38] sm:$0x1]  ;;  %v2673_v41 = vrot.slane %v2671_v29, 5  ;;  %v2677_v42 = vrot.slane %v2675_v30, 4  ;;  %v4805_v44 = vld [vmem:[%s5387_s13 + $0x30] sm:$0xf] }
  0xc6   : > { %v837_v57 = vpop.permute.xlu1 %836  ;;  %v1576_v48 = vor.u32 %v1575_v38, %v1572_v37  ;;  %v4806_v38 = vld [vmem:[%s5387_s13 + $0x34] sm:$0xf] }
  0xc7   : > { %908 = vst.msk [vmem:[#allocation2 + $0x64] sm:$0xf] %vm882_vm7, %v837_v57  ;;  %v835_v61 = vpop.permute.xlu0 %834  ;;  %v1558_v57 = vsel %vm5398_vm2, %v1553_v47, %v5896_v16  ;;  %v2664_v47 = vrot.slane %v2662_v35, 4 }
  0xc8   : > { %907 = vst.msk [vmem:[#allocation2 + $0x60] sm:$0xf] %vm882_vm7, %v835_v61  ;;  %2979 = vrot.lane.b32.xlu1 %v2636_v52, %s5291_s10  ;;  %v1587_v52 = vrot.slane %v1586_v43, 4  ;;  %v4743_v61 = vld [vmem:[%s5387_s13 + $0x24] sm:$0xe] }
  0xc9   : > { %2977 = vrot.lane.b32.xlu0 %v2626_v58, %s5291_s10  ;;  %v1577_v58 = vrot.slane %v1576_v48, 4  ;;  %v2667_v48 = vrot.slane %v2665_v36, 5 }
  0xca   : > { %v841_v7 = vpop.permute.xlu1 %840  ;;  %v1592_v0 = vsel %vm5398_vm2, %v1587_v52, %v1591_v53  ;;  %v2678_v53 = vor.u32 %v2677_v42, %v2673_v41  ;;  %v4703_v42 = vld [vmem:[%s5387_s13 + $0x44] sm:$0x1] }
  0xcb   : > { %910 = vst.msk [vmem:[#allocation2 + $0x6c] sm:$0xf] %vm882_vm7, %v841_v7  ;;  %v839_v12 = vpop.permute.xlu0 %838  ;;  %v1582_v6 = vsel %vm5398_vm2, %v1577_v58, %v1581_v31  ;;  %v4787_v7 = vrot.slane %v4743_v61, 9  ;;  %v2668_v58 = vor.u32 %v2667_v48, %v2664_v47  ;;  %v4666_v48 = vld [vmem:[%s5387_s13 + $0x40] sm:$0xf] }
  0xcc   : > { %909 = vst.msk [vmem:[#allocation2 + $0x68] sm:$0xf] %vm882_vm7, %v839_v12  ;;  %3312 = vrot.lane.b32.xlu1 %v3204_v4, %s5292_s14  ;;  %v4746_v4 = vld [vmem:[%s5387_s13 + $0x30] sm:$0xe]  ;;  %v2132_v12 = vrot.slane %v4748_v3, 5 }
  0xcd   : > { %3310 = vrot.lane.b32.xlu0 %v3201_v8, %s5292_s14  ;;  %v4840_v8 = vld [vmem:[%s5387_s13 + $0x34] sm:$0xf]  ;;  %v4788_v13 = vrot.slane %v4746_v4, 9  ;;  %v2123_v18 = vsel %vm5542_vm6, %v4787_v7, %v2122_v54 }
  0xce   : > { %v845_v20 = vpop.permute.xlu1 %844  ;;  %v2651_v16 = vshrl.u32 %v4840_v8, 16  ;;  %v2133_v24 = vsel %vm5542_vm6, %v2131_v11, %v2132_v12 }
  0xcf   : > { %912 = vst.msk [vmem:[#allocation2 + $0x74] sm:$0xf] %vm882_vm7, %v845_v20  ;;  %v843_v26 = vpop.permute.xlu0 %842  ;;  %v2641_v20 = vshll.u32 %v4839_v10, 16  ;;  %v2130_v25 = vsel %vm5542_vm6, %v4788_v13, %v2129_v63  ;;  %v2679_v63 = vrot.slane %v2678_v53, 4  ;;  %v4892_v13 = vld [vmem:[%s5387_s13 + $0x44] sm:$0x1] }
  0xd0   : > { %911 = vst.msk [vmem:[#allocation2 + $0x70] sm:$0xf] %vm882_vm7, %v843_v26  ;;  %3316 = vrot.lane.b32.xlu1 %v3211_v14, %s5292_s14  ;;  %v2126_v14 = vsel %vm5542_vm6, %v2124_v1, %v2125_v2  ;;  %v3214_v1 = vrot.slane %v4888_v59, 5  ;;  %v4891_v2 = vld [vmem:[%s5387_s13 + $0x40] sm:$0xf] }
  0xd1   : > { %3314 = vrot.lane.b32.xlu0 %v3208_v15, %s5292_s14  ;;  %v2647_v15 = vshll.u32 %v4840_v8, 16  ;;  %v4887_v8 = vld [vmem:[%s5387_s13 + $0x30] sm:$0xe] }
  0xd2   : > { %v849_v33 = vpop.permute.xlu1 %848  ;;  %v3216_v11 = vrot.slane %v3214_v1, 4 }
  0xd3   : > { %914 = vst.msk [vmem:[#allocation2 + $0x7c] sm:$0xf] %vm882_vm7, %v849_v33  ;;  %v847_v39 = vpop.permute.xlu0 %846  ;;  %v2649_v26 = vrot.slane %v2647_v15, 5  ;;  %v2640_v33 = vrot.slane %v2638_v19, 4 }
  0xd4   : > { %913 = vst.msk [vmem:[#allocation2 + $0x78] sm:$0xf] %vm882_vm7, %v847_v39  ;;  %1330 = vrot.lane.b32.xlu1 %v4662_v28, %s5287_s16  ;;  %v2653_v28 = vrot.slane %v2651_v16, 4 }
  0xd5   : > { %1328 = vrot.lane.b32.xlu0 %v4661_v34, %s5287_s16  ;;  %v2643_v34 = vrot.slane %v2641_v20, 5  ;;  %v4701_v20 = vld [vmem:[%s5387_s13 + $0x3c] sm:$0xf] }
  0xd6   : > { %v1129_v45 = vpop.permute.xlu1 %1128  ;;  %v2654_v39 = vor.u32 %v2653_v28, %v2649_v26  ;;  %v1594_v30 = vshrl.u32 %v4701_v20, 16 }
  0xd7   : > { %1224 = vst.msk [vmem:[#allocation2 + $0x4] sm:$0xf] %vm1222_vm9, %v1129_v45  ;;  %v1127_v50 = vpop.permute.xlu0 %1126  ;;  %v2644_v45 = vor.u32 %v2643_v34, %v2640_v33  ;;  %v4704_v34 = vld [vmem:[%s5387_s13 + $0x48] sm:$0xf] }
  0xd8   : > { %1223 = vst.msk [vmem:[#allocation2] sm:$0xf] %vm1222_vm9, %v1127_v50  ;;  %1334 = vrot.lane.b32.xlu1 %v4664_v40, %s5287_s16  ;;  %v2657_v40 = vshll.u32 %v4841_v32, 16  ;;  %v4808_v50 = vld [vmem:[%s5387_s13 + $0x40] sm:$0xf] }
  0xd9   : > { %1332 = vrot.lane.b32.xlu0 %v4663_v46, %s5287_s16  ;;  %v4844_v46 = vld [vmem:[%s5387_s13 + $0x44] sm:$0x1]  ;;  %v4705_v32 = vld [vmem:[%s5387_s13 + $0x4c] sm:$0xf] }
  0xda   : > { %v1133_v56 = vpop.permute.xlu1 %1132  ;;  %v2659_v52 = vrot.slane %v2657_v40, 5  ;;  %v2681_v54 = vshll.u32 %v4844_v46, 16  ;;  %v1631_v40 = vshrl.u32 %v4705_v32, 16  ;;  %v1621_v46 = vshll.u32 %v4704_v34, 16 }
  0xdb   : > { %1226 = vst.msk [vmem:[#allocation2 + $0xc] sm:$0xf] %vm1222_vm9, %v1133_v56  ;;  %v1131_v60 = vpop.permute.xlu0 %1130  ;;  %v4807_v56 = vld [vmem:[%s5387_s13 + $0x3c] sm:$0xf] }
  0xdc   : > { %1225 = vst.msk [vmem:[#allocation2 + $0x8] sm:$0xf] %vm1222_vm9, %v1131_v60  ;;  %1891 = vrot.lane.b32.xlu1 %v1568_v51, %s5288_s17  ;;  %v2655_v51 = vrot.slane %v2654_v39, 4  ;;  %v1627_v39 = vshll.u32 %v4705_v32, 16 }
  0xdd   : > { %1889 = vrot.lane.b32.xlu0 %v1558_v57, %s5288_s17  ;;  %v2645_v57 = vrot.slane %v2644_v45, 4  ;;  %v1618_v45 = vshrl.u32 %v4704_v34, 16 }
  0xde   : > { %v1137_v5 = vpop.permute.xlu1 %1136  ;;  %v2660_v61 = vsel %vm5398_vm2, %v2655_v51, %v2659_v52  ;;  %v1629_v51 = vrot.slane %v1627_v39, 5  ;;  %v1633_v52 = vrot.slane %v1631_v40, 4 }
  0xdf   : > { %1228 = vst.msk [vmem:[#allocation2 + $0x14] sm:$0xf] %vm1222_vm9, %v1137_v5  ;;  %v1135_v9 = vpop.permute.xlu0 %1134  ;;  %v2650_v4 = vsel %vm5398_vm2, %v2645_v57, %v2649_v26  ;;  %v2669_v5 = vrot.slane %v2668_v58, 4  ;;  %v1620_v57 = vrot.slane %v1618_v45, 4  ;;  %v1623_v58 = vrot.slane %v1621_v46, 5 }
  0xe0   : > { %1227 = vst.msk [vmem:[#allocation2 + $0x10] sm:$0xf] %vm1222_vm9, %v1135_v9  ;;  %1895 = vrot.lane.b32.xlu1 %v1592_v0, %s5288_s17  ;;  %v2683_v0 = vrot.slane %v2681_v54, 5  ;;  %v3221_v9 = vrot.slane %v4891_v2, 5  ;;  %v4665_v54 = vld [vmem:[%s5387_s13 + $0x3c] sm:$0xf] }
  0xe1   : > { %1893 = vrot.lane.b32.xlu0 %v1582_v6, %s5288_s17  ;;  %v4889_v6 = vld [vmem:[%s5387_s13 + $0x38] sm:$0x1]  ;;  %v2674_v16 = vsel %vm5398_vm2, %v2669_v5, %v2673_v41  ;;  %v1624_v5 = vor.u32 %v1623_v58, %v1620_v57  ;;  %v4810_v58 = vld [vmem:[%s5387_s13 + $0x4c] sm:$0xf] }
  0xe2   : > { %v1141_v17 = vpop.permute.xlu1 %1140  ;;  %v2684_v10 = vsel %vm5398_vm2, %v2679_v63, %v2683_v0  ;;  %v3217_v12 = vrot.slane %v4889_v6, 5  ;;  %v3223_v21 = vrot.slane %v3221_v9, 4  ;;  %v1634_v0 = vor.u32 %v1633_v52, %v1629_v51  ;;  %v4750_v6 = vld [vmem:[%s5387_s13 + $0x40] sm:$0xf]  ;;  %v4847_v52 = vld [vmem:[%s5387_s13 + $0x50] sm:$0x1] }
  0xe3   : > { %1230 = vst.msk [vmem:[#allocation2 + $0x1c] sm:$0xf] %vm1222_vm9, %v1141_v17  ;;  %v1139_v22 = vpop.permute.xlu0 %1138  ;;  %v4931_v17 = vrot.slane %v4887_v8, 9 }
  0xe4   : > { %1229 = vst.msk [vmem:[#allocation2 + $0x18] sm:$0xf] %vm1222_vm9, %v1139_v22  ;;  %2228 = vrot.lane.b32.xlu1 %v2126_v14, %s5289_s18  ;;  %v4890_v14 = vld [vmem:[%s5387_s13 + $0x3c] sm:$0xe]  ;;  %v3224_v22 = vrot.slane %v4892_v13, 5 }
  0xe5   : > { %2226 = vrot.lane.b32.xlu0 %v2123_v18, %s5289_s18  ;;  %v4702_v18 = vld [vmem:[%s5387_s13 + $0x40] sm:$0xf]  ;;  %v4932_v23 = vrot.slane %v4890_v14, 9  ;;  %v3215_v29 = vsel %vm5542_vm6, %v4931_v17, %v3214_v1 }
  0xe6   : > { %v1145_v31 = vpop.permute.xlu1 %1144  ;;  %v1607_v26 = vshrl.u32 %v4702_v18, 16  ;;  %v3225_v35 = vsel %vm5542_vm6, %v3223_v21, %v3224_v22 }
  0xe7   : > { %1232 = vst.msk [vmem:[#allocation2 + $0x24] sm:$0xf] %vm1222_vm9, %v1145_v31  ;;  %v1143_v37 = vpop.permute.xlu0 %1142  ;;  %v1597_v31 = vshll.u32 %v4701_v20, 16  ;;  %v3222_v36 = vsel %vm5542_vm6, %v4932_v23, %v3221_v9  ;;  %v1635_v9 = vrot.slane %v1634_v0, 4  ;;  %v4754_v23 = vld [vmem:[%s5387_s13 + $0x50] sm:$0x1] }
  0xe8   : > { %1231 = vst.msk [vmem:[#allocation2 + $0x20] sm:$0xf] %vm1222_vm9, %v1143_v37  ;;  %2232 = vrot.lane.b32.xlu1 %v2133_v24, %s5289_s18  ;;  %v3218_v24 = vsel %vm5542_vm6, %v3216_v11, %v3217_v12  ;;  %v2136_v11 = vrot.slane %v4750_v6, 5  ;;  %v4753_v12 = vld [vmem:[%s5387_s13 + $0x4c] sm:$0xf] }
  0xe9   : > { %2230 = vrot.lane.b32.xlu0 %v2130_v25, %s5289_s18  ;;  %v1603_v25 = vshll.u32 %v4702_v18, 16  ;;  %v4749_v18 = vld [vmem:[%s5387_s13 + $0x3c] sm:$0xe] }
  0xea   : > { %v1149_v43 = vpop.permute.xlu1 %1148  ;;  %v2138_v21 = vrot.slane %v2136_v11, 4 }
  0xeb   : > { %1234 = vst.msk [vmem:[#allocation2 + $0x2c] sm:$0xf] %vm1222_vm9, %v1149_v43  ;;  %v1147_v49 = vpop.permute.xlu0 %1146  ;;  %v1605_v37 = vrot.slane %v1603_v25, 5  ;;  %v1596_v43 = vrot.slane %v1594_v30, 4 }
  0xec   : > { %1233 = vst.msk [vmem:[#allocation2 + $0x28] sm:$0xf] %vm1222_vm9, %v1147_v49  ;;  %2422 = vrot.lane.b32.xlu1 %v4806_v38, %s5290_s19  ;;  %v1609_v38 = vrot.slane %v1607_v26, 4 }
  0xed   : > { %2420 = vrot.lane.b32.xlu0 %v4805_v44, %s5290_s19  ;;  %v1599_v44 = vrot.slane %v1597_v31, 5  ;;  %v4845_v31 = vld [vmem:[%s5387_s13 + $0x48] sm:$0xf] }
  0xee   : > { %v1153_v55 = vpop.permute.xlu1 %1152  ;;  %v1610_v49 = vor.u32 %v1609_v38, %v1605_v37  ;;  %v2686_v40 = vshrl.u32 %v4845_v31, 16 }
  0xef   : > { %1236 = vst.msk [vmem:[#allocation2 + $0x34] sm:$0xf] %vm1222_vm9, %v1153_v55  ;;  %v1151_v60 = vpop.permute.xlu0 %1150  ;;  %v1600_v55 = vor.u32 %v1599_v44, %v1596_v43  ;;  %v4848_v44 = vld [vmem:[%s5387_s13 + $0x54] sm:$0xf] }
  0xf0   : > { %1235 = vst.msk [vmem:[#allocation2 + $0x30] sm:$0xf] %vm1222_vm9, %v1151_v60  ;;  %2426 = vrot.lane.b32.xlu1 %v4808_v50, %s5290_s19  ;;  %v1613_v50 = vshll.u32 %v4703_v42, 16  ;;  %v4668_v60 = vld [vmem:[%s5387_s13 + $0x4c] sm:$0xf] }
  0xf1   : > { %2424 = vrot.lane.b32.xlu0 %v4807_v56, %s5290_s19  ;;  %v4706_v56 = vld [vmem:[%s5387_s13 + $0x50] sm:$0x1]  ;;  %v4849_v42 = vld [vmem:[%s5387_s13 + $0x58] sm:$0xf] }
  0xf2   : > { %v1157_v3 = vpop.permute.xlu1 %1156  ;;  %v1615_v63 = vrot.slane %v1613_v50, 5  ;;  %v1637_v1 = vshll.u32 %v4706_v56, 16  ;;  %v2723_v50 = vshrl.u32 %v4849_v42, 16  ;;  %v2713_v56 = vshll.u32 %v4848_v44, 16 }
  0xf3   : > { %1238 = vst.msk [vmem:[#allocation2 + $0x3c] sm:$0xf] %vm1222_vm9, %v1157_v3  ;;  %v1155_v7 = vpop.permute.xlu0 %1154  ;;  %v4667_v3 = vld [vmem:[%s5387_s13 + $0x48] sm:$0xf] }
  0xf4   : > { %1237 = vst.msk [vmem:[#allocation2 + $0x38] sm:$0xf] %vm1222_vm9, %v1155_v7  ;;  %2983 = vrot.lane.b32.xlu1 %v2660_v61, %s5291_s10  ;;  %v1611_v61 = vrot.slane %v1610_v49, 4  ;;  %v2719_v49 = vshll.u32 %v4849_v42, 16 }
  0xf5   : > { %2981 = vrot.lane.b32.xlu0 %v2650_v4, %s5291_s10  ;;  %v1601_v4 = vrot.slane %v1600_v55, 4  ;;  %v2710_v55 = vshrl.u32 %v4848_v44, 16 }
  0xf6   : > { %v1161_v15 = vpop.permute.xlu1 %1160  ;;  %v1616_v8 = vsel %vm5398_vm2, %v1611_v61, %v1615_v63  ;;  %v6077_v61 = vrot.slane %v2719_v49, 5  ;;  %v2725_v63 = vrot.slane %v2723_v50, 4 }
  0xf7   : > { %1240 = vst.msk [vmem:[#allocation2 + $0x44] sm:$0xf] %vm1222_vm9, %v1161_v15  ;;  %v1159_v19 = vpop.permute.xlu0 %1158  ;;  %v1606_v14 = vsel %vm5398_vm2, %v1601_v4, %v1605_v37  ;;  %v1625_v15 = vrot.slane %v1624_v5, 4  ;;  %v2712_v4 = vrot.slane %v2710_v55, 4  ;;  %v2715_v5 = vrot.slane %v2713_v56, 5 }
  0xf8   : > { %1239 = vst.msk [vmem:[#allocation2 + $0x40] sm:$0xf] %vm1222_vm9, %v1159_v19  ;;  %2987 = vrot.lane.b32.xlu1 %v2684_v10, %s5291_s10  ;;  %v1639_v10 = vrot.slane %v1637_v1, 5  ;;  %v2143_v19 = vrot.slane %v4753_v12, 5  ;;  %v4809_v1 = vld [vmem:[%s5387_s13 + $0x48] sm:$0xf] }
  0xf9   : > { %2985 = vrot.lane.b32.xlu0 %v2674_v16, %s5291_s10  ;;  %v4751_v16 = vld [vmem:[%s5387_s13 + $0x44] sm:$0x1]  ;;  %v1630_v26 = vsel %vm5398_vm2, %v1625_v15, %v1629_v51  ;;  %v2716_v15 = vor.u32 %v2715_v5, %v2712_v4  ;;  %v4670_v5 = vld [vmem:[%s5387_s13 + $0x58] sm:$0xf] }
  0xfa   : > { %v1165_v28 = vpop.permute.xlu1 %1164  ;;  %v1640_v20 = vsel %vm5398_vm2, %v1635_v9, %v1639_v10  ;;  %v2139_v22 = vrot.slane %v4751_v16, 5  ;;  %v2145_v32 = vrot.slane %v2143_v19, 4  ;;  %v2726_v10 = vor.u32 %v2725_v63, %v6077_v61  ;;  %v4894_v16 = vld [vmem:[%s5387_s13 + $0x4c] sm:$0xf]  ;;  %v4709_v63 = vld [vmem:[%s5387_s13 + $0x5c] sm:$0x1] }
  0xfb   : > { %1242 = vst.msk [vmem:[#allocation2 + $0x4c] sm:$0xf] %vm1222_vm9, %v1165_v28  ;;  %v1163_v33 = vpop.permute.xlu0 %1162  ;;  %v4789_v28 = vrot.slane %v4749_v18, 9 }
  0xfc   : > { %1241 = vst.msk [vmem:[#allocation2 + $0x48] sm:$0xf] %vm1222_vm9, %v1163_v33  ;;  %3320 = vrot.lane.b32.xlu1 %v3218_v24, %s5292_s14  ;;  %v4752_v24 = vld [vmem:[%s5387_s13 + $0x48] sm:$0xe]  ;;  %v2146_v33 = vrot.slane %v4754_v23, 5 }
  0xfd   : > { %3318 = vrot.lane.b32.xlu0 %v3215_v29, %s5292_s14  ;;  %v4846_v29 = vld [vmem:[%s5387_s13 + $0x4c] sm:$0xf]  ;;  %v4790_v34 = vrot.slane %v4752_v24, 9  ;;  %v2137_v39 = vsel %vm5542_vm6, %v4789_v28, %v2136_v11 }
  0xfe   : > { %v1169_v41 = vpop.permute.xlu1 %1168  ;;  %v2699_v37 = vshrl.u32 %v4846_v29, 16  ;;  %v2147_v45 = vsel %vm5542_vm6, %v2145_v32, %v2146_v33 }
  0xff   : > { %1244 = vst.msk [vmem:[#allocation2 + $0x54] sm:$0xf] %vm1222_vm9, %v1169_v41  ;;  %v1167_v47 = vpop.permute.xlu0 %1166  ;;  %v2689_v41 = vshll.u32 %v4845_v31, 16  ;;  %v2144_v46 = vsel %vm5542_vm6, %v4790_v34, %v2143_v19  ;;  %v2727_v19 = vrot.slane %v2726_v10, 4  ;;  %v4898_v34 = vld [vmem:[%s5387_s13 + $0x5c] sm:$0x1] }
 0x100   : > { %1243 = vst.msk [vmem:[#allocation2 + $0x50] sm:$0xf] %vm1222_vm9, %v1167_v47  ;;  %3324 = vrot.lane.b32.xlu1 %v3225_v35, %s5292_s14  ;;  %v2140_v35 = vsel %vm5542_vm6, %v2138_v21, %v2139_v22  ;;  %v3228_v21 = vrot.slane %v4894_v16, 5  ;;  %v4897_v22 = vld [vmem:[%s5387_s13 + $0x58] sm:$0xf] }
 0x101   : > { %3322 = vrot.lane.b32.xlu0 %v3222_v36, %s5292_s14  ;;  %v2695_v36 = vshll.u32 %v4846_v29, 16  ;;  %v4893_v29 = vld [vmem:[%s5387_s13 + $0x48] sm:$0xe] }
 0x102   : > { %v1173_v53 = vpop.permute.xlu1 %1172  ;;  %v3230_v32 = vrot.slane %v3228_v21, 4 }
 0x103   : > { %1246 = vst.msk [vmem:[#allocation2 + $0x5c] sm:$0xf] %vm1222_vm9, %v1173_v53  ;;  %v1171_v59 = vpop.permute.xlu0 %1170  ;;  %v6068_v47 = vrot.slane %v2695_v36, 5  ;;  %v2688_v53 = vrot.slane %v2686_v40, 4 }
 0x104   : > { %1245 = vst.msk [vmem:[#allocation2 + $0x58] sm:$0xf] %vm1222_vm9, %v1171_v59  ;;  %1338 = vrot.lane.b32.xlu1 %v4666_v48, %s5287_s16  ;;  %v2701_v48 = vrot.slane %v2699_v37, 4 }
 0x105   : > { %1336 = vrot.lane.b32.xlu0 %v4665_v54, %s5287_s16  ;;  %v2691_v54 = vrot.slane %v2689_v41, 5  ;;  %v4707_v41 = vld [vmem:[%s5387_s13 + $0x54] sm:$0xf] }
 0x106   : > { %v1177_v2 = vpop.permute.xlu1 %1176  ;;  %v2702_v59 = vor.u32 %v2701_v48, %v6068_v47  ;;  %v1642_v50 = vshrl.u32 %v4707_v41, 16 }
 0x107   : > { %1248 = vst.msk [vmem:[#allocation2 + $0x64] sm:$0xf] %vm1222_vm9, %v1177_v2  ;;  %v1175_v7 = vpop.permute.xlu0 %1174  ;;  %v2692_v2 = vor.u32 %v2691_v54, %v2688_v53  ;;  %v4710_v54 = vld [vmem:[%s5387_s13 + $0x60] sm:$0xf] }
 0x108   : > { %1247 = vst.msk [vmem:[#allocation2 + $0x60] sm:$0xf] %vm1222_vm9, %v1175_v7  ;;  %1342 = vrot.lane.b32.xlu1 %v4668_v60, %s5287_s16  ;;  %v2705_v60 = vshll.u32 %v4847_v52, 16  ;;  %v4812_v7 = vld [vmem:[%s5387_s13 + $0x58] sm:$0xf] }
 0x109   : > { %1340 = vrot.lane.b32.xlu0 %v4667_v3, %s5287_s16  ;;  %v4850_v3 = vld [vmem:[%s5387_s13 + $0x5c] sm:$0x1]  ;;  %v4711_v52 = vld [vmem:[%s5387_s13 + $0x64] sm:$0xf] }
 0x10a   : > { %v1181_v13 = vpop.permute.xlu1 %1180  ;;  %v2707_v9 = vrot.slane %v2705_v60, 5  ;;  %v2729_v11 = vshll.u32 %v4850_v3, 16  ;;  %v1679_v60 = vshrl.u32 %v4711_v52, 16  ;;  %v1669_v3 = vshll.u32 %v4710_v54, 16 }
 0x10b   : > { %1250 = vst.msk [vmem:[#allocation2 + $0x6c] sm:$0xf] %vm1222_vm9, %v1181_v13  ;;  %v1179_v17 = vpop.permute.xlu0 %1178  ;;  %v4811_v13 = vld [vmem:[%s5387_s13 + $0x54] sm:$0xf] }
 0x10c   : > { %1249 = vst.msk [vmem:[#allocation2 + $0x68] sm:$0xf] %vm1222_vm9, %v1179_v17  ;;  %1899 = vrot.lane.b32.xlu1 %v1616_v8, %s5288_s17  ;;  %v2703_v8 = vrot.slane %v2702_v59, 4  ;;  %v1675_v59 = vshll.u32 %v4711_v52, 16 }
 0x10d   : > { %1897 = vrot.lane.b32.xlu0 %v1606_v14, %s5288_s17  ;;  %v2693_v14 = vrot.slane %v2692_v2, 4  ;;  %v1666_v2 = vshrl.u32 %v4710_v54, 16 }
 0x10e   : > { %v1185_v25 = vpop.permute.xlu1 %1184  ;;  %v2708_v18 = vsel %vm5398_vm2, %v2703_v8, %v2707_v9  ;;  %v6141_v8 = vrot.slane %v1675_v59, 5  ;;  %v1681_v9 = vrot.slane %v1679_v60, 4 }
 0x10f   : > { %1252 = vst.msk [vmem:[#allocation2 + $0x74] sm:$0xf] %vm1222_vm9, %v1185_v25  ;;  %v1183_v30 = vpop.permute.xlu0 %1182  ;;  %v2698_v24 = vsel %vm5398_vm2, %v2693_v14, %v6068_v47  ;;  %v2717_v25 = vrot.slane %v2716_v15, 4  ;;  %v1668_v14 = vrot.slane %v1666_v2, 4  ;;  %v1671_v15 = vrot.slane %v1669_v3, 5 }
 0x110   : > { %1251 = vst.msk [vmem:[#allocation2 + $0x70] sm:$0xf] %vm1222_vm9, %v1183_v30  ;;  %1903 = vrot.lane.b32.xlu1 %v1640_v20, %s5288_s17  ;;  %v2731_v20 = vrot.slane %v2729_v11, 5  ;;  %v3235_v30 = vrot.slane %v4897_v22, 5  ;;  %v4669_v11 = vld [vmem:[%s5387_s13 + $0x54] sm:$0xf] }
 0x111   : > { %1901 = vrot.lane.b32.xlu0 %v1630_v26, %s5288_s17  ;;  %v4895_v26 = vld [vmem:[%s5387_s13 + $0x50] sm:$0x1]  ;;  %v2722_v37 = vsel %vm5398_vm2, %v2717_v25, %v6077_v61  ;;  %v1672_v25 = vor.u32 %v1671_v15, %v1668_v14 }
 0x112   : > { %v1189_v38 = vpop.permute.xlu1 %1188  ;;  %v2732_v31 = vsel %vm5398_vm2, %v2727_v19, %v2731_v20  ;;  %v3231_v33 = vrot.slane %v4895_v26, 5  ;;  %v3237_v42 = vrot.slane %v3235_v30, 4  ;;  %v1682_v20 = vor.u32 %v1681_v9, %v6141_v8  ;;  %v4756_v26 = vld [vmem:[%s5387_s13 + $0x58] sm:$0xf] }
 0x113   : > { %1254 = vst.msk [vmem:[#allocation2 + $0x7c] sm:$0xf] %vm1222_vm9, %v1189_v38  ;;  %v1187_v43 = vpop.permute.xlu0 %1186  ;;  %v4933_v38 = vrot.slane %v4893_v29, 9 }
 0x114   : > { %1253 = vst.msk [vmem:[#allocation2 + $0x78] sm:$0xf] %vm1222_vm9, %v1187_v43  ;;  %2236 = vrot.lane.b32.xlu1 %v2140_v35, %s5289_s18  ;;  %v4896_v35 = vld [vmem:[%s5387_s13 + $0x54] sm:$0xe]  ;;  %v3238_v43 = vrot.slane %v4898_v34, 5 }
 0x115   : > { %2234 = vrot.lane.b32.xlu0 %v2137_v39, %s5289_s18  ;;  %v4708_v39 = vld [vmem:[%s5387_s13 + $0x58] sm:$0xf]  ;;  %v4934_v44 = vrot.slane %v4896_v35, 9  ;;  %v3229_v49 = vsel %vm5542_vm6, %v4933_v38, %v3228_v21 }
 0x116   : > { %v1323_v51 = vpop.permute.xlu1 %1322  ;;  %v1655_v47 = vshrl.u32 %v4708_v39, 16  ;;  %v3239_v55 = vsel %vm5542_vm6, %v3237_v42, %v3238_v43 }
 0x117   : > { %1418 = vst.msk [vmem:[#allocation2 + $0x4] sm:$0xf] %vm1416_vm10, %v1323_v51  ;;  %v1321_v57 = vpop.permute.xlu0 %1320  ;;  %v1645_v51 = vshll.u32 %v4707_v41, 16  ;;  %v3236_v56 = vsel %vm5542_vm6, %v4934_v44, %v3235_v30  ;;  %v1683_v30 = vrot.slane %v1682_v20, 4  ;;  %v4760_v44 = vld [vmem:[%s5387_s13 + $0x68] sm:$0x1] }
 0x118   : > { %1417 = vst.msk [vmem:[#allocation2] sm:$0xf] %vm1416_vm10, %v1321_v57  ;;  %2240 = vrot.lane.b32.xlu1 %v2147_v45, %s5289_s18  ;;  %v3232_v45 = vsel %vm5542_vm6, %v3230_v32, %v3231_v33  ;;  %v2150_v32 = vrot.slane %v4756_v26, 5  ;;  %v4759_v33 = vld [vmem:[%s5387_s13 + $0x64] sm:$0xf] }
 0x119   : > { %2238 = vrot.lane.b32.xlu0 %v2144_v46, %s5289_s18  ;;  %v1651_v46 = vshll.u32 %v4708_v39, 16  ;;  %v4755_v39 = vld [vmem:[%s5387_s13 + $0x54] sm:$0xe] }
 0x11a   : > { %v1327_v0 = vpop.permute.xlu1 %1326  ;;  %v2152_v42 = vrot.slane %v2150_v32, 4 }
 0x11b   : > { %1420 = vst.msk [vmem:[#allocation2 + $0xc] sm:$0xf] %vm1416_vm10, %v1327_v0  ;;  %v1325_v6 = vpop.permute.xlu0 %1324  ;;  %v6132_v57 = vrot.slane %v1651_v46, 5  ;;  %v1644_v0 = vrot.slane %v1642_v50, 4 }
 0x11c   : > { %1419 = vst.msk [vmem:[#allocation2 + $0x8] sm:$0xf] %vm1416_vm10, %v1325_v6  ;;  %2430 = vrot.lane.b32.xlu1 %v4810_v58, %s5290_s19  ;;  %v1657_v58 = vrot.slane %v1655_v47, 4 }
 0x11d   : > { %2428 = vrot.lane.b32.xlu0 %v4809_v1, %s5290_s19  ;;  %v1647_v1 = vrot.slane %v1645_v51, 5  ;;  %v4851_v51 = vld [vmem:[%s5387_s13 + $0x60] sm:$0xf] }
 0x11e   : > { %v1884_v12 = vpop.permute.xlu1 %1883  ;;  %v1658_v6 = vor.u32 %v1657_v58, %v6132_v57  ;;  %v2734_v60 = vshrl.u32 %v4851_v51, 16 }
 0x11f   : > { %1979 = vst.msk [vmem:[#allocation2 + $0x4] sm:$0xf] %vm1977_vm11, %v1884_v12  ;;  %v1882_v17 = vpop.permute.xlu0 %1881  ;;  %v1648_v12 = vor.u32 %v1647_v1, %v1644_v0  ;;  %v4854_v1 = vld [vmem:[%s5387_s13 + $0x6c] sm:$0xf] }
 0x120   : > { %1978 = vst.msk [vmem:[#allocation2] sm:$0xf] %vm1977_vm11, %v1882_v17  ;;  %2434 = vrot.lane.b32.xlu1 %v4812_v7, %s5290_s19  ;;  %v1661_v7 = vshll.u32 %v4709_v63, 16  ;;  %v4672_v17 = vld [vmem:[%s5387_s13 + $0x64] sm:$0xf] }
 0x121   : > { %2432 = vrot.lane.b32.xlu0 %v4811_v13, %s5290_s19  ;;  %v4712_v13 = vld [vmem:[%s5387_s13 + $0x68] sm:$0x1]  ;;  %v4855_v63 = vld [vmem:[%s5387_s13 + $0x70] sm:$0xf] }
 0x122   : > { %v1888_v23 = vpop.permute.xlu1 %1887  ;;  %v1663_v19 = vrot.slane %v1661_v7, 5  ;;  %v1685_v21 = vshll.u32 %v4712_v13, 16  ;;  %v2767_v7 = vshll.u32 %v4855_v63, 16  ;;  %v2761_v13 = vshll.u32 %v4854_v1, 16 }
 0x123   : > { %1981 = vst.msk [vmem:[#allocation2 + $0xc] sm:$0xf] %vm1977_vm11, %v1888_v23  ;;  %v1886_v28 = vpop.permute.xlu0 %1885  ;;  %v4671_v23 = vld [vmem:[%s5387_s13 + $0x60] sm:$0xf] }
 0x124   : > { %1980 = vst.msk [vmem:[#allocation2 + $0x8] sm:$0xf] %vm1977_vm11, %v1886_v28  ;;  %2991 = vrot.lane.b32.xlu1 %v2708_v18, %s5291_s10  ;;  %v1659_v18 = vrot.slane %v1658_v6, 4  ;;  %v2769_v20 = vrot.slane %v2767_v7, 5  ;;  %v2763_v26 = vrot.slane %v2761_v13, 5 }
 0x125   : > { %2989 = vrot.lane.b32.xlu0 %v2698_v24, %s5291_s10  ;;  %v1649_v24 = vrot.slane %v1648_v12, 4  ;;  %v2758_v12 = vshrl.u32 %v4854_v1, 16  ;;  %v4716_v13 = vld [vmem:[%s5387_s13 + $0x78] sm:$0xf] }
 0x126   : > { %v2221_v36 = vpop.permute.xlu1 %2220  ;;  %v1664_v29 = vsel %vm5398_vm2, %v1659_v18, %v1663_v19 }
 0x127   : > { %2316 = vst.msk [vmem:[#allocation2 + $0x4] sm:$0xf] %vm2314_vm12, %v2221_v36  ;;  %v2219_v40 = vpop.permute.xlu0 %2218  ;;  %v1654_v35 = vsel %vm5398_vm2, %v1649_v24, %v6132_v57  ;;  %v1673_v36 = vrot.slane %v1672_v25, 4  ;;  %v4856_v24 = vld [vmem:[%s5387_s13 + $0x74] sm:$0x1]  ;;  %v2760_v25 = vrot.slane %v2758_v12, 4 }
 0x128   : > { %2315 = vst.msk [vmem:[#allocation2] sm:$0xf] %vm2314_vm12, %v2219_v40  ;;  %2995 = vrot.lane.b32.xlu1 %v2732_v31, %s5291_s10  ;;  %v1687_v31 = vrot.slane %v1685_v21, 5  ;;  %v2157_v40 = vrot.slane %v4759_v33, 5 }
 0x129   : > { %2993 = vrot.lane.b32.xlu0 %v2722_v37, %s5291_s10  ;;  %v4757_v37 = vld [vmem:[%s5387_s13 + $0x5c] sm:$0x1]  ;;  %v1678_v47 = vsel %vm5398_vm2, %v1673_v36, %v6141_v8  ;;  %v2771_v8 = vshrl.u32 %v4855_v63, 16  ;;  %v4815_v36 = vld [vmem:[%s5387_s13 + $0x6c] sm:$0xf] }
 0x12a   : > { %v2225_v48 = vpop.permute.xlu1 %2224  ;;  %v1688_v41 = vsel %vm5398_vm2, %v1683_v30, %v1687_v31  ;;  %v2153_v43 = vrot.slane %v4757_v37, 5  ;;  %v2159_v52 = vrot.slane %v2157_v40, 4  ;;  %v4816_v30 = vld [vmem:[%s5387_s13 + $0x70] sm:$0xf] }
 0x12b   : > { %2318 = vst.msk [vmem:[#allocation2 + $0xc] sm:$0xf] %vm2314_vm12, %v2225_v48  ;;  %v2223_v53 = vpop.permute.xlu0 %2222  ;;  %v4791_v48 = vrot.slane %v4755_v39, 9  ;;  %v2773_v21 = vrot.slane %v2771_v8, 4  ;;  %v4900_v39 = vld [vmem:[%s5387_s13 + $0x64] sm:$0xf] }
 0x12c   : > { %2317 = vst.msk [vmem:[#allocation2 + $0x8] sm:$0xf] %vm2314_vm12, %v2223_v53  ;;  %3328 = vrot.lane.b32.xlu1 %v3232_v45, %s5292_s14  ;;  %v4758_v45 = vld [vmem:[%s5387_s13 + $0x60] sm:$0xe]  ;;  %v2160_v53 = vrot.slane %v4760_v44, 5  ;;  %v3242_v44 = vrot.slane %v4900_v39, 5 }
 0x12d   : > { %3326 = vrot.lane.b32.xlu0 %v3229_v49, %s5292_s14  ;;  %v4852_v49 = vld [vmem:[%s5387_s13 + $0x64] sm:$0xf]  ;;  %v4792_v54 = vrot.slane %v4758_v45, 9  ;;  %v2151_v59 = vsel %vm5542_vm6, %v4791_v48, %v2150_v32  ;;  %v2774_v33 = vor.u32 %v2773_v21, %v2769_v20  ;;  %v4903_v45 = vld [vmem:[%s5387_s13 + $0x70] sm:$0xf] }
 0x12e   : > { %v2415_v61 = vpop.permute.xlu1 %2414  ;;  %v2747_v57 = vshrl.u32 %v4852_v49, 16  ;;  %v2161_v2 = vsel %vm5542_vm6, %v2159_v52, %v2160_v53  ;;  %v3249_v52 = vrot.slane %v4903_v45, 5  ;;  %v4715_v21 = vld [vmem:[%s5387_s13 + $0x74] sm:$0x1] }
 0x12f   : > { %2510 = vst.msk [vmem:[#allocation2 + $0x4] sm:$0xf] %vm2508_vm13, %v2415_v61  ;;  %v2413_v4 = vpop.permute.xlu0 %2412  ;;  %v2737_v61 = vshll.u32 %v4851_v51, 16  ;;  %v2158_v3 = vsel %vm5542_vm6, %v4792_v54, %v2157_v40  ;;  %v4899_v51 = vld [vmem:[%s5387_s13 + $0x60] sm:$0xe]  ;;  %v3244_v54 = vrot.slane %v3242_v44, 4 }
 0x130   : > { %2509 = vst.msk [vmem:[#allocation2] sm:$0xf] %vm2508_vm13, %v2413_v4  ;;  %3332 = vrot.lane.b32.xlu1 %v3239_v55, %s5292_s14  ;;  %v2154_v55 = vsel %vm5542_vm6, %v2152_v42, %v2153_v43  ;;  %v4853_v4 = vld [vmem:[%s5387_s13 + $0x68] sm:$0x1]  ;;  %v2749_v6 = vrot.slane %v2747_v57, 4  ;;  %v2775_v42 = vrot.slane %v2774_v33, 4 }
 0x131   : > { %3330 = vrot.lane.b32.xlu0 %v3236_v56, %s5292_s14  ;;  %v2743_v56 = vshll.u32 %v4852_v49, 16  ;;  %v2753_v19 = vshll.u32 %v4853_v4, 16  ;;  %v4901_v49 = vld [vmem:[%s5387_s13 + $0x68] sm:$0x1]  ;;  %v4902_v57 = vld [vmem:[%s5387_s13 + $0x6c] sm:$0xe] }
 0x132   : > { %v2419_v10 = vpop.permute.xlu1 %2418  ;;  %v3251_v1 = vrot.slane %v3249_v52, 4 }
 0x133   : > { %2512 = vst.msk [vmem:[#allocation2 + $0xc] sm:$0xf] %vm2508_vm13, %v2419_v10  ;;  %v2417_v16 = vpop.permute.xlu0 %2416  ;;  %v2736_v10 = vrot.slane %v2734_v60, 4  ;;  %v2755_v32 = vrot.slane %v2753_v19, 5  ;;  %v4935_v60 = vrot.slane %v4899_v51, 9 }
 0x134   : > { %2511 = vst.msk [vmem:[#allocation2 + $0x8] sm:$0xf] %vm2508_vm13, %v2417_v16  ;;  %1346 = vrot.lane.b32.xlu1 %v4670_v5, %s5287_s16  ;;  %v6197_v5 = vrot.slane %v2743_v56, 5  ;;  %v4814_v16 = vld [vmem:[%s5387_s13 + $0x64] sm:$0xf] }
 0x135   : > { %1344 = vrot.lane.b32.xlu0 %v4669_v11, %s5287_s16  ;;  %v2739_v11 = vrot.slane %v2737_v61, 5  ;;  %v4904_v56 = vld [vmem:[%s5387_s13 + $0x74] sm:$0x1]  ;;  %v4714_v61 = vld [vmem:[%s5387_s13 + $0x70] sm:$0xf]  ;;  %v3243_v8 = vsel %vm5542_vm6, %v4935_v60, %v3242_v44 }
 0x136   : > { %v2976_v22 = vpop.permute.xlu1 %2975  ;;  %v2750_v18 = vor.u32 %v2749_v6, %v6197_v5  ;;  %v1703_v6 = vshrl.u32 %v4714_v61, 16 }
 0x137   : > { %3071 = vst.msk [vmem:[#allocation2 + $0x4] sm:$0xf] %vm3069_vm14, %v2976_v22  ;;  %v2974_v28 = vpop.permute.xlu0 %2973 }
 0x138   : > { %3070 = vst.msk [vmem:[#allocation2] sm:$0xf] %vm3069_vm14, %v2974_v28  ;;  %1350 = vrot.lane.b32.xlu1 %v4672_v17, %s5287_s16  ;;  %v4813_v17 = vld [vmem:[%s5387_s13 + $0x60] sm:$0xf]  ;;  %v2751_v31 = vrot.slane %v2750_v18, 4 }
 0x139   : > { %1348 = vrot.lane.b32.xlu0 %v4671_v23, %s5287_s16  ;;  %v2740_v23 = vor.u32 %v2739_v11, %v2736_v10  ;;  %v4717_v11 = vld [vmem:[%s5387_s13 + $0x7c] sm:$0xf] }
 0x13a   : > { %v2980_v34 = vpop.permute.xlu1 %2979  ;;  %v1723_v18 = vshll.u32 %v4717_v11, 16  ;;  %v1727_v19 = vshrl.u32 %v4717_v11, 16 }
 0x13b   : > { %3073 = vst.msk [vmem:[#allocation2 + $0xc] sm:$0xf] %vm3069_vm14, %v2980_v34  ;;  %v2978_v38 = vpop.permute.xlu0 %2977  ;;  %v2777_v34 = vshll.u32 %v4856_v24, 16  ;;  %v2741_v37 = vrot.slane %v2740_v23, 4  ;;  %v1714_v24 = vshrl.u32 %v4716_v13, 16 }
 0x13c   : > { %3072 = vst.msk [vmem:[#allocation2 + $0x8] sm:$0xf] %vm3069_vm14, %v2978_v38  ;;  %1907 = vrot.lane.b32.xlu1 %v1664_v29, %s5288_s17  ;;  %v2764_v38 = vor.u32 %v2763_v26, %v2760_v25  ;;  %v1717_v25 = vshll.u32 %v4716_v13, 16 }
 0x13d   : > { %1905 = vrot.lane.b32.xlu0 %v1654_v35, %s5288_s17  ;;  %v2779_v43 = vrot.slane %v2777_v34, 5  ;;  %v4673_v34 = vld [vmem:[%s5387_s13 + $0x6c] sm:$0xf] }
 0x13e   : > { %v3313_v46 = vpop.permute.xlu1 %3312  ;;  %v2765_v48 = vrot.slane %v2764_v38, 4  ;;  %v1719_v38 = vrot.slane %v1717_v25, 5 }
 0x13f   : > { %3408 = vst.msk [vmem:[#allocation2 + $0x4] sm:$0xf] %vm3406_vm15, %v3313_v46  ;;  %v3311_v50 = vpop.permute.xlu0 %3310  ;;  %v2780_v53 = vsel %vm5398_vm2, %v2775_v42, %v2779_v43 }
 0x140   : > { %3407 = vst.msk [vmem:[#allocation2] sm:$0xf] %vm3406_vm15, %v3311_v50  ;;  %1911 = vrot.lane.b32.xlu1 %v1688_v41, %s5288_s17  ;;  %v2756_v41 = vsel %vm5398_vm2, %v2751_v31, %v2755_v32  ;;  %v1725_v31 = vrot.slane %v1723_v18, 5  ;;  %v1729_v32 = vrot.slane %v1727_v19, 4 }
 0x141   : > { %1909 = vrot.lane.b32.xlu0 %v1678_v47, %s5288_s17  ;;  %v2746_v47 = vsel %vm5398_vm2, %v2741_v37, %v6197_v5  ;;  %v1699_v5 = vshll.u32 %v4714_v61, 16  ;;  %v1716_v37 = vrot.slane %v1714_v24, 4  ;;  %v4761_v61 = vld [vmem:[%s5387_s13 + $0x6c] sm:$0xe] }
 0x142   : > { %v3317_v58 = vpop.permute.xlu1 %3316  ;;  %v1730_v43 = vor.u32 %v1729_v32, %v1725_v31 }
 0x143   : > { %3410 = vst.msk [vmem:[#allocation2 + $0xc] sm:$0xf] %vm3406_vm15, %v3317_v58  ;;  %v3315_v0 = vpop.permute.xlu0 %3314 }
 0x144   : > { %3409 = vst.msk [vmem:[#allocation2 + $0x8] sm:$0xf] %vm3406_vm15, %v3315_v0  ;;  %2244 = vrot.lane.b32.xlu1 %v2154_v55, %s5289_s18  ;;  %v3245_v55 = vrot.slane %v4901_v49, 5  ;;  %v4713_v0 = vld [vmem:[%s5387_s13 + $0x6c] sm:$0xf] }
 0x145   : > { %2242 = vrot.lane.b32.xlu0 %v2151_v59, %s5289_s18  ;;  %v2770_v59 = vsel %vm5398_vm2, %v2765_v48, %v2769_v20  ;;  %v1693_v10 = vshll.u32 %v4713_v0, 16  ;;  %v1720_v48 = vor.u32 %v1719_v38, %v1716_v37  ;;  %v4762_v49 = vld [vmem:[%s5387_s13 + $0x70] sm:$0xf] }
 0x146   : > { %v1331_v9 = vpop.permute.xlu1 %1330  ;;  %v3246_v4 = vsel %vm5542_vm6, %v3244_v54, %v3245_v55  ;;  %v2164_v54 = vrot.slane %v4762_v49, 5  ;;  %v4765_v55 = vld [vmem:[%s5387_s13 + $0x7c] sm:$0xf] }
 0x147   : > { %1422 = vst.msk [vmem:[#allocation2 + $0x14] sm:$0xf] %vm1416_vm10, %v1331_v9  ;;  %v1329_v14 = vpop.permute.xlu0 %1328  ;;  %v5171_v15 = vld [vmem:[#allocation2] sm:$0xff]   ;;  %v1690_v9 = vshrl.u32 %v4713_v0, 16  ;;  %v1695_v23 = vrot.slane %v1693_v10, 5 }
 0x148   : > { %1421 = vst.msk [vmem:[#allocation2 + $0x10] sm:$0xf] %vm1416_vm10, %v1329_v14  ;;  %2248 = vrot.lane.b32.xlu1 %v2161_v2, %s5289_s18  ;;  %5046 = vmatprep.mubr.msk.bf16.mxu0 %vm3571_vm0, %v5171_v15  ;;  %v3252_v2 = vrot.slane %v4904_v56, 5  ;;  %v4857_v10 = vld [vmem:[%s5387_s13 + $0x78] sm:$0xf]  ;;  %v5188_v62 = vld [vmem:[#allocation2] sm:$0xff]  }
 0x149   : > { %2246 = vrot.lane.b32.xlu0 %v2158_v3, %s5289_s18  ;;  %v4936_v3 = vrot.slane %v4902_v57, 9  ;;  %v2782_v19 = vshrl.u32 %v4857_v10, 16 }
 0x14a   : > { %v1335_v22 = vpop.permute.xlu1 %1334  ;;  %v3253_v14 = vsel %vm5542_vm6, %v3251_v1, %v3252_v2  ;;  %v2166_v1 = vrot.slane %v2164_v54, 4 }
 0x14b   : > { %1424 = vst.msk [vmem:[#allocation2 + $0x1c] sm:$0xf] %vm1416_vm10, %v1335_v22  ;;  %v1333_v28 = vpop.permute.xlu0 %1332  ;;  %v5172_v29 = vld [vmem:[#allocation2 + $0x8] sm:$0xff]   ;;  %v3250_v15 = vsel %vm5542_vm6, %v4936_v3, %v3249_v52  ;;  %v1692_v22 = vrot.slane %v1690_v9, 4  ;;  %v1731_v52 = vrot.slane %v1730_v43, 4 }
 0x14c   : > { %1423 = vst.msk [vmem:[#allocation2 + $0x18] sm:$0xf] %vm1416_vm10, %v1333_v28  ;;  %2438 = vrot.lane.b32.xlu1 %v4814_v16, %s5290_s19  ;;  %5047 = vmatmul.mubr.msk.bf16.vlgmr.msra.gmra.mxu0 %vm3571_vm0, %v5172_v29  ;;  %v1701_v16 = vrot.slane %v1699_v5, 5  ;;  %v4674_v28 = vld [vmem:[%s5387_s13 + $0x70] sm:$0xf] }
 0x14d   : > { %2436 = vrot.lane.b32.xlu0 %v4813_v17, %s5290_s19  ;;  %v1705_v17 = vrot.slane %v1703_v6, 4  ;;  %v4766_v3 = vld [vmem:[%s5387_s13 + $0x80] sm:$0x1] }
 0x14e   : > { %v1892_v35 = vpop.permute.xlu1 %1891 }
 0x14f   : > { %1983 = vst.msk [vmem:[#allocation2 + $0x14] sm:$0xf] %vm1977_vm11, %v1892_v35  ;;  %v1890_v40 = vpop.permute.xlu0 %1889  ;;  %v1706_v29 = vor.u32 %v1705_v17, %v1701_v16  ;;  %v1696_v35 = vor.u32 %v1695_v23, %v1692_v22  ;;  %v4860_v23 = vld [vmem:[%s5387_s13 + $0x84] sm:$0xf] }
 0x150   : > { %1982 = vst.msk [vmem:[#allocation2 + $0x10] sm:$0xf] %vm1977_vm11, %v1890_v40  ;;  %2442 = vrot.lane.b32.xlu1 %v4816_v30, %s5290_s19  ;;  %v1709_v30 = vshll.u32 %v4715_v21, 16  ;;  %v4676_v40 = vld [vmem:[%s5387_s13 + $0x7c] sm:$0xf] }
 0x151   : > { %2440 = vrot.lane.b32.xlu0 %v4815_v36, %s5290_s19  ;;  %v4718_v36 = vld [vmem:[%s5387_s13 + $0x80] sm:$0x1]  ;;  %v4861_v21 = vld [vmem:[%s5387_s13 + $0x88] sm:$0xf] }
 0x152   : > { %v1896_v46 = vpop.permute.xlu1 %1895  ;;  %v1711_v42 = vrot.slane %v1709_v30, 5  ;;  %v1733_v44 = vshll.u32 %v4718_v36, 16  ;;  %v2815_v30 = vshll.u32 %v4861_v21, 16  ;;  %v2809_v36 = vshll.u32 %v4860_v23, 16 }
 0x153   : > { %1985 = vst.msk [vmem:[#allocation2 + $0x1c] sm:$0xf] %vm1977_vm11, %v1896_v46  ;;  %v1894_v50 = vpop.permute.xlu0 %1893  ;;  %v4675_v46 = vld [vmem:[%s5387_s13 + $0x78] sm:$0xf] }
 0x154   : > { %1984 = vst.msk [vmem:[#allocation2 + $0x18] sm:$0xf] %vm1977_vm11, %v1894_v50  ;;  %2999 = vrot.lane.b32.xlu1 %v2756_v41, %s5291_s10  ;;  %v1707_v41 = vrot.slane %v1706_v29, 4  ;;  %v2817_v43 = vrot.slane %v2815_v30, 5  ;;  %v2811_v49 = vrot.slane %v2809_v36, 5 }
 0x155   : > { %2997 = vrot.lane.b32.xlu0 %v2746_v47, %s5291_s10  ;;  %v1697_v47 = vrot.slane %v1696_v35, 4  ;;  %v2806_v35 = vshrl.u32 %v4860_v23, 16  ;;  %v4722_v36 = vld [vmem:[%s5387_s13 + $0x90] sm:$0xf] }
 0x156   : > { %v2229_v58 = vpop.permute.xlu1 %2228  ;;  %v1712_v51 = vsel %vm5398_vm2, %v1707_v41, %v1711_v42 }
 0x157   : > { %2320 = vst.msk [vmem:[#allocation2 + $0x14] sm:$0xf] %vm2314_vm12, %v2229_v58  ;;  %v2227_v63 = vpop.permute.xlu0 %2226  ;;  %v1702_v57 = vsel %vm5398_vm2, %v1697_v47, %v1701_v16  ;;  %v1721_v58 = vrot.slane %v1720_v48, 4  ;;  %v4862_v47 = vld [vmem:[%s5387_s13 + $0x8c] sm:$0x1]  ;;  %v2808_v48 = vrot.slane %v2806_v35, 4 }
 0x158   : > { %2319 = vst.msk [vmem:[#allocation2 + $0x10] sm:$0xf] %vm2314_vm12, %v2227_v63  ;;  %3003 = vrot.lane.b32.xlu1 %v2780_v53, %s5291_s10  ;;  %v1735_v53 = vrot.slane %v1733_v44, 5  ;;  %v2171_v63 = vrot.slane %v4765_v55, 5 }
 0x159   : > { %3001 = vrot.lane.b32.xlu0 %v2770_v59, %s5291_s10  ;;  %v4763_v59 = vld [vmem:[%s5387_s13 + $0x74] sm:$0x1]  ;;  %v1726_v6 = vsel %vm5398_vm2, %v1721_v58, %v1725_v31  ;;  %v2819_v31 = vshrl.u32 %v4861_v21, 16  ;;  %v4819_v58 = vld [vmem:[%s5387_s13 + $0x84] sm:$0xf] }
 0x15a   : > { %v2233_v7 = vpop.permute.xlu1 %2232  ;;  %v1736_v0 = vsel %vm5398_vm2, %v1731_v52, %v1735_v53  ;;  %v2167_v2 = vrot.slane %v4763_v59, 5  ;;  %v2173_v11 = vrot.slane %v2171_v63, 4  ;;  %v4820_v52 = vld [vmem:[%s5387_s13 + $0x88] sm:$0xf] }
 0x15b   : > { %2322 = vst.msk [vmem:[#allocation2 + $0x1c] sm:$0xf] %vm2314_vm12, %v2233_v7  ;;  %v2231_v12 = vpop.permute.xlu0 %2230  ;;  %v4793_v7 = vrot.slane %v4761_v61, 9  ;;  %v2821_v44 = vrot.slane %v2819_v31, 4  ;;  %v4906_v61 = vld [vmem:[%s5387_s13 + $0x7c] sm:$0xf] }
 0x15c   : > { %2321 = vst.msk [vmem:[#allocation2 + $0x18] sm:$0xf] %vm2314_vm12, %v2231_v12  ;;  %3336 = vrot.lane.b32.xlu1 %v3246_v4, %s5292_s14  ;;  %v4764_v4 = vld [vmem:[%s5387_s13 + $0x78] sm:$0xe]  ;;  %v2174_v12 = vrot.slane %v4766_v3, 5  ;;  %v3256_v3 = vrot.slane %v4906_v61, 5 }
 0x15d   : > { %3334 = vrot.lane.b32.xlu0 %v3243_v8, %s5292_s14  ;;  %v4858_v8 = vld [vmem:[%s5387_s13 + $0x7c] sm:$0xf]  ;;  %v4794_v13 = vrot.slane %v4764_v4, 9  ;;  %v2165_v18 = vsel %vm5542_vm6, %v4793_v7, %v2164_v54  ;;  %v2822_v55 = vor.u32 %v2821_v44, %v2817_v43  ;;  %v4909_v4 = vld [vmem:[%s5387_s13 + $0x88] sm:$0xf] }
 0x15e   : > { %v2423_v20 = vpop.permute.xlu1 %2422  ;;  %v2795_v16 = vshrl.u32 %v4858_v8, 16  ;;  %v2175_v24 = vsel %vm5542_vm6, %v2173_v11, %v2174_v12  ;;  %v3263_v11 = vrot.slane %v4909_v4, 5  ;;  %v4721_v44 = vld [vmem:[%s5387_s13 + $0x8c] sm:$0x1] }
 0x15f   : > { %2514 = vst.msk [vmem:[#allocation2 + $0x14] sm:$0xf] %vm2508_vm13, %v2423_v20  ;;  %v2421_v26 = vpop.permute.xlu0 %2420  ;;  %v2785_v20 = vshll.u32 %v4857_v10, 16  ;;  %v2172_v25 = vsel %vm5542_vm6, %v4794_v13, %v2171_v63  ;;  %v4905_v10 = vld [vmem:[%s5387_s13 + $0x78] sm:$0xe]  ;;  %v3258_v13 = vrot.slane %v3256_v3, 4 }
 0x160   : > { %2513 = vst.msk [vmem:[#allocation2 + $0x10] sm:$0xf] %vm2508_vm13, %v2421_v26  ;;  %3340 = vrot.lane.b32.xlu1 %v3253_v14, %s5292_s14  ;;  %v2168_v14 = vsel %vm5542_vm6, %v2166_v1, %v2167_v2  ;;  %v4859_v26 = vld [vmem:[%s5387_s13 + $0x80] sm:$0x1]  ;;  %v2797_v29 = vrot.slane %v2795_v16, 4  ;;  %v2823_v1 = vrot.slane %v2822_v55, 4 }
 0x161   : > { %3338 = vrot.lane.b32.xlu0 %v3250_v15, %s5292_s14  ;;  %v2791_v15 = vshll.u32 %v4858_v8, 16  ;;  %v2801_v42 = vshll.u32 %v4859_v26, 16  ;;  %v4907_v8 = vld [vmem:[%s5387_s13 + $0x80] sm:$0x1]  ;;  %v4908_v16 = vld [vmem:[%s5387_s13 + $0x84] sm:$0xe] }
 0x162   : > { %v2427_v33 = vpop.permute.xlu1 %2426  ;;  %v3265_v23 = vrot.slane %v3263_v11, 4 }
 0x163   : > { %2516 = vst.msk [vmem:[#allocation2 + $0x1c] sm:$0xf] %vm2508_vm13, %v2427_v33  ;;  %v2425_v39 = vpop.permute.xlu0 %2424  ;;  %v2784_v33 = vrot.slane %v2782_v19, 4  ;;  %v2803_v54 = vrot.slane %v2801_v42, 5  ;;  %v4937_v19 = vrot.slane %v4905_v10, 9 }
 0x164   : > { %2515 = vst.msk [vmem:[#allocation2 + $0x18] sm:$0xf] %vm2508_vm13, %v2425_v39  ;;  %1354 = vrot.lane.b32.xlu1 %v4674_v28, %s5287_s16  ;;  %v6315_v28 = vrot.slane %v2791_v15, 5  ;;  %v4818_v39 = vld [vmem:[%s5387_s13 + $0x7c] sm:$0xf] }
 0x165   : > { %1352 = vrot.lane.b32.xlu0 %v4673_v34, %s5287_s16  ;;  %v2787_v34 = vrot.slane %v2785_v20, 5  ;;  %v4910_v15 = vld [vmem:[%s5387_s13 + $0x8c] sm:$0x1]  ;;  %v4720_v20 = vld [vmem:[%s5387_s13 + $0x88] sm:$0xf]  ;;  %v3257_v31 = vsel %vm5542_vm6, %v4937_v19, %v3256_v3 }
 0x166   : > { %v2984_v45 = vpop.permute.xlu1 %2983  ;;  %v2798_v41 = vor.u32 %v2797_v29, %v6315_v28  ;;  %v1751_v29 = vshrl.u32 %v4720_v20, 16 }
 0x167   : > { %3075 = vst.msk [vmem:[#allocation2 + $0x14] sm:$0xf] %vm3069_vm14, %v2984_v45  ;;  %v2982_v50 = vpop.permute.xlu0 %2981 }
 0x168   : > { %3074 = vst.msk [vmem:[#allocation2 + $0x10] sm:$0xf] %vm3069_vm14, %v2982_v50  ;;  %1358 = vrot.lane.b32.xlu1 %v4676_v40, %s5287_s16  ;;  %v4817_v40 = vld [vmem:[%s5387_s13 + $0x78] sm:$0xf]  ;;  %v2799_v53 = vrot.slane %v2798_v41, 4 }
 0x169   : > { %1356 = vrot.lane.b32.xlu0 %v4675_v46, %s5287_s16  ;;  %v2788_v46 = vor.u32 %v2787_v34, %v2784_v33  ;;  %v4723_v34 = vld [vmem:[%s5387_s13 + $0x94] sm:$0xf] }
 0x16a   : > { %v2988_v56 = vpop.permute.xlu1 %2987  ;;  %v1771_v41 = vshll.u32 %v4723_v34, 16  ;;  %v1775_v42 = vshrl.u32 %v4723_v34, 16 }
 0x16b   : > { %3077 = vst.msk [vmem:[#allocation2 + $0x1c] sm:$0xf] %vm3069_vm14, %v2988_v56  ;;  %v2986_v60 = vpop.permute.xlu0 %2985  ;;  %v2825_v56 = vshll.u32 %v4862_v47, 16  ;;  %v2789_v59 = vrot.slane %v2788_v46, 4  ;;  %v1762_v47 = vshrl.u32 %v4722_v36, 16 }
 0x16c   : > { %3076 = vst.msk [vmem:[#allocation2 + $0x18] sm:$0xf] %vm3069_vm14, %v2986_v60  ;;  %1915 = vrot.lane.b32.xlu1 %v1712_v51, %s5288_s17  ;;  %v2812_v60 = vor.u32 %v2811_v49, %v2808_v48  ;;  %v1765_v48 = vshll.u32 %v4722_v36, 16 }
 0x16d   : > { %1913 = vrot.lane.b32.xlu0 %v1702_v57, %s5288_s17  ;;  %v2827_v2 = vrot.slane %v2825_v56, 5  ;;  %v4677_v56 = vld [vmem:[%s5387_s13 + $0x84] sm:$0xf] }
 0x16e   : > { %v3321_v5 = vpop.permute.xlu1 %3320  ;;  %v2813_v7 = vrot.slane %v2812_v60, 4  ;;  %v1767_v60 = vrot.slane %v1765_v48, 5 }
 0x16f   : > { %3412 = vst.msk [vmem:[#allocation2 + $0x14] sm:$0xf] %vm3406_vm15, %v3321_v5  ;;  %v3319_v9 = vpop.permute.xlu0 %3318  ;;  %v2828_v12 = vsel %vm5398_vm2, %v2823_v1, %v2827_v2 }
 0x170   : > { %3411 = vst.msk [vmem:[#allocation2 + $0x10] sm:$0xf] %vm3406_vm15, %v3319_v9  ;;  %1919 = vrot.lane.b32.xlu1 %v1736_v0, %s5288_s17  ;;  %v2804_v0 = vsel %vm5398_vm2, %v2799_v53, %v2803_v54  ;;  %v1773_v53 = vrot.slane %v1771_v41, 5  ;;  %v1777_v54 = vrot.slane %v1775_v42, 4 }
 0x171   : > { %1917 = vrot.lane.b32.xlu0 %v1726_v6, %s5288_s17  ;;  %v2794_v6 = vsel %vm5398_vm2, %v2789_v59, %v6315_v28  ;;  %v1747_v28 = vshll.u32 %v4720_v20, 16  ;;  %v1764_v59 = vrot.slane %v1762_v47, 4  ;;  %v4767_v20 = vld [vmem:[%s5387_s13 + $0x84] sm:$0xe] }
 0x172   : > { %v3325_v17 = vpop.permute.xlu1 %3324  ;;  %v1778_v2 = vor.u32 %v1777_v54, %v1773_v53 }
 0x173   : > { %3414 = vst.msk [vmem:[#allocation2 + $0x1c] sm:$0xf] %vm3406_vm15, %v3325_v17  ;;  %v3323_v22 = vpop.permute.xlu0 %3322 }
 0x174   : > { %3413 = vst.msk [vmem:[#allocation2 + $0x18] sm:$0xf] %vm3406_vm15, %v3323_v22  ;;  %2252 = vrot.lane.b32.xlu1 %v2168_v14, %s5289_s18  ;;  %v3259_v14 = vrot.slane %v4907_v8, 5  ;;  %v4719_v22 = vld [vmem:[%s5387_s13 + $0x84] sm:$0xf] }
 0x175   : > { %2250 = vrot.lane.b32.xlu0 %v2165_v18, %s5289_s18  ;;  %v2818_v18 = vsel %vm5398_vm2, %v2813_v7, %v2817_v43  ;;  %v1741_v33 = vshll.u32 %v4719_v22, 16  ;;  %v1768_v7 = vor.u32 %v1767_v60, %v1764_v59  ;;  %v4768_v8 = vld [vmem:[%s5387_s13 + $0x88] sm:$0xf] }
 0x176   : > { %v1339_v32 = vpop.permute.xlu1 %1338  ;;  %v3260_v26 = vsel %vm5542_vm6, %v3258_v13, %v3259_v14  ;;  %v2178_v13 = vrot.slane %v4768_v8, 5  ;;  %v4771_v14 = vld [vmem:[%s5387_s13 + $0x94] sm:$0xf] }
 0x177   : > { %1426 = vst.msk [vmem:[#allocation2 + $0x24] sm:$0xf] %vm1416_vm10, %v1339_v32  ;;  %v1337_v37 = vpop.permute.xlu0 %1336  ;;  %v5173_v38 = vld [vmem:[#allocation2 + $0x10] sm:$0xff]   ;;  %v1738_v32 = vshrl.u32 %v4719_v22, 16  ;;  %v1743_v46 = vrot.slane %v1741_v33, 5 }
 0x178   : > { %1425 = vst.msk [vmem:[#allocation2 + $0x20] sm:$0xf] %vm1416_vm10, %v1337_v37  ;;  %2256 = vrot.lane.b32.xlu1 %v2175_v24, %s5289_s18  ;;  %5050 = vmatprep.mubr.msk.bf16.mxu0 %vm3571_vm0, %v5173_v38  ;;  %v3266_v24 = vrot.slane %v4910_v15, 5  ;;  %v4863_v33 = vld [vmem:[%s5387_s13 + $0x90] sm:$0xf] }
 0x179   : > { %2254 = vrot.lane.b32.xlu0 %v2172_v25, %s5289_s18  ;;  %v4938_v25 = vrot.slane %v4908_v16, 9  ;;  %v2830_v42 = vshrl.u32 %v4863_v33, 16 }
 0x17a   : > { %v1343_v45 = vpop.permute.xlu1 %1342  ;;  %v3267_v37 = vsel %vm5542_vm6, %v3265_v23, %v3266_v24  ;;  %v2180_v23 = vrot.slane %v2178_v13, 4 }
 0x17b   : > { %1428 = vst.msk [vmem:[#allocation2 + $0x2c] sm:$0xf] %vm1416_vm10, %v1343_v45  ;;  %v1341_v50 = vpop.permute.xlu0 %1340  ;;  %v5174_v51 = vld [vmem:[#allocation2 + $0x18] sm:$0xff]   ;;  %v3264_v38 = vsel %vm5542_vm6, %v4938_v25, %v3263_v11  ;;  %v1740_v45 = vrot.slane %v1738_v32, 4  ;;  %v1779_v11 = vrot.slane %v1778_v2, 4 }
 0x17c   : > { %1427 = vst.msk [vmem:[#allocation2 + $0x28] sm:$0xf] %vm1416_vm10, %v1341_v50  ;;  %2446 = vrot.lane.b32.xlu1 %v4818_v39, %s5290_s19  ;;  %5051 = vmatmul.mubr.msk.bf16.gmra.mxu0 %vm3571_vm0, %v5174_v51  ;;  %v1749_v39 = vrot.slane %v1747_v28, 5  ;;  %v4678_v50 = vld [vmem:[%s5387_s13 + $0x88] sm:$0xf] }
 0x17d   : > { %2444 = vrot.lane.b32.xlu0 %v4817_v40, %s5290_s19  ;;  %v1753_v40 = vrot.slane %v1751_v29, 4  ;;  %v4772_v25 = vld [vmem:[%s5387_s13 + $0x98] sm:$0x1] }
 0x17e   : > { %v1900_v57 = vpop.permute.xlu1 %1899 }
 0x17f   : > { %1987 = vst.msk [vmem:[#allocation2 + $0x24] sm:$0xf] %vm1977_vm11, %v1900_v57  ;;  %v1898_v63 = vpop.permute.xlu0 %1897  ;;  %v1754_v51 = vor.u32 %v1753_v40, %v1749_v39  ;;  %v1744_v57 = vor.u32 %v1743_v46, %v1740_v45  ;;  %v4866_v46 = vld [vmem:[%s5387_s13 + $0x9c] sm:$0xf] }
 0x180   : > { %1986 = vst.msk [vmem:[#allocation2 + $0x20] sm:$0xf] %vm1977_vm11, %v1898_v63  ;;  %2450 = vrot.lane.b32.xlu1 %v4820_v52, %s5290_s19  ;;  %v1757_v52 = vshll.u32 %v4721_v44, 16  ;;  %v4680_v63 = vld [vmem:[%s5387_s13 + $0x94] sm:$0xf] }
 0x181   : > { %2448 = vrot.lane.b32.xlu0 %v4819_v58, %s5290_s19  ;;  %v4724_v58 = vld [vmem:[%s5387_s13 + $0x98] sm:$0x1]  ;;  %v4867_v44 = vld [vmem:[%s5387_s13 + $0xa0] sm:$0xf] }
 0x182   : > { %v1904_v5 = vpop.permute.xlu1 %1903  ;;  %v1759_v1 = vrot.slane %v1757_v52, 5  ;;  %v1781_v3 = vshll.u32 %v4724_v58, 16  ;;  %v2863_v52 = vshll.u32 %v4867_v44, 16  ;;  %v2857_v58 = vshll.u32 %v4866_v46, 16 }
 0x183   : > { %1989 = vst.msk [vmem:[#allocation2 + $0x2c] sm:$0xf] %vm1977_vm11, %v1904_v5  ;;  %v1902_v9 = vpop.permute.xlu0 %1901  ;;  %v4679_v5 = vld [vmem:[%s5387_s13 + $0x90] sm:$0xf] }
 0x184   : > { %1988 = vst.msk [vmem:[#allocation2 + $0x28] sm:$0xf] %vm1977_vm11, %v1902_v9  ;;  %3007 = vrot.lane.b32.xlu1 %v2804_v0, %s5291_s10  ;;  %v1755_v0 = vrot.slane %v1754_v51, 4  ;;  %v2865_v2 = vrot.slane %v2863_v52, 5  ;;  %v2859_v8 = vrot.slane %v2857_v58, 5 }
 0x185   : > { %3005 = vrot.lane.b32.xlu0 %v2794_v6, %s5291_s10  ;;  %v1745_v6 = vrot.slane %v1744_v57, 4  ;;  %v2854_v57 = vshrl.u32 %v4866_v46, 16  ;;  %v4728_v58 = vld [vmem:[%s5387_s13 + $0xa8] sm:$0xf] }
 0x186   : > { %v2237_v17 = vpop.permute.xlu1 %2236  ;;  %v1760_v10 = vsel %vm5398_vm2, %v1755_v0, %v1759_v1 }
 0x187   : > { %2324 = vst.msk [vmem:[#allocation2 + $0x24] sm:$0xf] %vm2314_vm12, %v2237_v17  ;;  %v2235_v21 = vpop.permute.xlu0 %2234  ;;  %v1750_v16 = vsel %vm5398_vm2, %v1745_v6, %v1749_v39  ;;  %v1769_v17 = vrot.slane %v1768_v7, 4  ;;  %v4868_v6 = vld [vmem:[%s5387_s13 + $0xa4] sm:$0x1]  ;;  %v2856_v7 = vrot.slane %v2854_v57, 4 }
 0x188   : > { %2323 = vst.msk [vmem:[#allocation2 + $0x20] sm:$0xf] %vm2314_vm12, %v2235_v21  ;;  %3011 = vrot.lane.b32.xlu1 %v2828_v12, %s5291_s10  ;;  %v1783_v12 = vrot.slane %v1781_v3, 5  ;;  %v2185_v21 = vrot.slane %v4771_v14, 5 }
 0x189   : > { %3009 = vrot.lane.b32.xlu0 %v2818_v18, %s5291_s10  ;;  %v4769_v18 = vld [vmem:[%s5387_s13 + $0x8c] sm:$0x1]  ;;  %v1774_v29 = vsel %vm5398_vm2, %v1769_v17, %v1773_v53  ;;  %v2867_v53 = vshrl.u32 %v4867_v44, 16  ;;  %v4823_v17 = vld [vmem:[%s5387_s13 + $0x9c] sm:$0xf] }
 0x18a   : > { %v2241_v30 = vpop.permute.xlu1 %2240  ;;  %v1784_v22 = vsel %vm5398_vm2, %v1779_v11, %v1783_v12  ;;  %v2181_v24 = vrot.slane %v4769_v18, 5  ;;  %v2187_v34 = vrot.slane %v2185_v21, 4  ;;  %v4824_v11 = vld [vmem:[%s5387_s13 + $0xa0] sm:$0xf] }
 0x18b   : > { %2326 = vst.msk [vmem:[#allocation2 + $0x2c] sm:$0xf] %vm2314_vm12, %v2241_v30  ;;  %v2239_v35 = vpop.permute.xlu0 %2238  ;;  %v4795_v30 = vrot.slane %v4767_v20, 9  ;;  %v2869_v3 = vrot.slane %v2867_v53, 4  ;;  %v4912_v20 = vld [vmem:[%s5387_s13 + $0x94] sm:$0xf] }
 0x18c   : > { %2325 = vst.msk [vmem:[#allocation2 + $0x28] sm:$0xf] %vm2314_vm12, %v2239_v35  ;;  %3344 = vrot.lane.b32.xlu1 %v3260_v26, %s5292_s14  ;;  %v4770_v26 = vld [vmem:[%s5387_s13 + $0x90] sm:$0xe]  ;;  %v2188_v35 = vrot.slane %v4772_v25, 5  ;;  %v3270_v25 = vrot.slane %v4912_v20, 5 }
 0x18d   : > { %3342 = vrot.lane.b32.xlu0 %v3257_v31, %s5292_s14  ;;  %v4864_v31 = vld [vmem:[%s5387_s13 + $0x94] sm:$0xf]  ;;  %v4796_v36 = vrot.slane %v4770_v26, 9  ;;  %v2179_v41 = vsel %vm5542_vm6, %v4795_v30, %v2178_v13  ;;  %v2870_v14 = vor.u32 %v2869_v3, %v2865_v2  ;;  %v4915_v26 = vld [vmem:[%s5387_s13 + $0xa0] sm:$0xf] }
 0x18e   : > { %v2431_v43 = vpop.permute.xlu1 %2430  ;;  %v2843_v39 = vshrl.u32 %v4864_v31, 16  ;;  %v2189_v47 = vsel %vm5542_vm6, %v2187_v34, %v2188_v35  ;;  %v3277_v34 = vrot.slane %v4915_v26, 5  ;;  %v4727_v3 = vld [vmem:[%s5387_s13 + $0xa4] sm:$0x1] }
 0x18f   : > { %2518 = vst.msk [vmem:[#allocation2 + $0x24] sm:$0xf] %vm2508_vm13, %v2431_v43  ;;  %v2429_v49 = vpop.permute.xlu0 %2428  ;;  %v2833_v43 = vshll.u32 %v4863_v33, 16  ;;  %v2186_v48 = vsel %vm5542_vm6, %v4796_v36, %v2185_v21  ;;  %v4911_v33 = vld [vmem:[%s5387_s13 + $0x90] sm:$0xe]  ;;  %v3272_v36 = vrot.slane %v3270_v25, 4 }
 0x190   : > { %2517 = vst.msk [vmem:[#allocation2 + $0x20] sm:$0xf] %vm2508_vm13, %v2429_v49  ;;  %3348 = vrot.lane.b32.xlu1 %v3267_v37, %s5292_s14  ;;  %v2182_v37 = vsel %vm5542_vm6, %v2180_v23, %v2181_v24  ;;  %v4865_v49 = vld [vmem:[%s5387_s13 + $0x98] sm:$0x1]  ;;  %v2845_v51 = vrot.slane %v2843_v39, 4  ;;  %v2871_v23 = vrot.slane %v2870_v14, 4 }
 0x191   : > { %3346 = vrot.lane.b32.xlu0 %v3264_v38, %s5292_s14  ;;  %v2839_v38 = vshll.u32 %v4864_v31, 16  ;;  %v2849_v1 = vshll.u32 %v4865_v49, 16  ;;  %v4913_v31 = vld [vmem:[%s5387_s13 + $0x98] sm:$0x1]  ;;  %v4914_v39 = vld [vmem:[%s5387_s13 + $0x9c] sm:$0xe] }
 0x192   : > { %v2435_v55 = vpop.permute.xlu1 %2434  ;;  %v3279_v46 = vrot.slane %v3277_v34, 4 }
 0x193   : > { %2520 = vst.msk [vmem:[#allocation2 + $0x2c] sm:$0xf] %vm2508_vm13, %v2435_v55  ;;  %v2433_v61 = vpop.permute.xlu0 %2432  ;;  %v2832_v55 = vrot.slane %v2830_v42, 4  ;;  %v2851_v13 = vrot.slane %v2849_v1, 5  ;;  %v4939_v42 = vrot.slane %v4911_v33, 9 }
 0x194   : > { %2519 = vst.msk [vmem:[#allocation2 + $0x28] sm:$0xf] %vm2508_vm13, %v2433_v61  ;;  %1362 = vrot.lane.b32.xlu1 %v4678_v50, %s5287_s16  ;;  %v6433_v50 = vrot.slane %v2839_v38, 5  ;;  %v4822_v61 = vld [vmem:[%s5387_s13 + $0x94] sm:$0xf] }
 0x195   : > { %1360 = vrot.lane.b32.xlu0 %v4677_v56, %s5287_s16  ;;  %v2835_v56 = vrot.slane %v2833_v43, 5  ;;  %v4916_v38 = vld [vmem:[%s5387_s13 + $0xa4] sm:$0x1]  ;;  %v4726_v43 = vld [vmem:[%s5387_s13 + $0xa0] sm:$0xf]  ;;  %v3271_v53 = vsel %vm5542_vm6, %v4939_v42, %v3270_v25 }
 0x196   : > { %v2992_v4 = vpop.permute.xlu1 %2991  ;;  %v2846_v0 = vor.u32 %v2845_v51, %v6433_v50  ;;  %v1799_v51 = vshrl.u32 %v4726_v43, 16 }
 0x197   : > { %3079 = vst.msk [vmem:[#allocation2 + $0x24] sm:$0xf] %vm3069_vm14, %v2992_v4  ;;  %v2990_v9 = vpop.permute.xlu0 %2989 }
 0x198   : > { %3078 = vst.msk [vmem:[#allocation2 + $0x20] sm:$0xf] %vm3069_vm14, %v2990_v9  ;;  %1366 = vrot.lane.b32.xlu1 %v4680_v63, %s5287_s16  ;;  %v4821_v63 = vld [vmem:[%s5387_s13 + $0x90] sm:$0xf]  ;;  %v2847_v12 = vrot.slane %v2846_v0, 4 }
 0x199   : > { %1364 = vrot.lane.b32.xlu0 %v4679_v5, %s5287_s16  ;;  %v2836_v5 = vor.u32 %v2835_v56, %v2832_v55  ;;  %v4729_v56 = vld [vmem:[%s5387_s13 + $0xac] sm:$0xf] }
 0x19a   : > { %v2996_v15 = vpop.permute.xlu1 %2995  ;;  %v1819_v0 = vshll.u32 %v4729_v56, 16  ;;  %v1823_v1 = vshrl.u32 %v4729_v56, 16 }
 0x19b   : > { %3081 = vst.msk [vmem:[#allocation2 + $0x2c] sm:$0xf] %vm3069_vm14, %v2996_v15  ;;  %v2994_v19 = vpop.permute.xlu0 %2993  ;;  %v2873_v15 = vshll.u32 %v4868_v6, 16  ;;  %v2837_v18 = vrot.slane %v2836_v5, 4  ;;  %v1810_v6 = vshrl.u32 %v4728_v58, 16 }
 0x19c   : > { %3080 = vst.msk [vmem:[#allocation2 + $0x28] sm:$0xf] %vm3069_vm14, %v2994_v19  ;;  %1923 = vrot.lane.b32.xlu1 %v1760_v10, %s5288_s17  ;;  %v2860_v19 = vor.u32 %v2859_v8, %v2856_v7  ;;  %v1813_v7 = vshll.u32 %v4728_v58, 16 }
 0x19d   : > { %1921 = vrot.lane.b32.xlu0 %v1750_v16, %s5288_s17  ;;  %v2875_v24 = vrot.slane %v2873_v15, 5  ;;  %v4681_v15 = vld [vmem:[%s5387_s13 + $0x9c] sm:$0xf] }
 0x19e   : > { %v3329_v28 = vpop.permute.xlu1 %3328  ;;  %v2861_v30 = vrot.slane %v2860_v19, 4  ;;  %v1815_v19 = vrot.slane %v1813_v7, 5 }
 0x19f   : > { %3416 = vst.msk [vmem:[#allocation2 + $0x24] sm:$0xf] %vm3406_vm15, %v3329_v28  ;;  %v3327_v32 = vpop.permute.xlu0 %3326  ;;  %v2876_v35 = vsel %vm5398_vm2, %v2871_v23, %v2875_v24 }
 0x1a0   : > { %3415 = vst.msk [vmem:[#allocation2 + $0x20] sm:$0xf] %vm3406_vm15, %v3327_v32  ;;  %1927 = vrot.lane.b32.xlu1 %v1784_v22, %s5288_s17  ;;  %v2852_v22 = vsel %vm5398_vm2, %v2847_v12, %v2851_v13  ;;  %v1821_v12 = vrot.slane %v1819_v0, 5  ;;  %v1825_v13 = vrot.slane %v1823_v1, 4 }
 0x1a1   : > { %1925 = vrot.lane.b32.xlu0 %v1774_v29, %s5288_s17  ;;  %v2842_v29 = vsel %vm5398_vm2, %v2837_v18, %v6433_v50  ;;  %v1795_v50 = vshll.u32 %v4726_v43, 16  ;;  %v1812_v18 = vrot.slane %v1810_v6, 4  ;;  %v4773_v43 = vld [vmem:[%s5387_s13 + $0x9c] sm:$0xe] }
 0x1a2   : > { %v3333_v40 = vpop.permute.xlu1 %3332  ;;  %v1826_v24 = vor.u32 %v1825_v13, %v1821_v12 }
 0x1a3   : > { %3418 = vst.msk [vmem:[#allocation2 + $0x2c] sm:$0xf] %vm3406_vm15, %v3333_v40  ;;  %v3331_v45 = vpop.permute.xlu0 %3330 }
 0x1a4   : > { %3417 = vst.msk [vmem:[#allocation2 + $0x28] sm:$0xf] %vm3406_vm15, %v3331_v45  ;;  %2260 = vrot.lane.b32.xlu1 %v2182_v37, %s5289_s18  ;;  %v3273_v37 = vrot.slane %v4913_v31, 5  ;;  %v4725_v45 = vld [vmem:[%s5387_s13 + $0x9c] sm:$0xf] }
 0x1a5   : > { %2258 = vrot.lane.b32.xlu0 %v2179_v41, %s5289_s18  ;;  %v2866_v41 = vsel %vm5398_vm2, %v2861_v30, %v2865_v2  ;;  %v1789_v55 = vshll.u32 %v4725_v45, 16  ;;  %v1816_v30 = vor.u32 %v1815_v19, %v1812_v18  ;;  %v4774_v31 = vld [vmem:[%s5387_s13 + $0xa0] sm:$0xf] }
 0x1a6   : > { %v1347_v54 = vpop.permute.xlu1 %1346  ;;  %v3274_v49 = vsel %vm5542_vm6, %v3272_v36, %v3273_v37  ;;  %v2192_v36 = vrot.slane %v4774_v31, 5  ;;  %v4777_v37 = vld [vmem:[%s5387_s13 + $0xac] sm:$0xf] }
 0x1a7   : > { %1430 = vst.msk [vmem:[#allocation2 + $0x34] sm:$0xf] %vm1416_vm10, %v1347_v54  ;;  %v1345_v59 = vpop.permute.xlu0 %1344  ;;  %v5175_v60 = vld [vmem:[#allocation2 + $0x20] sm:$0xff]   ;;  %v1786_v54 = vshrl.u32 %v4725_v45, 16  ;;  %v1791_v5 = vrot.slane %v1789_v55, 5 }
 0x1a8   : > { %1429 = vst.msk [vmem:[#allocation2 + $0x30] sm:$0xf] %vm1416_vm10, %v1345_v59  ;;  %2264 = vrot.lane.b32.xlu1 %v2189_v47, %s5289_s18  ;;  %5054 = vmatprep.mubr.msk.bf16.mxu0 %vm3571_vm0, %v5175_v60  ;;  %v3280_v47 = vrot.slane %v4916_v38, 5  ;;  %v4869_v55 = vld [vmem:[%s5387_s13 + $0xa8] sm:$0xf] }
 0x1a9   : > { %2262 = vrot.lane.b32.xlu0 %v2186_v48, %s5289_s18  ;;  %v4940_v48 = vrot.slane %v4914_v39, 9  ;;  %v2878_v1 = vshrl.u32 %v4869_v55, 16 }
 0x1aa   : > { %v1351_v4 = vpop.permute.xlu1 %1350  ;;  %v3281_v59 = vsel %vm5542_vm6, %v3279_v46, %v3280_v47  ;;  %v2194_v46 = vrot.slane %v2192_v36, 4 }
 0x1ab   : > { %1432 = vst.msk [vmem:[#allocation2 + $0x3c] sm:$0xf] %vm1416_vm10, %v1351_v4  ;;  %v1349_v9 = vpop.permute.xlu0 %1348  ;;  %v5176_v10 = vld [vmem:[#allocation2 + $0x28] sm:$0xff]   ;;  %v3278_v60 = vsel %vm5542_vm6, %v4940_v48, %v3277_v34  ;;  %v1788_v4 = vrot.slane %v1786_v54, 4  ;;  %v1827_v34 = vrot.slane %v1826_v24, 4 }
 0x1ac   : > { %1431 = vst.msk [vmem:[#allocation2 + $0x38] sm:$0xf] %vm1416_vm10, %v1349_v9  ;;  %2454 = vrot.lane.b32.xlu1 %v4822_v61, %s5290_s19  ;;  %5055 = vmatmul.mubr.msk.bf16.gmra.mxu0 %vm3571_vm0, %v5176_v10  ;;  %v1797_v61 = vrot.slane %v1795_v50, 5  ;;  %v4682_v9 = vld [vmem:[%s5387_s13 + $0xa0] sm:$0xf] }
 0x1ad   : > { %2452 = vrot.lane.b32.xlu0 %v4821_v63, %s5290_s19  ;;  %v1801_v63 = vrot.slane %v1799_v51, 4  ;;  %v4778_v48 = vld [vmem:[%s5387_s13 + $0xb0] sm:$0x1] }
 0x1ae   : > { %v1908_v16 = vpop.permute.xlu1 %1907 }
 0x1af   : > { %1991 = vst.msk [vmem:[#allocation2 + $0x34] sm:$0xf] %vm1977_vm11, %v1908_v16  ;;  %v1906_v21 = vpop.permute.xlu0 %1905  ;;  %v1802_v10 = vor.u32 %v1801_v63, %v1797_v61  ;;  %v1792_v16 = vor.u32 %v1791_v5, %v1788_v4  ;;  %v4872_v5 = vld [vmem:[%s5387_s13 + $0xb4] sm:$0xf] }
 0x1b0   : > { %1990 = vst.msk [vmem:[#allocation2 + $0x30] sm:$0xf] %vm1977_vm11, %v1906_v21  ;;  %2458 = vrot.lane.b32.xlu1 %v4824_v11, %s5290_s19  ;;  %v1805_v11 = vshll.u32 %v4727_v3, 16  ;;  %v4684_v21 = vld [vmem:[%s5387_s13 + $0xac] sm:$0xf] }
 0x1b1   : > { %2456 = vrot.lane.b32.xlu0 %v4823_v17, %s5290_s19  ;;  %v4730_v17 = vld [vmem:[%s5387_s13 + $0xb0] sm:$0x1]  ;;  %v4873_v3 = vld [vmem:[%s5387_s13 + $0xb8] sm:$0xf] }
 0x1b2   : > { %v1912_v28 = vpop.permute.xlu1 %1911  ;;  %v1807_v23 = vrot.slane %v1805_v11, 5  ;;  %v1829_v25 = vshll.u32 %v4730_v17, 16  ;;  %v2911_v11 = vshll.u32 %v4873_v3, 16  ;;  %v2905_v17 = vshll.u32 %v4872_v5, 16 }
 0x1b3   : > { %1993 = vst.msk [vmem:[#allocation2 + $0x3c] sm:$0xf] %vm1977_vm11, %v1912_v28  ;;  %v1910_v32 = vpop.permute.xlu0 %1909  ;;  %v4683_v28 = vld [vmem:[%s5387_s13 + $0xa8] sm:$0xf] }
 0x1b4   : > { %1992 = vst.msk [vmem:[#allocation2 + $0x38] sm:$0xf] %vm1977_vm11, %v1910_v32  ;;  %3015 = vrot.lane.b32.xlu1 %v2852_v22, %s5291_s10  ;;  %v1803_v22 = vrot.slane %v1802_v10, 4  ;;  %v2913_v24 = vrot.slane %v2911_v11, 5  ;;  %v2907_v31 = vrot.slane %v2905_v17, 5 }
 0x1b5   : > { %3013 = vrot.lane.b32.xlu0 %v2842_v29, %s5291_s10  ;;  %v1793_v29 = vrot.slane %v1792_v16, 4  ;;  %v2902_v16 = vshrl.u32 %v4872_v5, 16  ;;  %v4734_v17 = vld [vmem:[%s5387_s13 + $0xc0] sm:$0xf] }
 0x1b6   : > { %v2245_v40 = vpop.permute.xlu1 %2244  ;;  %v1808_v33 = vsel %vm5398_vm2, %v1803_v22, %v1807_v23 }
 0x1b7   : > { %2328 = vst.msk [vmem:[#allocation2 + $0x34] sm:$0xf] %vm2314_vm12, %v2245_v40  ;;  %v2243_v44 = vpop.permute.xlu0 %2242  ;;  %v1798_v39 = vsel %vm5398_vm2, %v1793_v29, %v1797_v61  ;;  %v1817_v40 = vrot.slane %v1816_v30, 4  ;;  %v4874_v29 = vld [vmem:[%s5387_s13 + $0xbc] sm:$0x1]  ;;  %v2904_v30 = vrot.slane %v2902_v16, 4 }
 0x1b8   : > { %2327 = vst.msk [vmem:[#allocation2 + $0x30] sm:$0xf] %vm2314_vm12, %v2243_v44  ;;  %3019 = vrot.lane.b32.xlu1 %v2876_v35, %s5291_s10  ;;  %v1831_v35 = vrot.slane %v1829_v25, 5  ;;  %v2199_v44 = vrot.slane %v4777_v37, 5 }
 0x1b9   : > { %3017 = vrot.lane.b32.xlu0 %v2866_v41, %s5291_s10  ;;  %v4775_v41 = vld [vmem:[%s5387_s13 + $0xa4] sm:$0x1]  ;;  %v1822_v51 = vsel %vm5398_vm2, %v1817_v40, %v1821_v12  ;;  %v2915_v12 = vshrl.u32 %v4873_v3, 16  ;;  %v4827_v40 = vld [vmem:[%s5387_s13 + $0xb4] sm:$0xf] }
 0x1ba   : > { %v2249_v52 = vpop.permute.xlu1 %2248  ;;  %v1832_v45 = vsel %vm5398_vm2, %v1827_v34, %v1831_v35  ;;  %v2195_v47 = vrot.slane %v4775_v41, 5  ;;  %v2201_v56 = vrot.slane %v2199_v44, 4  ;;  %v4828_v34 = vld [vmem:[%s5387_s13 + $0xb8] sm:$0xf] }
 0x1bb   : > { %2330 = vst.msk [vmem:[#allocation2 + $0x3c] sm:$0xf] %vm2314_vm12, %v2249_v52  ;;  %v2247_v57 = vpop.permute.xlu0 %2246  ;;  %v4797_v52 = vrot.slane %v4773_v43, 9  ;;  %v2917_v25 = vrot.slane %v2915_v12, 4  ;;  %v4918_v43 = vld [vmem:[%s5387_s13 + $0xac] sm:$0xf] }
 0x1bc   : > { %2329 = vst.msk [vmem:[#allocation2 + $0x38] sm:$0xf] %vm2314_vm12, %v2247_v57  ;;  %3352 = vrot.lane.b32.xlu1 %v3274_v49, %s5292_s14  ;;  %v4776_v49 = vld [vmem:[%s5387_s13 + $0xa8] sm:$0xe]  ;;  %v2202_v57 = vrot.slane %v4778_v48, 5  ;;  %v3284_v48 = vrot.slane %v4918_v43, 5 }
 0x1bd   : > { %3350 = vrot.lane.b32.xlu0 %v3271_v53, %s5292_s14  ;;  %v4870_v53 = vld [vmem:[%s5387_s13 + $0xac] sm:$0xf]  ;;  %v4798_v58 = vrot.slane %v4776_v49, 9  ;;  %v2193_v0 = vsel %vm5542_vm6, %v4797_v52, %v2192_v36  ;;  %v2918_v37 = vor.u32 %v2917_v25, %v2913_v24  ;;  %v4921_v49 = vld [vmem:[%s5387_s13 + $0xb8] sm:$0xf] }
 0x1be   : > { %v2439_v2 = vpop.permute.xlu1 %2438  ;;  %v2891_v61 = vshrl.u32 %v4870_v53, 16  ;;  %v2203_v6 = vsel %vm5542_vm6, %v2201_v56, %v2202_v57  ;;  %v3291_v56 = vrot.slane %v4921_v49, 5 }
 0x1bf   : > { %2522 = vst.msk [vmem:[#allocation2 + $0x34] sm:$0xf] %vm2508_vm13, %v2439_v2  ;;  %v2437_v8 = vpop.permute.xlu0 %2436  ;;  %v2881_v2 = vshll.u32 %v4869_v55, 16  ;;  %v2200_v7 = vsel %vm5542_vm6, %v4798_v58, %v2199_v44  ;;  %v4917_v55 = vld [vmem:[%s5387_s13 + $0xa8] sm:$0xe]  ;;  %v3286_v58 = vrot.slane %v3284_v48, 4 }
 0x1c0   : > { %2521 = vst.msk [vmem:[#allocation2 + $0x30] sm:$0xf] %vm2508_vm13, %v2437_v8  ;;  %3356 = vrot.lane.b32.xlu1 %v3281_v59, %s5292_s14  ;;  %v2196_v59 = vsel %vm5542_vm6, %v2194_v46, %v2195_v47  ;;  %v4871_v8 = vld [vmem:[%s5387_s13 + $0xb0] sm:$0x1]  ;;  %v2893_v10 = vrot.slane %v2891_v61, 4  ;;  %v2919_v46 = vrot.slane %v2918_v37, 4 }
 0x1c1   : > { %3354 = vrot.lane.b32.xlu0 %v3278_v60, %s5292_s14  ;;  %v2887_v60 = vshll.u32 %v4870_v53, 16  ;;  %v2897_v23 = vshll.u32 %v4871_v8, 16  ;;  %v4919_v53 = vld [vmem:[%s5387_s13 + $0xb0] sm:$0x1]  ;;  %v4920_v61 = vld [vmem:[%s5387_s13 + $0xb4] sm:$0xe] }
 0x1c2   : > { %v2443_v14 = vpop.permute.xlu1 %2442  ;;  %v3293_v5 = vrot.slane %v3291_v56, 4 }
 0x1c3   : > { %2524 = vst.msk [vmem:[#allocation2 + $0x3c] sm:$0xf] %vm2508_vm13, %v2443_v14  ;;  %v2441_v20 = vpop.permute.xlu0 %2440  ;;  %v2880_v14 = vrot.slane %v2878_v1, 4  ;;  %v2899_v36 = vrot.slane %v2897_v23, 5  ;;  %v4941_v1 = vrot.slane %v4917_v55, 9 }
 0x1c4   : > { %2523 = vst.msk [vmem:[#allocation2 + $0x38] sm:$0xf] %vm2508_vm13, %v2441_v20  ;;  %1370 = vrot.lane.b32.xlu1 %v4682_v9, %s5287_s16  ;;  %v6551_v9 = vrot.slane %v2887_v60, 5  ;;  %v4826_v20 = vld [vmem:[%s5387_s13 + $0xac] sm:$0xf] }
 0x1c5   : > { %1368 = vrot.lane.b32.xlu0 %v4681_v15, %s5287_s16  ;;  %v2883_v15 = vrot.slane %v2881_v2, 5  ;;  %v4922_v60 = vld [vmem:[%s5387_s13 + $0xbc] sm:$0x1]  ;;  %v4732_v2 = vld [vmem:[%s5387_s13 + $0xb8] sm:$0xf]  ;;  %v3285_v12 = vsel %vm5542_vm6, %v4941_v1, %v3284_v48 }
 0x1c6   : > { %v3000_v26 = vpop.permute.xlu1 %2999  ;;  %v2894_v22 = vor.u32 %v2893_v10, %v6551_v9  ;;  %v1847_v10 = vshrl.u32 %v4732_v2, 16  ;;  %v4780_v55 = vld [vmem:[%s5387_s13 + $0xb8] sm:$0xf] }
 0x1c7   : > { %3083 = vst.msk [vmem:[#allocation2 + $0x34] sm:$0xf] %vm3069_vm14, %v3000_v26  ;;  %v2998_v32 = vpop.permute.xlu0 %2997 }
 0x1c8   : > { %3082 = vst.msk [vmem:[#allocation2 + $0x30] sm:$0xf] %vm3069_vm14, %v2998_v32  ;;  %1374 = vrot.lane.b32.xlu1 %v4684_v21, %s5287_s16  ;;  %v4825_v21 = vld [vmem:[%s5387_s13 + $0xa8] sm:$0xf]  ;;  %v2895_v35 = vrot.slane %v2894_v22, 4  ;;  %v1849_v22 = vrot.slane %v1847_v10, 4 }
 0x1c9   : > { %1372 = vrot.lane.b32.xlu0 %v4683_v28, %s5287_s16  ;;  %v2884_v28 = vor.u32 %v2883_v15, %v2880_v14  ;;  %v4735_v15 = vld [vmem:[%s5387_s13 + $0xc4] sm:$0xf] }
 0x1ca   : > { %v3004_v38 = vpop.permute.xlu1 %3003  ;;  %v1867_v23 = vshll.u32 %v4735_v15, 16 }
 0x1cb   : > { %3085 = vst.msk [vmem:[#allocation2 + $0x3c] sm:$0xf] %vm3069_vm14, %v3004_v38  ;;  %v3002_v42 = vpop.permute.xlu0 %3001  ;;  %v2921_v38 = vshll.u32 %v4874_v29, 16  ;;  %v2885_v41 = vrot.slane %v2884_v28, 4 }
 0x1cc   : > { %3084 = vst.msk [vmem:[#allocation2 + $0x38] sm:$0xf] %vm3069_vm14, %v3002_v42  ;;  %1931 = vrot.lane.b32.xlu1 %v1808_v33, %s5288_s17  ;;  %v2908_v42 = vor.u32 %v2907_v31, %v2904_v30  ;;  %v1858_v30 = vshrl.u32 %v4734_v17, 16  ;;  %v1861_v31 = vshll.u32 %v4734_v17, 16  ;;  %v1869_v37 = vrot.slane %v1867_v23, 5 }
 0x1cd   : > { %1929 = vrot.lane.b32.xlu0 %v1798_v39, %s5288_s17  ;;  %v2923_v47 = vrot.slane %v2921_v38, 5 }
 0x1ce   : > { %v3337_v50 = vpop.permute.xlu1 %3336  ;;  %v2909_v52 = vrot.slane %v2908_v42, 4  ;;  %v4736_v42 = vld [vmem:[%s5387_s13 + $0xc8] sm:$0x1]  ;;  %v1860_v43 = vrot.slane %v1858_v30, 4  ;;  %v4878_v30 = vld [vmem:[%s5387_s13 + $0xcc] sm:$0xf] }
 0x1cf   : > { %3420 = vst.msk [vmem:[#allocation2 + $0x34] sm:$0xf] %vm3406_vm15, %v3337_v50  ;;  %v3335_v54 = vpop.permute.xlu0 %3334  ;;  %v2924_v57 = vsel %vm5398_vm2, %v2919_v46, %v2923_v47  ;;  %v4688_v46 = vld [vmem:[%s5387_s13 + $0xc4] sm:$0xf] }
 0x1d0   : > { %3419 = vst.msk [vmem:[#allocation2 + $0x30] sm:$0xf] %vm3406_vm15, %v3335_v54  ;;  %1935 = vrot.lane.b32.xlu1 %v1832_v45, %s5288_s17  ;;  %v2900_v45 = vsel %vm5398_vm2, %v2895_v35, %v2899_v36 }
 0x1d1   : > { %1933 = vrot.lane.b32.xlu0 %v1822_v51, %s5288_s17  ;;  %v2890_v51 = vsel %vm5398_vm2, %v2885_v41, %v6551_v9  ;;  %v1843_v9 = vshll.u32 %v4732_v2, 16  ;;  %v4781_v2 = vld [vmem:[%s5387_s13 + $0xbc] sm:$0x1] }
 0x1d2   : > { %v3341_v63 = vpop.permute.xlu1 %3340 }
 0x1d3   : > { %3422 = vst.msk [vmem:[#allocation2 + $0x3c] sm:$0xf] %vm3406_vm15, %v3341_v63  ;;  %v3339_v4 = vpop.permute.xlu0 %3338 }
 0x1d4   : > { %3421 = vst.msk [vmem:[#allocation2 + $0x38] sm:$0xf] %vm3406_vm15, %v3339_v4  ;;  %2268 = vrot.lane.b32.xlu1 %v2196_v59, %s5289_s18  ;;  %v3287_v59 = vrot.slane %v4919_v53, 5  ;;  %v4731_v4 = vld [vmem:[%s5387_s13 + $0xb4] sm:$0xf] }
 0x1d5   : > { %2266 = vrot.lane.b32.xlu0 %v2193_v0, %s5289_s18  ;;  %v2914_v0 = vsel %vm5398_vm2, %v2909_v52, %v2913_v24  ;;  %v1837_v14 = vshll.u32 %v4731_v4, 16  ;;  %v1871_v24 = vshrl.u32 %v4735_v15, 16  ;;  %v4687_v52 = vld [vmem:[%s5387_s13 + $0xc0] sm:$0xf] }
 0x1d6   : > { %v1355_v13 = vpop.permute.xlu1 %1354  ;;  %v3288_v8 = vsel %vm5542_vm6, %v3286_v58, %v3287_v59  ;;  %v4782_v15 = vld [vmem:[%s5387_s13 + $0xc0] sm:$0xe] }
 0x1d7   : > { %1434 = vst.msk [vmem:[#allocation2 + $0x44] sm:$0xf] %vm1416_vm10, %v1355_v13  ;;  %v1353_v18 = vpop.permute.xlu0 %1352  ;;  %v6554_v19 = vld [vmem:[#allocation2 + $0x30] sm:$0xff]   ;;  %v1834_v13 = vshrl.u32 %v4731_v4, 16  ;;  %v1839_v29 = vrot.slane %v1837_v14, 5  ;;  %v1873_v38 = vrot.slane %v1871_v24, 4 }
 0x1d8   : > { %1433 = vst.msk [vmem:[#allocation2 + $0x40] sm:$0xf] %vm1416_vm10, %v1353_v18  ;;  %2272 = vrot.lane.b32.xlu1 %v2203_v6, %s5289_s18  ;;  %5058 = vmatprep.mubr.msk.bf16.mxu0 %vm3571_vm0, %v6554_v19  ;;  %v3294_v6 = vrot.slane %v4922_v60, 5  ;;  %v2206_v60 = vrot.slane %v4780_v55, 5  ;;  %v4779_v4 = vld [vmem:[%s5387_s13 + $0xb4] sm:$0xe] }
 0x1d9   : > { %2270 = vrot.lane.b32.xlu0 %v2200_v7, %s5289_s18  ;;  %v4942_v7 = vrot.slane %v4920_v61, 9  ;;  %v1836_v28 = vrot.slane %v1834_v13, 4  ;;  %v1874_v49 = vor.u32 %v1873_v38, %v1869_v37  ;;  %v4783_v61 = vld [vmem:[%s5387_s13 + $0xc4] sm:$0xf]  ;;  %v2950_v38 = vshrl.u32 %v4878_v30, 16 }
 0x1da   : > { %v1359_v26 = vpop.permute.xlu1 %1358  ;;  %v3295_v18 = vsel %vm5542_vm6, %v3293_v5, %v3294_v6  ;;  %v2213_v5 = vrot.slane %v4783_v61, 5  ;;  %v4876_v13 = vld [vmem:[%s5387_s13 + $0xc4] sm:$0xf] }
 0x1db   : > { %1436 = vst.msk [vmem:[#allocation2 + $0x4c] sm:$0xf] %vm1416_vm10, %v1359_v26  ;;  %v1357_v32 = vpop.permute.xlu0 %1356  ;;  %v6566_v33 = vld [vmem:[#allocation2 + $0x38] sm:$0xff]   ;;  %v1840_v41 = vor.u32 %v1839_v29, %v1836_v28  ;;  %v1875_v58 = vrot.slane %v1874_v49, 4  ;;  %v2939_v23 = vshrl.u32 %v4876_v13, 16 }
 0x1dc   : > { %1435 = vst.msk [vmem:[#allocation2 + $0x48] sm:$0xf] %vm1416_vm10, %v1357_v32  ;;  %2462 = vrot.lane.b32.xlu1 %v4826_v20, %s5290_s19  ;;  %5059 = vmatmul.mubr.msk.bf16.gmra.mxu0 %vm3571_vm0, %v6566_v33  ;;  %v3292_v20 = vsel %vm5542_vm6, %v4942_v7, %v3291_v56  ;;  %v4733_v26 = vld [vmem:[%s5387_s13 + $0xbc] sm:$0x1]  ;;  %v2208_v7 = vrot.slane %v2206_v60, 4  ;;  %v2215_v17 = vrot.slane %v2213_v5, 4 }
 0x1dd   : > { %2460 = vrot.lane.b32.xlu0 %v4825_v21, %s5290_s19  ;;  %v1845_v21 = vrot.slane %v1843_v9, 5  ;;  %v1853_v36 = vshll.u32 %v4733_v26, 16  ;;  %v1841_v53 = vrot.slane %v1840_v41, 4  ;;  %v4784_v9 = vld [vmem:[%s5387_s13 + $0xc8] sm:$0x1]  ;;  %v4800_v26 = vrot.slane %v4782_v15, 9 }
 0x1de   : > { %v1916_v39 = vpop.permute.xlu1 %1915  ;;  %v4880_v49 = vld [vmem:[%s5387_s13 + $0xd4] sm:$0x1] }
 0x1df   : > { %1995 = vst.msk [vmem:[#allocation2 + $0x44] sm:$0xf] %vm1977_vm11, %v1916_v39  ;;  %v1914_v44 = vpop.permute.xlu0 %1913  ;;  %v1850_v35 = vor.u32 %v1849_v22, %v1845_v21  ;;  %v1855_v48 = vrot.slane %v1853_v36, 5  ;;  %v2935_v22 = vshll.u32 %v4876_v13, 16  ;;  %v2214_v41 = vsel %vm5542_vm6, %v4800_v26, %v2213_v5  ;;  %v4925_v13 = vld [vmem:[%s5387_s13 + $0xc8] sm:$0x1] }
 0x1e0   : > { %1994 = vst.msk [vmem:[#allocation2 + $0x40] sm:$0xf] %vm1977_vm11, %v1914_v44  ;;  %2466 = vrot.lane.b32.xlu1 %v4828_v34, %s5290_s19  ;;  %v4686_v34 = vld [vmem:[%s5387_s13 + $0xb8] sm:$0xf]  ;;  %v1863_v44 = vrot.slane %v1861_v31, 5  ;;  %v2969_v61 = vshll.u32 %v4880_v49, 16 }
 0x1e1   : > { %2464 = vrot.lane.b32.xlu0 %v4827_v40, %s5290_s19  ;;  %v4685_v40 = vld [vmem:[%s5387_s13 + $0xb4] sm:$0xf]  ;;  %v1851_v47 = vrot.slane %v1850_v35, 4  ;;  %v6672_v36 = vrot.slane %v2935_v22, 5  ;;  %v4927_v22 = vld [vmem:[%s5387_s13 + $0xd0] sm:$0xf] }
 0x1e2   : > { %v1920_v50 = vpop.permute.xlu1 %1919 }
 0x1e3   : > { %1997 = vst.msk [vmem:[#allocation2 + $0x4c] sm:$0xf] %vm1977_vm11, %v1920_v50  ;;  %v1918_v54 = vpop.permute.xlu0 %1917  ;;  %v1877_v50 = vshll.u32 %v4736_v42, 16  ;;  %v4877_v42 = vld [vmem:[%s5387_s13 + $0xc8] sm:$0x1] }
 0x1e4   : > { %1996 = vst.msk [vmem:[#allocation2 + $0x48] sm:$0xf] %vm1977_vm11, %v1918_v54  ;;  %3023 = vrot.lane.b32.xlu1 %v2900_v45, %s5291_s10  ;;  %v1864_v54 = vor.u32 %v1863_v44, %v1860_v43 }
 0x1e5   : > { %3021 = vrot.lane.b32.xlu0 %v2890_v51, %s5291_s10  ;;  %v1879_v59 = vrot.slane %v1877_v50, 5  ;;  %v4830_v50 = vld [vmem:[%s5387_s13 + $0xc4] sm:$0xf] }
 0x1e6   : > { %v2253_v63 = vpop.permute.xlu1 %2252  ;;  %v1865_v1 = vrot.slane %v1864_v54, 4 }
 0x1e7   : > { %2332 = vst.msk [vmem:[#allocation2 + $0x44] sm:$0xf] %vm2314_vm12, %v2253_v63  ;;  %v2251_v3 = vpop.permute.xlu0 %2250  ;;  %v1880_v6 = vsel %vm5398_vm2, %v1875_v58, %v1879_v59 }
 0x1e8   : > { %2331 = vst.msk [vmem:[#allocation2 + $0x40] sm:$0xf] %vm2314_vm12, %v2251_v3  ;;  %3027 = vrot.lane.b32.xlu1 %v2924_v57, %s5291_s10  ;;  %v1856_v57 = vsel %vm5398_vm2, %v1851_v47, %v1855_v48 }
 0x1e9   : > { %3025 = vrot.lane.b32.xlu0 %v2914_v0, %s5291_s10  ;;  %v1846_v0 = vsel %vm5398_vm2, %v1841_v53, %v1845_v21  ;;  %v2952_v53 = vrot.slane %v2950_v38, 4  ;;  %v3305_v38 = vrot.slane %v4927_v22, 5 }
 0x1ea   : > { %v2257_v11 = vpop.permute.xlu1 %2256 }
 0x1eb   : > { %2334 = vst.msk [vmem:[#allocation2 + $0x4c] sm:$0xf] %vm2314_vm12, %v2257_v11  ;;  %v2255_v16 = vpop.permute.xlu0 %2254  ;;  %v1870_v11 = vsel %vm5398_vm2, %v1865_v1, %v1869_v37  ;;  %v2941_v37 = vrot.slane %v2939_v23, 4  ;;  %v4832_v1 = vld [vmem:[%s5387_s13 + $0xd0] sm:$0xf] }
 0x1ec   : > { %2333 = vst.msk [vmem:[#allocation2 + $0x48] sm:$0xf] %vm2314_vm12, %v2255_v16  ;;  %3360 = vrot.lane.b32.xlu1 %v3288_v8, %s5292_s14  ;;  %v2209_v8 = vrot.slane %v4781_v2, 5  ;;  %v4875_v16 = vld [vmem:[%s5387_s13 + $0xc0] sm:$0xf] }
 0x1ed   : > { %3358 = vrot.lane.b32.xlu0 %v3285_v12, %s5292_s14  ;;  %v4799_v12 = vrot.slane %v4779_v4, 9  ;;  %v2926_v28 = vshrl.u32 %v4875_v16, 16  ;;  %v2929_v29 = vshll.u32 %v4875_v16, 16 }
 0x1ee   : > { %v2447_v25 = vpop.permute.xlu1 %2446  ;;  %v2210_v21 = vsel %vm5542_vm6, %v2208_v7, %v2209_v8 }
 0x1ef   : > { %2526 = vst.msk [vmem:[#allocation2 + $0x44] sm:$0xf] %vm2508_vm13, %v2447_v25  ;;  %v2445_v32 = vpop.permute.xlu0 %2444  ;;  %v2207_v25 = vsel %vm5542_vm6, %v4799_v12, %v2206_v60  ;;  %v2928_v43 = vrot.slane %v2926_v28, 4  ;;  %v2931_v44 = vrot.slane %v2929_v29, 5  ;;  %v3301_v28 = vrot.slane %v4925_v13, 5 }
 0x1f0   : > { %2525 = vst.msk [vmem:[#allocation2 + $0x40] sm:$0xf] %vm2508_vm13, %v2445_v32  ;;  %3364 = vrot.lane.b32.xlu1 %v3295_v18, %s5292_s14  ;;  %v2216_v18 = vrot.slane %v4784_v9, 5 }
 0x1f1   : > { %3362 = vrot.lane.b32.xlu0 %v3292_v20, %s5292_s14  ;;  %v4879_v20 = vld [vmem:[%s5387_s13 + $0xd0] sm:$0xf] }
 0x1f2   : > { %v2451_v39 = vpop.permute.xlu1 %2450  ;;  %v2959_v32 = vshll.u32 %v4879_v20, 16  ;;  %v2217_v35 = vsel %vm5542_vm6, %v2215_v17, %v2216_v18 }
 0x1f3   : > { %2528 = vst.msk [vmem:[#allocation2 + $0x4c] sm:$0xf] %vm2508_vm13, %v2451_v39  ;;  %v2449_v45 = vpop.permute.xlu0 %2448  ;;  %v2953_v39 = vshll.u32 %v4878_v30, 16 }
 0x1f4   : > { %2527 = vst.msk [vmem:[#allocation2 + $0x48] sm:$0xf] %vm2508_vm13, %v2449_v45  ;;  %1378 = vrot.lane.b32.xlu1 %v4686_v34, %s5287_s16  ;;  %v2963_v34 = vshrl.u32 %v4879_v20, 16  ;;  %v6680_v47 = vrot.slane %v2959_v32, 5 }
 0x1f5   : > { %1376 = vrot.lane.b32.xlu0 %v4685_v40, %s5287_s16  ;;  %v2955_v54 = vrot.slane %v2953_v39, 5 }
 0x1f6   : > { %v3008_v51 = vpop.permute.xlu1 %3007  ;;  %v2965_v48 = vrot.slane %v2963_v34, 4 }
 0x1f7   : > { %3087 = vst.msk [vmem:[#allocation2 + $0x44] sm:$0xf] %vm3069_vm14, %v3008_v51  ;;  %v3006_v56 = vpop.permute.xlu0 %3005  ;;  %v2942_v51 = vor.u32 %v2941_v37, %v6672_v36  ;;  %v2956_v4 = vor.u32 %v2955_v54, %v2952_v53  ;;  %v3307_v54 = vrot.slane %v3305_v38, 4 }
 0x1f8   : > { %3086 = vst.msk [vmem:[#allocation2 + $0x40] sm:$0xf] %vm3069_vm14, %v3006_v56  ;;  %1382 = vrot.lane.b32.xlu1 %v4688_v46, %s5287_s16  ;;  %v4829_v56 = vld [vmem:[%s5387_s13 + $0xc0] sm:$0xf]  ;;  %v2966_v60 = vor.u32 %v2965_v48, %v6680_v47 }
 0x1f9   : > { %1380 = vrot.lane.b32.xlu0 %v4687_v52, %s5287_s16  ;;  %v2945_v52 = vshll.u32 %v4877_v42, 16  ;;  %v2943_v2 = vrot.slane %v2942_v51, 4  ;;  %v2957_v17 = vrot.slane %v2956_v4, 4 }
 0x1fa   : > { %v3012_v63 = vpop.permute.xlu1 %3011 }
 0x1fb   : > { %3089 = vst.msk [vmem:[#allocation2 + $0x4c] sm:$0xf] %vm3069_vm14, %v3012_v63  ;;  %v3010_v3 = vpop.permute.xlu0 %3009  ;;  %v6706_v63 = vld [vmem:[%s5387_s13 + $0xc4] sm:$0xf]  ;;  %v2962_v37 = vsel %vm5398_vm2, %v2957_v17, %v6680_v47  ;;  %v4926_v47 = vld [vmem:[%s5387_s13 + $0xcc] sm:$0xe] }
 0x1fc   : > { %3088 = vst.msk [vmem:[#allocation2 + $0x48] sm:$0xf] %vm3069_vm14, %v3010_v3  ;;  %1939 = vrot.lane.b32.xlu1 %v1856_v57, %s5288_s17  ;;  %v2932_v57 = vor.u32 %v2931_v44, %v2928_v43  ;;  %v2947_v3 = vrot.slane %v2945_v52, 5  ;;  %v3298_v12 = vrot.slane %v6706_v63, 5 }
 0x1fd   : > { %1937 = vrot.lane.b32.xlu0 %v1846_v0, %s5288_s17 }
 0x1fe   : > { %v3345_v10 = vpop.permute.xlu1 %3344  ;;  %v2933_v7 = vrot.slane %v2932_v57, 4  ;;  %v2948_v16 = vsel %vm5398_vm2, %v2943_v2, %v2947_v3  ;;  %v3300_v26 = vrot.slane %v3298_v12, 4 }
 0x1ff   : > { %3424 = vst.msk [vmem:[#allocation2 + $0x44] sm:$0xf] %vm3406_vm15, %v3345_v10  ;;  %v3343_v14 = vpop.permute.xlu0 %3342  ;;  %v2967_v10 = vrot.slane %v2966_v60, 4 }
 0x200   : > { %3423 = vst.msk [vmem:[#allocation2 + $0x40] sm:$0xf] %vm3406_vm15, %v3343_v14  ;;  %1943 = vrot.lane.b32.xlu1 %v1880_v6, %s5288_s17  ;;  %v4831_v6 = vld [vmem:[%s5387_s13 + $0xcc] sm:$0xf]  ;;  %v4923_v14 = vld [vmem:[%s5387_s13 + $0xc0] sm:$0xe]  ;;  %v3302_v52 = vsel %vm5542_vm6, %v3300_v26, %v3301_v28 }
 0x201   : > { %1941 = vrot.lane.b32.xlu0 %v1870_v11, %s5288_s17  ;;  %v2971_v11 = vrot.slane %v2969_v61, 5  ;;  %v4943_v29 = vrot.slane %v4923_v14, 9  ;;  %v4944_v61 = vrot.slane %v4926_v47, 9  ;;  %v5191_v14 = vld [vmem:[#allocation2 + $0x28] sm:$0xff]   ;;  %s7075_s17 = scalar_lea.hbm %s7213_s4, %s7216_s11 }
 0x202   : > { %v3349_v24 = vpop.permute.xlu1 %3348 }
 0x203   : > { %3426 = vst.msk [vmem:[#allocation2 + $0x4c] sm:$0xf] %vm3406_vm15, %v3349_v24  ;;  %v3347_v31 = vpop.permute.xlu0 %3346  ;;  %v3299_v60 = vsel %vm5542_vm6, %v4943_v29, %v3298_v12  ;;  %v3306_v3 = vsel %vm5542_vm6, %v4944_v61, %v3305_v38 }
 0x204   : > { %3425 = vst.msk [vmem:[#allocation2 + $0x48] sm:$0xf] %vm3406_vm15, %v3347_v31  ;;  %2276 = vrot.lane.b32.xlu1 %v2210_v21, %s5289_s18  ;;  %v2938_v21 = vsel %vm5398_vm2, %v2933_v7, %v6672_v36  ;;  %v5187_v7 = vld [vmem:[#allocation2 + $0x8] sm:$0xff]  }
 0x205   : > { %2274 = vrot.lane.b32.xlu0 %v2207_v25, %s5289_s18  ;;  %v2972_v25 = vsel %vm5398_vm2, %v2967_v10, %v2971_v11  ;;  %v5189_v10 = vld [vmem:[#allocation2 + $0x18] sm:$0xff]   ;;  %v5190_v11 = vld [vmem:[#allocation2 + $0x10] sm:$0xff]   ;;  %vm4024_vm2 = vcmask 31744  }
 0x206   : > { %v1363_v40 = vpop.permute.xlu1 %1362 }
 0x207   : > { %1438 = vst.msk [vmem:[#allocation2 + $0x54] sm:$0xf] %vm1416_vm10, %v1363_v40  ;;  %v1361_v45 = vpop.permute.xlu0 %1360  ;;  %v6678_v46 = vld [vmem:[#allocation2 + $0x40] sm:$0xff]  }
 0x208   : > { %1437 = vst.msk [vmem:[#allocation2 + $0x50] sm:$0xf] %vm1416_vm10, %v1361_v45  ;;  %2280 = vrot.lane.b32.xlu1 %v2217_v35, %s5289_s18  ;;  %5062 = vmatprep.mubr.msk.bf16.mxu0 %vm3571_vm0, %v6678_v46  ;;  %v3991_v35 = vld [vmem:[%s7211_s2] sm:$0x3]  ;;  %v4928_v45 = vld [vmem:[%s5387_s13 + $0xd4] sm:$0x1] }
 0x209   : > { %2278 = vrot.lane.b32.xlu0 %v2214_v41, %s5289_s18  ;;  %s6698_s18 = scalar_lea.vmem %s7212_s3, %s5002_s15  ;;  %5113 = vmatprep.subr.msk.bf16.mxu1 %vm3620_vm8, %v3991_v35  ;;  %v4074_v39 = vsel %vm3620_vm8, %v3991_v35, 0  ;;  %s5293_s13 = smov 112  }
 0x20a   : > { %v1367_v55 = vpop.permute.xlu1 %1366  ;;  %5079 = vmatpush3.bf16.msra.mxu1 %v4074_v39 }
 0x20b   : > { %1440 = vst.msk [vmem:[#allocation2 + $0x5c] sm:$0xf] %vm1416_vm10, %v1367_v55  ;;  %v1365_v58 = vpop.permute.xlu0 %1364  ;;  %v6700_v59 = vld [vmem:[#allocation2 + $0x48] sm:$0xff]   ;;  %v3308_v55 = vrot.slane %v4928_v45, 5 }
 0x20c   : > { %1439 = vst.msk [vmem:[#allocation2 + $0x58] sm:$0xf] %vm1416_vm10, %v1365_v58  ;;  %2470 = vrot.lane.b32.xlu1 %v4830_v50, %s5290_s19  ;;  %v5048_v0 = vpop.f32.mrf.mxu0  ;;  %5063 = vmatmul.mubr.msk.bf16.gmra.mxu0 %vm3571_vm0, %v6700_v59 }
 0x20d   : > { %2468 = vrot.lane.b32.xlu0 %v4829_v56, %s5290_s19  ;;  %3788 = vst.msk [vmem:[%s6698_s18 + $0x10] sm:$0xff] %vm3785_vm1, %v5048_v0  ;;  %v3891_v30 = vmul.f32 %v5048_v0, %v5048_v0  ;;  %v3821_v40 = vsel %vm3785_vm1, %v5048_v0, 0.0 }
 0x20e   : > { %v1924_v5 = vpop.permute.xlu1 %1923  ;;  %v3658_v9 = vpop.f32.mrf.mxu0 }
 0x20f   : > { %1999 = vst.msk [vmem:[#allocation2 + $0x54] sm:$0xf] %vm1977_vm11, %v1924_v5  ;;  %v1922_v8 = vpop.permute.xlu0 %1921  ;;  %v3889_v18 = vmul.f32 %v3658_v9, %v3658_v9  ;;  %v3818_v31 = vsel %vm3785_vm1, %v3658_v9, 0.0  ;;  %v3924_v50 = vsel %vm3785_vm1, %v3891_v30, 0.0 }
 0x210   : > { %1998 = vst.msk [vmem:[#allocation2 + $0x50] sm:$0xf] %vm1977_vm11, %v1922_v8  ;;  %2474 = vrot.lane.b32.xlu1 %v4832_v1, %s5290_s19  ;;  %v5049_v15 = vpop.f32.mrf.mxu0  ;;  %v3309_v1 = vsel %vm5542_vm6, %v3307_v54, %v3308_v55 }
 0x211   : > { %3786 = vst.msk [vmem:[%s6698_s18] sm:$0xff] %vm3785_vm1, %v3658_v9  ;;  %2472 = vrot.lane.b32.xlu0 %v4831_v6, %s5290_s19  ;;  %3789 = vst.msk [vmem:[%s6698_s18 + $0x18] sm:$0xff] %vm3785_vm1, %v5049_v15  ;;  %v3921_v41 = vsel %vm3785_vm1, %v3889_v18, 0.0  ;;  %v3892_v42 = vmul.f32 %v5049_v15, %v5049_v15  ;;  %v3823_v51 = vsel %vm3785_vm1, %v5049_v15, 0.0  ;;  %v5192_v15 = vld [vmem:[#allocation2 + $0x20] sm:$0xff]  }
 0x212   : > { %v1928_v20 = vpop.permute.xlu1 %1927  ;;  %v3661_v24 = vpop.f32.mrf.mxu0 }
 0x213   : > { %2001 = vst.msk [vmem:[#allocation2 + $0x5c] sm:$0xf] %vm1977_vm11, %v1928_v20  ;;  %v1926_v23 = vpop.permute.xlu0 %1925  ;;  %v3819_v32 = vsel %vm3785_vm1, %v3661_v24, 0.0  ;;  %v3890_v34 = vmul.f32 %v3661_v24, %v3661_v24  ;;  %v3926_v57 = vsel %vm3785_vm1, %v3892_v42, 0.0 }
 0x214   : > { %2000 = vst.msk [vmem:[#allocation2 + $0x58] sm:$0xf] %vm1977_vm11, %v1926_v23  ;;  %3031 = vrot.lane.b32.xlu1 %v2948_v16, %s5291_s10  ;;  %v3820_v36 = vadd.f32 %v3819_v32, %v3818_v31 }
 0x215   : > { %3787 = vst.msk [vmem:[%s6698_s18 + $0x8] sm:$0xff] %vm3785_vm1, %v3661_v24  ;;  %3029 = vrot.lane.b32.xlu0 %v2938_v21, %s5291_s10  ;;  %v3922_v43 = vsel %vm3785_vm1, %v3890_v34, 0.0 }
 0x216   : > { %v2261_v44 = vpop.permute.xlu1 %2260  ;;  %v3822_v48 = vadd.f32 %v3821_v40, %v3820_v36  ;;  %v3923_v49 = vadd.f32 %v3922_v43, %v3921_v41 }
 0x217   : > { %2336 = vst.msk [vmem:[#allocation2 + $0x54] sm:$0xf] %vm2314_vm12, %v2261_v44  ;;  %v2259_v27 = vpop.permute.xlu0 %2258 }
 0x218   : > { %2335 = vst.msk [vmem:[#allocation2 + $0x50] sm:$0xf] %vm2314_vm12, %v2259_v27  ;;  %3035 = vrot.lane.b32.xlu1 %v2972_v25, %s5291_s10  ;;  %v3925_v53 = vadd.f32 %v3924_v50, %v3923_v49  ;;  %v6763_v56 = vadd.f32 %v3823_v51, %v3822_v48 }
 0x219   : > { %3033 = vrot.lane.b32.xlu0 %v2962_v37, %s5291_s10  ;;  %s4634_s10 = sshll.u32 %s7043_s9, 1 }
 0x21a   : > { %v2265_v58 = vpop.permute.xlu1 %2264  ;;  %v6769_v0 = vadd.f32 %v3926_v57, %v3925_v53  ;;  %s255_s12 = scalar_lea.vmem [#allocation3], %s4634_s10 }
 0x21b   : > { %2338 = vst.msk [vmem:[#allocation2 + $0x5c] sm:$0xf] %vm2314_vm12, %v2265_v58  ;;  %v2263_v63 = vpop.permute.xlu0 %2262 }
 0x21c   : > { %2337 = vst.msk [vmem:[#allocation2 + $0x58] sm:$0xf] %vm2314_vm12, %v2263_v63  ;;  %3368 = vrot.lane.b32.xlu1 %v3302_v52, %s5292_s14 }
 0x21d   : > { %3366 = vrot.lane.b32.xlu0 %v3299_v60, %s5292_s14 }
 0x21e   : > { %v2455_v2 = vpop.permute.xlu1 %2454 }
 0x21f   : > { %2530 = vst.msk [vmem:[#allocation2 + $0x54] sm:$0xf] %vm2508_vm13, %v2455_v2  ;;  %v2453_v4 = vpop.permute.xlu0 %2452 }
 0x220   : > { %2529 = vst.msk [vmem:[#allocation2 + $0x50] sm:$0xf] %vm2508_vm13, %v2453_v4  ;;  %3372 = vrot.lane.b32.xlu1 %v3309_v1, %s5292_s14 }
 0x221   : > { %3370 = vrot.lane.b32.xlu0 %v3306_v3, %s5292_s14  ;;  %s4473_s14 = sshll.u32 %s255_s12, 4  ;;  %s7077_s14 = int_to_ptr.vmem [resolvable:$true] %s4473_s14 }
 0x222   : > { %v2459_v5 = vpop.permute.xlu1 %2458  ;;  %s5193_s19 = scalar_lea.vmem %s7077_s14, 32 }
 0x223   : > { %2532 = vst.msk [vmem:[#allocation2 + $0x5c] sm:$0xf] %vm2508_vm13, %v2459_v5  ;;  %v2457_v6 = vpop.permute.xlu0 %2456  ;;  %p5194_p11 = scmp.ne.s32.totalorder %s7077_s14, %s5193_s19 }
 0x224   : > { %2531 = vst.msk [vmem:[#allocation2 + $0x58] sm:$0xf] %vm2508_vm13, %v2457_v6  ;;  %3994 = vrot.lane.b32.xlu1 %v5187_v7, %s5293_s13 }
 0x225   : > { %3992 = vrot.lane.b32.xlu0 %v5188_v62, %s5293_s13  ;;  %p5195_p12 = pnand %p5194_p11, %p5369_p5 }
 0x226   : > { %v3016_v8 = vpop.permute.xlu1 %3015 }
 0x227   : > { %3091 = vst.msk [vmem:[#allocation2 + $0x54] sm:$0xf] %vm3069_vm14, %v3016_v8  ;;  %v3014_v9 = vpop.permute.xlu0 %3013  ;;  %p5196_p13 = pneg %p5195_p12 }
 0x228   : > { %3090 = vst.msk [vmem:[#allocation2 + $0x50] sm:$0xf] %vm3069_vm14, %v3014_v9  ;;  %3998 = vrot.lane.b32.xlu1 %v5189_v10, %s5293_s13 }
 0x229   : > { %3996 = vrot.lane.b32.xlu0 %v5190_v11, %s5293_s13 }
 0x22a   : > { %v3020_v12 = vpop.permute.xlu1 %3019 }
 0x22b   : > { %3093 = vst.msk [vmem:[#allocation2 + $0x5c] sm:$0xf] %vm3069_vm14, %v3020_v12  ;;  %v3018_v13 = vpop.permute.xlu0 %3017 }
 0x22c   : > { %3092 = vst.msk [vmem:[#allocation2 + $0x58] sm:$0xf] %vm3069_vm14, %v3018_v13  ;;  %4002 = vrot.lane.b32.xlu1 %v5191_v14, %s5293_s13 }
 0x22d   : > { %4000 = vrot.lane.b32.xlu0 %v5192_v15, %s5293_s13 }
 0x22e   : > { %v3353_v16 = vpop.permute.xlu1 %3352 }
 0x22f   : > { %3428 = vst.msk [vmem:[#allocation2 + $0x54] sm:$0xf] %vm3406_vm15, %v3353_v16  ;;  %v3351_v17 = vpop.permute.xlu0 %3350 }
 0x230   : > { %3427 = vst.msk [vmem:[#allocation2 + $0x50] sm:$0xf] %vm3406_vm15, %v3351_v17  ;;  %4006 = vrot.lane.b32.xlu1 %v6566_v33, %s5293_s13 }
 0x231   : > { %4004 = vrot.lane.b32.xlu0 %v6554_v19, %s5293_s13 }
 0x232   : > { %v3357_v18 = vpop.permute.xlu1 %3356 }
 0x233   : > { %3430 = vst.msk [vmem:[#allocation2 + $0x5c] sm:$0xf] %vm3406_vm15, %v3357_v18  ;;  %v3355_v20 = vpop.permute.xlu0 %3354 }
 0x234   : > { %3429 = vst.msk [vmem:[#allocation2 + $0x58] sm:$0xf] %vm3406_vm15, %v3355_v20  ;;  %4010 = vrot.lane.b32.xlu1 %v6700_v59, %s5293_s13 }
 0x235   : > { %4008 = vrot.lane.b32.xlu0 %v6678_v46, %s5293_s13 }
 0x236   : > { %v1371_v21 = vpop.permute.xlu1 %1370 }
 0x237   : > { %1442 = vst.msk [vmem:[#allocation2 + $0x64] sm:$0xf] %vm1416_vm10, %v1371_v21  ;;  %v1369_v33 = vpop.permute.xlu0 %1368  ;;  %v5181_v22 = vld [vmem:[#allocation2 + $0x50] sm:$0xff]  }
 0x238   : > { %1441 = vst.msk [vmem:[#allocation2 + $0x60] sm:$0xf] %vm1416_vm10, %v1369_v33  ;;  %5066 = vmatprep.mubr.msk.bf16.mxu0 %vm3571_vm0, %v5181_v22 }
 0x239   : > { %4012 = vrot.lane.b32.xlu0 %v5181_v22, %s5293_s13 }
 0x23a   : > { %v1375_v19 = vpop.permute.xlu1 %1374 }
 0x23b   : > { %1444 = vst.msk [vmem:[#allocation2 + $0x6c] sm:$0xf] %vm1416_vm10, %v1375_v19  ;;  %v1373_v59 = vpop.permute.xlu0 %1372  ;;  %v5182_v23 = vld [vmem:[#allocation2 + $0x58] sm:$0xff]  }
 0x23c   : > { %1443 = vst.msk [vmem:[#allocation2 + $0x68] sm:$0xf] %vm1416_vm10, %v1373_v59  ;;  %4014 = vrot.lane.b32.xlu1 %v5182_v23, %s5293_s13  ;;  %v5052_v46 = vpop.f32.mrf.mxu0  ;;  %5067 = vmatmul.mubr.msk.bf16.gmra.mxu0 %vm3571_vm0, %v5182_v23 }
 0x23d   : > { %3792 = vst.msk [vmem:[%s6698_s18 + $0x30] sm:$0xff] %vm3785_vm1, %v5052_v46  ;;  %v3895_v38 = vmul.f32 %v5052_v46, %v5052_v46  ;;  %v3829_v42 = vsel %vm3785_vm1, %v5052_v46, 0.0 }
 0x23e   : > { %v1932_v24 = vpop.permute.xlu1 %1931  ;;  %v3674_v26 = vpop.f32.mrf.mxu0 }
 0x23f   : > { %2003 = vst.msk [vmem:[#allocation2 + $0x64] sm:$0xf] %vm1977_vm11, %v1932_v24  ;;  %v1930_v25 = vpop.permute.xlu0 %1929  ;;  %v3825_v28 = vsel %vm3785_vm1, %v3674_v26, 0.0  ;;  %v3893_v29 = vmul.f32 %v3674_v26, %v3674_v26  ;;  %v3932_v47 = vsel %vm3785_vm1, %v3895_v38, 0.0 }
 0x240   : > { %2002 = vst.msk [vmem:[#allocation2 + $0x60] sm:$0xf] %vm1977_vm11, %v1930_v25  ;;  %v3826_v30 = vadd.f32 %v3825_v28, %v6763_v56  ;;  %v5053_v31 = vpop.f32.mrf.mxu0 }
 0x241   : > { %3790 = vst.msk [vmem:[%s6698_s18 + $0x20] sm:$0xff] %vm3785_vm1, %v3674_v26  ;;  %v3928_v32 = vsel %vm3785_vm1, %v3893_v29, 0.0  ;;  %3793 = vst.msk [vmem:[%s6698_s18 + $0x38] sm:$0xff] %vm3785_vm1, %v5053_v31  ;;  %v3896_v43 = vmul.f32 %v5053_v31, %v5053_v31  ;;  %v3831_v50 = vsel %vm3785_vm1, %v5053_v31, 0.0 }
 0x242   : > { %v1936_v34 = vpop.permute.xlu1 %1935  ;;  %v3929_v35 = vadd.f32 %v3928_v32, %v6769_v0  ;;  %v3677_v37 = vpop.f32.mrf.mxu0 }
 0x243   : > { %2005 = vst.msk [vmem:[#allocation2 + $0x6c] sm:$0xf] %vm1977_vm11, %v1936_v34  ;;  %v1934_v36 = vpop.permute.xlu0 %1933  ;;  %v3827_v39 = vsel %vm3785_vm1, %v3677_v37, 0.0  ;;  %v3894_v40 = vmul.f32 %v3677_v37, %v3677_v37  ;;  %v3934_v53 = vsel %vm3785_vm1, %v3896_v43, 0.0 }
 0x244   : > { %2004 = vst.msk [vmem:[#allocation2 + $0x68] sm:$0xf] %vm1977_vm11, %v1934_v36  ;;  %v3828_v41 = vadd.f32 %v3827_v39, %v3826_v30 }
 0x245   : > { %3791 = vst.msk [vmem:[%s6698_s18 + $0x28] sm:$0xff] %vm3785_vm1, %v3677_v37  ;;  %v3930_v44 = vsel %vm3785_vm1, %v3894_v40, 0.0 }
 0x246   : > { %v2269_v45 = vpop.permute.xlu1 %2268  ;;  %v3830_v48 = vadd.f32 %v3829_v42, %v3828_v41  ;;  %v3931_v49 = vadd.f32 %v3930_v44, %v3929_v35 }
 0x247   : > { %2340 = vst.msk [vmem:[#allocation2 + $0x64] sm:$0xf] %vm2314_vm12, %v2269_v45  ;;  %v2267_v27 = vpop.permute.xlu0 %2266 }
 0x248   : > { %2339 = vst.msk [vmem:[#allocation2 + $0x60] sm:$0xf] %vm2314_vm12, %v2267_v27  ;;  %v3933_v51 = vadd.f32 %v3932_v47, %v3931_v49  ;;  %v3832_v52 = vadd.f32 %v3831_v50, %v3830_v48 }
 0x24a   : > { %v2273_v54 = vpop.permute.xlu1 %2272  ;;  %v3935_v56 = vadd.f32 %v3934_v53, %v3933_v51 }
 0x24b   : > { %2342 = vst.msk [vmem:[#allocation2 + $0x6c] sm:$0xf] %vm2314_vm12, %v2273_v54  ;;  %v2271_v55 = vpop.permute.xlu0 %2270 }
 0x24c   : > { %2341 = vst.msk [vmem:[#allocation2 + $0x68] sm:$0xf] %vm2314_vm12, %v2271_v55 }
 0x24e   : > { %v2463_v57 = vpop.permute.xlu1 %2462 }
 0x24f   : > { %2534 = vst.msk [vmem:[#allocation2 + $0x64] sm:$0xf] %vm2508_vm13, %v2463_v57  ;;  %v2461_v58 = vpop.permute.xlu0 %2460 }
 0x250   : > { %2533 = vst.msk [vmem:[#allocation2 + $0x60] sm:$0xf] %vm2508_vm13, %v2461_v58 }
 0x252   : > { %v2467_v60 = vpop.permute.xlu1 %2466 }
 0x253   : > { %2536 = vst.msk [vmem:[#allocation2 + $0x6c] sm:$0xf] %vm2508_vm13, %v2467_v60  ;;  %v2465_v61 = vpop.permute.xlu0 %2464 }
 0x254   : > { %2535 = vst.msk [vmem:[#allocation2 + $0x68] sm:$0xf] %vm2508_vm13, %v2465_v61 }
 0x256   : > { %v3024_v63 = vpop.permute.xlu1 %3023 }
 0x257   : > { %3095 = vst.msk [vmem:[#allocation2 + $0x64] sm:$0xf] %vm3069_vm14, %v3024_v63  ;;  %v3022_v0 = vpop.permute.xlu0 %3021 }
 0x258   : > { %3094 = vst.msk [vmem:[#allocation2 + $0x60] sm:$0xf] %vm3069_vm14, %v3022_v0 }
 0x25a   : > { %v3028_v1 = vpop.permute.xlu1 %3027 }
 0x25b   : > { %3097 = vst.msk [vmem:[#allocation2 + $0x6c] sm:$0xf] %vm3069_vm14, %v3028_v1  ;;  %v3026_v2 = vpop.permute.xlu0 %3025 }
 0x25c   : > { %3096 = vst.msk [vmem:[#allocation2 + $0x68] sm:$0xf] %vm3069_vm14, %v3026_v2 }
 0x25e   : > { %v3361_v3 = vpop.permute.xlu1 %3360 }
 0x25f   : > { %3432 = vst.msk [vmem:[#allocation2 + $0x64] sm:$0xf] %vm3406_vm15, %v3361_v3  ;;  %v3359_v4 = vpop.permute.xlu0 %3358 }
 0x260   : > { %3431 = vst.msk [vmem:[#allocation2 + $0x60] sm:$0xf] %vm3406_vm15, %v3359_v4 }
 0x262   : > { %v3365_v5 = vpop.permute.xlu1 %3364 }
 0x263   : > { %3434 = vst.msk [vmem:[#allocation2 + $0x6c] sm:$0xf] %vm3406_vm15, %v3365_v5  ;;  %v3363_v6 = vpop.permute.xlu0 %3362 }
 0x264   : > { %3433 = vst.msk [vmem:[#allocation2 + $0x68] sm:$0xf] %vm3406_vm15, %v3363_v6 }
 0x266   : > { %v1379_v7 = vpop.permute.xlu1 %1378 }
 0x267   : > { %1446 = vst.msk [vmem:[#allocation2 + $0x74] sm:$0xf] %vm1416_vm10, %v1379_v7  ;;  %v1377_v62 = vpop.permute.xlu0 %1376  ;;  %v5183_v8 = vld [vmem:[#allocation2 + $0x60] sm:$0xff]  }
 0x268   : > { %1445 = vst.msk [vmem:[#allocation2 + $0x70] sm:$0xf] %vm1416_vm10, %v1377_v62  ;;  %4016 = vrot.lane.b32.xlu0 %v5183_v8, %s5293_s13  ;;  %5070 = vmatprep.mubr.msk.bf16.mxu0 %vm3571_vm0, %v5183_v8 }
 0x26a   : > { %v1383_v9 = vpop.permute.xlu1 %1382 }
 0x26b   : > { %1448 = vst.msk [vmem:[#allocation2 + $0x7c] sm:$0xf] %vm1416_vm10, %v1383_v9  ;;  %v1381_v10 = vpop.permute.xlu0 %1380  ;;  %v5184_v11 = vld [vmem:[#allocation2 + $0x68] sm:$0xff]  }
 0x26c   : > { %1447 = vst.msk [vmem:[#allocation2 + $0x78] sm:$0xf] %vm1416_vm10, %v1381_v10  ;;  %4018 = vrot.lane.b32.xlu1 %v5184_v11, %s5293_s13  ;;  %v5056_v12 = vpop.f32.mrf.mxu0  ;;  %5071 = vmatmul.mubr.msk.bf16.gmra.mxu0 %vm3571_vm0, %v5184_v11 }
 0x26d   : > { %3796 = vst.msk [vmem:[%s6698_s18 + $0x50] sm:$0xff] %vm3785_vm1, %v5056_v12  ;;  %v3899_v23 = vmul.f32 %v5056_v12, %v5056_v12  ;;  %v3837_v26 = vsel %vm3785_vm1, %v5056_v12, 0.0 }
 0x26e   : > { %v1940_v13 = vpop.permute.xlu1 %1939  ;;  %v3690_v15 = vpop.f32.mrf.mxu0 }
 0x26f   : > { %2007 = vst.msk [vmem:[#allocation2 + $0x74] sm:$0xf] %vm1977_vm11, %v1940_v13  ;;  %v1938_v14 = vpop.permute.xlu0 %1937  ;;  %v3833_v16 = vsel %vm3785_vm1, %v3690_v15, 0.0  ;;  %v3897_v17 = vmul.f32 %v3690_v15, %v3690_v15  ;;  %v3940_v35 = vsel %vm3785_vm1, %v3899_v23, 0.0 }
 0x270   : > { %2006 = vst.msk [vmem:[#allocation2 + $0x70] sm:$0xf] %vm1977_vm11, %v1938_v14  ;;  %v3834_v18 = vadd.f32 %v3833_v16, %v3832_v52  ;;  %v5057_v20 = vpop.f32.mrf.mxu0 }
 0x271   : > { %3794 = vst.msk [vmem:[%s6698_s18 + $0x40] sm:$0xff] %vm3785_vm1, %v3690_v15  ;;  %v3936_v21 = vsel %vm3785_vm1, %v3897_v17, 0.0  ;;  %3797 = vst.msk [vmem:[%s6698_s18 + $0x58] sm:$0xff] %vm3785_vm1, %v5057_v20  ;;  %v3900_v28 = vmul.f32 %v5057_v20, %v5057_v20  ;;  %v3839_v36 = vsel %vm3785_vm1, %v5057_v20, 0.0 }
 0x272   : > { %v1944_v33 = vpop.permute.xlu1 %1943  ;;  %v3937_v22 = vadd.f32 %v3936_v21, %v3935_v56  ;;  %v3693_v59 = vpop.f32.mrf.mxu0 }
 0x273   : > { %2009 = vst.msk [vmem:[#allocation2 + $0x7c] sm:$0xf] %vm1977_vm11, %v1944_v33  ;;  %v1942_v19 = vpop.permute.xlu0 %1941  ;;  %v3835_v46 = vsel %vm3785_vm1, %v3693_v59, 0.0  ;;  %v3898_v24 = vmul.f32 %v3693_v59, %v3693_v59  ;;  %v3942_v39 = vsel %vm3785_vm1, %v3900_v28, 0.0 }
 0x274   : > { %2008 = vst.msk [vmem:[#allocation2 + $0x78] sm:$0xf] %vm1977_vm11, %v1942_v19  ;;  %v3836_v25 = vadd.f32 %v3835_v46, %v3834_v18 }
 0x275   : > { %3795 = vst.msk [vmem:[%s6698_s18 + $0x48] sm:$0xff] %vm3785_vm1, %v3693_v59  ;;  %v3938_v29 = vsel %vm3785_vm1, %v3898_v24, 0.0 }
 0x276   : > { %v2277_v30 = vpop.permute.xlu1 %2276  ;;  %v3838_v31 = vadd.f32 %v3837_v26, %v3836_v25  ;;  %v3939_v32 = vadd.f32 %v3938_v29, %v3937_v22 }
 0x277   : > { %2344 = vst.msk [vmem:[#allocation2 + $0x74] sm:$0xf] %vm2314_vm12, %v2277_v30  ;;  %v2275_v34 = vpop.permute.xlu0 %2274 }
 0x278   : > { %2343 = vst.msk [vmem:[#allocation2 + $0x70] sm:$0xf] %vm2314_vm12, %v2275_v34  ;;  %v3941_v37 = vadd.f32 %v3940_v35, %v3939_v32  ;;  %v3840_v38 = vadd.f32 %v3839_v36, %v3838_v31 }
 0x27a   : > { %v2281_v40 = vpop.permute.xlu1 %2280  ;;  %v3943_v42 = vadd.f32 %v3942_v39, %v3941_v37 }
 0x27b   : > { %2346 = vst.msk [vmem:[#allocation2 + $0x7c] sm:$0xf] %vm2314_vm12, %v2281_v40  ;;  %v2279_v41 = vpop.permute.xlu0 %2278 }
 0x27c   : > { %2345 = vst.msk [vmem:[#allocation2 + $0x78] sm:$0xf] %vm2314_vm12, %v2279_v41 }
 0x27e   : > { %v2471_v43 = vpop.permute.xlu1 %2470 }
 0x27f   : > { %2538 = vst.msk [vmem:[#allocation2 + $0x74] sm:$0xf] %vm2508_vm13, %v2471_v43  ;;  %v2469_v44 = vpop.permute.xlu0 %2468 }
 0x280   : > { %2537 = vst.msk [vmem:[#allocation2 + $0x70] sm:$0xf] %vm2508_vm13, %v2469_v44 }
 0x282   : > { %v2475_v45 = vpop.permute.xlu1 %2474 }
 0x283   : > { %2540 = vst.msk [vmem:[#allocation2 + $0x7c] sm:$0xf] %vm2508_vm13, %v2475_v45  ;;  %v2473_v48 = vpop.permute.xlu0 %2472 }
 0x284   : > { %2539 = vst.msk [vmem:[#allocation2 + $0x78] sm:$0xf] %vm2508_vm13, %v2473_v48 }
 0x286   : > { %v3032_v49 = vpop.permute.xlu1 %3031 }
 0x287   : > { %3099 = vst.msk [vmem:[#allocation2 + $0x74] sm:$0xf] %vm3069_vm14, %v3032_v49  ;;  %v3030_v27 = vpop.permute.xlu0 %3029 }
 0x288   : > { %3098 = vst.msk [vmem:[#allocation2 + $0x70] sm:$0xf] %vm3069_vm14, %v3030_v27 }
 0x28a   : > { %v3036_v47 = vpop.permute.xlu1 %3035 }
 0x28b   : > { %3101 = vst.msk [vmem:[#allocation2 + $0x7c] sm:$0xf] %vm3069_vm14, %v3036_v47  ;;  %v3034_v50 = vpop.permute.xlu0 %3033 }
 0x28c   : > { %3100 = vst.msk [vmem:[#allocation2 + $0x78] sm:$0xf] %vm3069_vm14, %v3034_v50 }
 0x28e   : > { %v3369_v51 = vpop.permute.xlu1 %3368 }
 0x28f   : > { %3436 = vst.msk [vmem:[#allocation2 + $0x74] sm:$0xf] %vm3406_vm15, %v3369_v51  ;;  %v3367_v52 = vpop.permute.xlu0 %3366 }
 0x290   : > { %3435 = vst.msk [vmem:[#allocation2 + $0x70] sm:$0xf] %vm3406_vm15, %v3367_v52 }
 0x292   : > { %v3373_v53 = vpop.permute.xlu1 %3372 }
 0x293   : > { %3438 = vst.msk [vmem:[#allocation2 + $0x7c] sm:$0xf] %vm3406_vm15, %v3373_v53  ;;  %v3371_v54 = vpop.permute.xlu0 %3370 }
 0x294   : > { %3437 = vst.msk [vmem:[#allocation2 + $0x78] sm:$0xf] %vm3406_vm15, %v3371_v54 }
 0x296   : > { %v3995_v55 = vpop.permute.xlu1 %3994 }
 0x297   : > { %v3993_v56 = vpop.permute.xlu0 %3992  ;;  %v5185_v57 = vld [vmem:[#allocation2 + $0x70] sm:$0xff]  }
 0x298   : > { %5080 = vmatprep.mubr.msk.bf16.mxu1 %vm4024_vm2, %v3993_v56  ;;  %4020 = vrot.lane.b32.xlu0 %v5185_v57, %s5293_s13 }
 0x299   : > { %5081 = vmatmul.mubr.msk.bf16.vlgmr.msra.gmra.mxu1 %vm4024_vm2, %v3995_v55  ;;  %5074 = vmatprep.mubr.msk.bf16.mxu0 %vm3571_vm0, %v5185_v57 }
 0x29a   : > { %v3999_v0 = vpop.permute.xlu1 %3998 }
 0x29b   : > { %v3997_v58 = vpop.permute.xlu0 %3996  ;;  %v5186_v60 = vld [vmem:[#allocation2 + $0x78] sm:$0xff]  }
 0x29c   : > { %5084 = vmatprep.mubr.msk.bf16.mxu1 %vm4024_vm2, %v3997_v58  ;;  %4022 = vrot.lane.b32.xlu1 %v5186_v60, %s5293_s13  ;;  %v5060_v61 = vpop.f32.mrf.mxu0  ;;  %s5197_s13 = sshll.u32 %s5294_s20, 4  ;;  %s5198_s13 = int_to_ptr.vmem [resolvable:$false] %s5197_s13 }
 0x29d   : > { %5075 = vmatmul.mubr.msk.bf16.gmra.mxu0 %vm3571_vm0, %v5186_v60  ;;  %3800 = vst.msk [vmem:[%s6698_s18 + $0x70] sm:$0xff] %vm3785_vm1, %v5060_v61  ;;  %v3903_v8 = vmul.f32 %v5060_v61, %v5060_v61  ;;  %v3845_v12 = vsel %vm3785_vm1, %v5060_v61, 0.0  ;;  %s5199_s26 = scalar_lea.vmem %s5198_s13, 64  ;;  %p5200_p0 = scmp.lt.s32.totalorder %s7077_s14, %s5198_s13 }
 0x29e   : > { %v3706_v63 = vpop.f32.mrf.mxu0  ;;  %v4003_v18 = vpop.permute.xlu1 %4002  ;;  %p5201_p1 = scmp.lt.s32.totalorder %s5199_s26, %s5193_s19 }
 0x29f   : > { %3798 = vst.msk [vmem:[%s6698_s18 + $0x60] sm:$0xff] %vm3785_vm1, %v3706_v63  ;;  %v3841_v1 = vsel %vm3785_vm1, %v3706_v63, 0.0  ;;  %v3901_v2 = vmul.f32 %v3706_v63, %v3706_v63  ;;  %v4001_v3 = vpop.permute.xlu0 %4000  ;;  %v3948_v17 = vsel %vm3785_vm1, %v3903_v8, 0.0 }
 0x2a0   : > { %v3842_v4 = vadd.f32 %v3841_v1, %v3840_v38  ;;  %v5061_v5 = vpop.f32.mrf.mxu0  ;;  %p5202_p2 = por %p5201_p1, %p5200_p0 }
 0x2a1   : > { %5085 = vmatmul.mubr.msk.bf16.gmra.mxu1 %vm4024_vm2, %v3999_v0  ;;  %v3944_v6 = vsel %vm3785_vm1, %v3901_v2, 0.0  ;;  %3801 = vst.msk [vmem:[%s6698_s18 + $0x78] sm:$0xff] %vm3785_vm1, %v5061_v5  ;;  %v3904_v13 = vmul.f32 %v5061_v5, %v5061_v5  ;;  %v3847_v20 = vsel %vm3785_vm1, %v5061_v5, 0.0 }
 0x2a2   : > { %5088 = vmatprep.mubr.msk.bf16.mxu1 %vm4024_vm2, %v4001_v3  ;;  %v3945_v7 = vadd.f32 %v3944_v6, %v3943_v42  ;;  %v3709_v62 = vpop.f32.mrf.mxu0  ;;  %v4007_v23 = vpop.permute.xlu1 %4006  ;;  %p5203_p3 = pnand %p5202_p2, %p5196_p13 }
 0x2a3   : > { %3799 = vst.msk [vmem:[%s6698_s18 + $0x68] sm:$0xff] %vm3785_vm1, %v3709_v62  ;;  %v3843_v9 = vsel %vm3785_vm1, %v3709_v62, 0.0  ;;  %v3902_v10 = vmul.f32 %v3709_v62, %v3709_v62  ;;  %v4005_v21 = vpop.permute.xlu0 %4004  ;;  %v3950_v19 = vsel %vm3785_vm1, %v3904_v13, 0.0 }
 0x2a4   : > { %v3844_v11 = vadd.f32 %v3843_v9, %v3842_v4 }
 0x2a5   : > { %v3946_v14 = vsel %vm3785_vm1, %v3902_v10, 0.0 }
 0x2a6   : > { %v3846_v15 = vadd.f32 %v3845_v12, %v3844_v11  ;;  %v3947_v16 = vadd.f32 %v3946_v14, %v3945_v7  ;;  %v4011_v24 = vpop.permute.xlu1 %4010 }
 0x2a7   : > { %v4009_v46 = vpop.permute.xlu0 %4008 }
 0x2a8   : > { %v3949_v33 = vadd.f32 %v3948_v17, %v3947_v16  ;;  %v3848_v22 = vadd.f32 %v3847_v20, %v3846_v15 }
 0x2a9   : > { %5089 = vmatmul.mubr.msk.bf16.gmra.mxu1 %vm4024_vm2, %v4003_v18 }
 0x2aa   : > { %5092 = vmatprep.mubr.msk.bf16.mxu1 %vm4024_vm2, %v4005_v21  ;;  %v3951_v59 = vadd.f32 %v3950_v19, %v3949_v33 }
 0x2ab   : > { %v4013_v25 = vpop.permute.xlu0 %4012 }
 0x2ae   : > { %v4015_v26 = vpop.permute.xlu1 %4014 }
 0x2b1   : > { %5093 = vmatmul.mubr.msk.bf16.gmra.mxu1 %vm4024_vm2, %v4007_v23 }
 0x2b2   : > { %5096 = vmatprep.mubr.msk.bf16.mxu1 %vm4024_vm2, %v4009_v46 }
 0x2b9   : > { %5097 = vmatmul.mubr.msk.bf16.gmra.mxu1 %vm4024_vm2, %v4011_v24 }
 0x2ba   : > { %5100 = vmatprep.mubr.msk.bf16.mxu1 %vm4024_vm2, %v4013_v25 }
 0x2c1   : > { %5101 = vmatmul.mubr.msk.bf16.gmra.mxu1 %vm4024_vm2, %v4015_v26 }
 0x2cc   : > { %v5064_v28 = vpop.f32.mrf.mxu0 }
 0x2cd   : > { %3804 = vst.msk [vmem:[%s6698_s18 + $0x90] sm:$0xff] %vm3785_vm1, %v5064_v28  ;;  %v3907_v38 = vmul.f32 %v5064_v28, %v5064_v28  ;;  %v3853_v42 = vsel %vm3785_vm1, %v5064_v28, 0.0 }
 0x2ce   : > { %v3722_v29 = vpop.f32.mrf.mxu0 }
 0x2cf   : > { %3802 = vst.msk [vmem:[%s6698_s18 + $0x80] sm:$0xff] %vm3785_vm1, %v3722_v29  ;;  %v3849_v30 = vsel %vm3785_vm1, %v3722_v29, 0.0  ;;  %v3905_v31 = vmul.f32 %v3722_v29, %v3722_v29  ;;  %v3956_v49 = vsel %vm3785_vm1, %v3907_v38, 0.0 }
 0x2d0   : > { %v3850_v32 = vadd.f32 %v3849_v30, %v3848_v22  ;;  %v5065_v34 = vpop.f32.mrf.mxu0 }
 0x2d1   : > { %v3952_v35 = vsel %vm3785_vm1, %v3905_v31, 0.0  ;;  %3805 = vst.msk [vmem:[%s6698_s18 + $0x98] sm:$0xff] %vm3785_vm1, %v5065_v34  ;;  %v3908_v43 = vmul.f32 %v5065_v34, %v5065_v34  ;;  %v3855_v27 = vsel %vm3785_vm1, %v5065_v34, 0.0 }
 0x2d2   : > { %v3953_v36 = vadd.f32 %v3952_v35, %v3951_v59  ;;  %v3725_v37 = vpop.f32.mrf.mxu0 }
 0x2d3   : > { %3803 = vst.msk [vmem:[%s6698_s18 + $0x88] sm:$0xff] %vm3785_vm1, %v3725_v37  ;;  %v3851_v39 = vsel %vm3785_vm1, %v3725_v37, 0.0  ;;  %v3906_v40 = vmul.f32 %v3725_v37, %v3725_v37  ;;  %v3958_v51 = vsel %vm3785_vm1, %v3908_v43, 0.0 }
 0x2d4   : > { %v3852_v41 = vadd.f32 %v3851_v39, %v3850_v32 }
 0x2d5   : > { %v3954_v44 = vsel %vm3785_vm1, %v3906_v40, 0.0 }
 0x2d6   : > { %v3854_v45 = vadd.f32 %v3853_v42, %v3852_v41  ;;  %v3955_v48 = vadd.f32 %v3954_v44, %v3953_v36 }
 0x2d8   : > { %v3957_v47 = vadd.f32 %v3956_v49, %v3955_v48  ;;  %v3856_v50 = vadd.f32 %v3855_v27, %v3854_v45 }
 0x2da   : > { %v4017_v52 = vpop.permute.xlu0 %4016  ;;  %v3959_v53 = vadd.f32 %v3958_v51, %v3957_v47 }
 0x2db   : > { %5104 = vmatprep.mubr.msk.bf16.mxu1 %vm4024_vm2, %v4017_v52 }
 0x2de   : > { %v4019_v54 = vpop.permute.xlu1 %4018 }
 0x2df   : > { %5105 = vmatmul.mubr.msk.bf16.gmra.mxu1 %vm4024_vm2, %v4019_v54 }
 0x2fc   : > { %v5068_v55 = vpop.f32.mrf.mxu0 }
 0x2fd   : > { %3808 = vst.msk [vmem:[%s6698_s18 + $0xb0] sm:$0xff] %vm3785_vm1, %v5068_v55  ;;  %v3911_v2 = vmul.f32 %v5068_v55, %v5068_v55  ;;  %v3861_v6 = vsel %vm3785_vm1, %v5068_v55, 0.0 }
 0x2fe   : > { %v3738_v56 = vpop.f32.mrf.mxu0 }
 0x2ff   : > { %3806 = vst.msk [vmem:[%s6698_s18 + $0xa0] sm:$0xff] %vm3785_vm1, %v3738_v56  ;;  %v3857_v57 = vsel %vm3785_vm1, %v3738_v56, 0.0  ;;  %v3909_v58 = vmul.f32 %v3738_v56, %v3738_v56  ;;  %v3964_v10 = vsel %vm3785_vm1, %v3911_v2, 0.0 }
 0x300   : > { %v3858_v60 = vadd.f32 %v3857_v57, %v3856_v50  ;;  %v5069_v61 = vpop.f32.mrf.mxu0 }
 0x301   : > { %v3960_v63 = vsel %vm3785_vm1, %v3909_v58, 0.0  ;;  %3809 = vst.msk [vmem:[%s6698_s18 + $0xb8] sm:$0xff] %vm3785_vm1, %v5069_v61  ;;  %v3912_v7 = vmul.f32 %v5069_v61, %v5069_v61  ;;  %v3863_v11 = vsel %vm3785_vm1, %v5069_v61, 0.0 }
 0x302   : > { %v3961_v0 = vadd.f32 %v3960_v63, %v3959_v53  ;;  %v3741_v1 = vpop.f32.mrf.mxu0 }
 0x303   : > { %3807 = vst.msk [vmem:[%s6698_s18 + $0xa8] sm:$0xff] %vm3785_vm1, %v3741_v1  ;;  %v3859_v3 = vsel %vm3785_vm1, %v3741_v1, 0.0  ;;  %v3910_v4 = vmul.f32 %v3741_v1, %v3741_v1  ;;  %v3966_v14 = vsel %vm3785_vm1, %v3912_v7, 0.0 }
 0x304   : > { %v3860_v5 = vadd.f32 %v3859_v3, %v3858_v60 }
 0x305   : > { %v3962_v62 = vsel %vm3785_vm1, %v3910_v4, 0.0 }
 0x306   : > { %v3862_v8 = vadd.f32 %v3861_v6, %v3860_v5  ;;  %v3963_v9 = vadd.f32 %v3962_v62, %v3961_v0 }
 0x308   : > { %v3965_v12 = vadd.f32 %v3964_v10, %v3963_v9  ;;  %v3864_v13 = vadd.f32 %v3863_v11, %v3862_v8 }
 0x30a   : > { %v4021_v15 = vpop.permute.xlu0 %4020  ;;  %v3967_v16 = vadd.f32 %v3966_v14, %v3965_v12 }
 0x30b   : > { %5108 = vmatprep.mubr.msk.bf16.mxu1 %vm4024_vm2, %v4021_v15 }
 0x30e   : > { %v4023_v17 = vpop.permute.xlu1 %4022 }
 0x30f   : > { %5109 = vmatmul.mubr.msk.bf16.gmra.mxu1 %vm4024_vm2, %v4023_v17 }
 0x32c   : > { %v5072_v18 = vpop.f32.mrf.mxu0 }
 0x32d   : > { %3812 = vst.msk [vmem:[%s6698_s18 + $0xd0] sm:$0xff] %vm3785_vm1, %v5072_v18  ;;  %v3915_v28 = vmul.f32 %v5072_v18, %v5072_v18  ;;  %v3869_v32 = vsel %vm3785_vm1, %v5072_v18, 0.0 }
 0x32e   : > { %v3754_v20 = vpop.f32.mrf.mxu0 }
 0x32f   : > { %3810 = vst.msk [vmem:[%s6698_s18 + $0xc0] sm:$0xff] %vm3785_vm1, %v3754_v20  ;;  %v3913_v22 = vmul.f32 %v3754_v20, %v3754_v20  ;;  %v3865_v59 = vsel %vm3785_vm1, %v3754_v20, 0.0  ;;  %v3972_v34 = vsel %vm3785_vm1, %v3915_v28, 0.0 }
 0x330   : > { %v5073_v21 = vpop.f32.mrf.mxu0  ;;  %v3866_v25 = vadd.f32 %v3865_v59, %v3864_v13 }
 0x331   : > { %3813 = vst.msk [vmem:[%s6698_s18 + $0xd8] sm:$0xff] %vm3785_vm1, %v5073_v21  ;;  %v3968_v23 = vsel %vm3785_vm1, %v3913_v22, 0.0  ;;  %v3916_v35 = vmul.f32 %v5073_v21, %v5073_v21  ;;  %v3871_v41 = vsel %vm3785_vm1, %v5073_v21, 0.0 }
 0x332   : > { %v3757_v33 = vpop.f32.mrf.mxu0  ;;  %v3969_v26 = vadd.f32 %v3968_v23, %v3967_v16 }
 0x333   : > { %3811 = vst.msk [vmem:[%s6698_s18 + $0xc8] sm:$0xff] %vm3785_vm1, %v3757_v33  ;;  %v3914_v19 = vmul.f32 %v3757_v33, %v3757_v33  ;;  %v3867_v46 = vsel %vm3785_vm1, %v3757_v33, 0.0  ;;  %v3974_v42 = vsel %vm3785_vm1, %v3916_v35, 0.0 }
 0x334   : > { %v3868_v29 = vadd.f32 %v3867_v46, %v3866_v25 }
 0x335   : > { %v3970_v24 = vsel %vm3785_vm1, %v3914_v19, 0.0 }
 0x336   : > { %v3971_v30 = vadd.f32 %v3970_v24, %v3969_v26  ;;  %v3870_v36 = vadd.f32 %v3869_v32, %v3868_v29 }
 0x338   : > { %v3973_v37 = vadd.f32 %v3972_v34, %v3971_v30  ;;  %v3872_v27 = vadd.f32 %v3871_v41, %v3870_v36 }
 0x33a   : > { %v3975_v47 = vadd.f32 %v3974_v42, %v3973_v37 }
 0x359   : > { %v5082_v31 = vpop.f32.mrf.mxu1 }
 0x35a   : > { %4239 = vst.msk [vmem:[%s6981_s29 + $0x10] sm:$0xff] %vm3785_vm1, %v5082_v31  ;;  %v4341_v43 = vmul.f32 %v5082_v31, %v5082_v31  ;;  %v4272_v54 = vsel %vm3785_vm1, %v5082_v31, 0.0 }
 0x35b   : > { %v4110_v38 = vpop.f32.mrf.mxu1 }
 0x35c   : > { %4237 = vst.msk [vmem:[%s6981_s29] sm:$0xff] %vm3785_vm1, %v4110_v38  ;;  %v4339_v44 = vmul.f32 %v4110_v38, %v4110_v38  ;;  %v4269_v50 = vsel %vm3785_vm1, %v4110_v38, 0.0  ;;  %v4374_v61 = vsel %vm3785_vm1, %v4341_v43, 0.0 }
 0x35d   : > { %v5083_v39 = vpop.f32.mrf.mxu1  ;;  %v5076_v40 = vpop.f32.mrf.mxu0 }
 0x35e   : > { %4240 = vst.msk [vmem:[%s6981_s29 + $0x18] sm:$0xff] %vm3785_vm1, %v5083_v39  ;;  %3816 = vst.msk [vmem:[%s6698_s18 + $0xf0] sm:$0xff] %vm3785_vm1, %v5076_v40  ;;  %v4342_v45 = vmul.f32 %v5083_v39, %v5083_v39  ;;  %v3919_v51 = vmul.f32 %v5076_v40, %v5076_v40  ;;  %v4371_v63 = vsel %vm3785_vm1, %v4339_v44, 0.0  ;;  %v4274_v0 = vsel %vm3785_vm1, %v5083_v39, 0.0 }
 0x35f   : > { %v4113_v48 = vpop.f32.mrf.mxu1  ;;  %v3770_v49 = vpop.f32.mrf.mxu0  ;;  %v3877_v3 = vsel %vm3785_vm1, %v5076_v40, 0.0 }
 0x360   : > { %4238 = vst.msk [vmem:[%s6981_s29 + $0x8] sm:$0xff] %vm3785_vm1, %v4113_v48  ;;  %v4270_v52 = vsel %vm3785_vm1, %v4113_v48, 0.0  ;;  %v4340_v53 = vmul.f32 %v4113_v48, %v4113_v48  ;;  %3814 = vst.msk [vmem:[%s6698_s18 + $0xe0] sm:$0xff] %vm3785_vm1, %v3770_v49  ;;  %v3873_v56 = vsel %vm3785_vm1, %v3770_v49, 0.0  ;;  %v3917_v57 = vmul.f32 %v3770_v49, %v3770_v49 }
 0x361   : > { %v4271_v55 = vadd.f32 %v4270_v52, %v4269_v50  ;;  %v5086_v58 = vpop.f32.mrf.mxu1  ;;  %v5077_v60 = vpop.f32.mrf.mxu0  ;;  %v4376_v2 = vsel %vm3785_vm1, %v4342_v45, 0.0  ;;  %v3980_v62 = vsel %vm3785_vm1, %v3919_v51, 0.0  ;;  %v3874_v8 = vadd.f32 %v3873_v56, %v3872_v27 }
 0x362   : > { %v4372_v1 = vsel %vm3785_vm1, %v4340_v53, 0.0  ;;  %4243 = vst.msk [vmem:[%s6981_s29 + $0x30] sm:$0xff] %vm3785_vm1, %v5086_v58  ;;  %3817 = vst.msk [vmem:[%s6698_s18 + $0xf8] sm:$0xff] %vm3785_vm1, %v5077_v60  ;;  %v3976_v9 = vsel %vm3785_vm1, %v3917_v57, 0.0  ;;  %v4345_v12 = vmul.f32 %v5086_v58, %v5086_v58  ;;  %v3920_v16 = vmul.f32 %v5077_v60, %v5077_v60 }
 0x363   : > { %v4273_v4 = vadd.f32 %v4272_v54, %v4271_v55  ;;  %v4373_v5 = vadd.f32 %v4372_v1, %v4371_v63  ;;  %v4126_v6 = vpop.f32.mrf.mxu1  ;;  %v3773_v7 = vpop.f32.mrf.mxu0  ;;  %v3977_v21 = vadd.f32 %v3976_v9, %v3975_v47  ;;  %v3879_v26 = vsel %vm3785_vm1, %v5077_v60, 0.0 }
 0x364   : > { %4241 = vst.msk [vmem:[%s6981_s29 + $0x20] sm:$0xff] %vm3785_vm1, %v4126_v6  ;;  %v4343_v10 = vmul.f32 %v4126_v6, %v4126_v6  ;;  %3815 = vst.msk [vmem:[%s6698_s18 + $0xe8] sm:$0xff] %vm3785_vm1, %v3773_v7  ;;  %v3875_v14 = vsel %vm3785_vm1, %v3773_v7, 0.0  ;;  %v4276_v17 = vsel %vm3785_vm1, %v4126_v6, 0.0  ;;  %v3918_v20 = vmul.f32 %v3773_v7, %v3773_v7  ;;  %s4447_s18 = scalar_lea.sflag [#allocation4], %s7043_s9 }
 0x365   : > { %v4375_v11 = vadd.f32 %v4374_v61, %v4373_v5  ;;  %v4275_v13 = vadd.f32 %v4274_v0, %v4273_v4  ;;  %v5087_v15 = vpop.f32.mrf.mxu1  ;;  %v3876_v18 = vadd.f32 %v3875_v14, %v3874_v8  ;;  %v4280_v32 = vsel %vm3785_vm1, %v5086_v58, 0.0 }
 0x366   : > { %4244 = vst.msk [vmem:[%s6981_s29 + $0x38] sm:$0xff] %vm3785_vm1, %v5087_v15  ;;  %v4378_v19 = vsel %vm3785_vm1, %v4343_v10, 0.0  ;;  %v3978_v46 = vsel %vm3785_vm1, %v3918_v20, 0.0  ;;  %v4346_v35 = vmul.f32 %v5087_v15, %v5087_v15  ;;  %v4382_v37 = vsel %vm3785_vm1, %v4345_v12, 0.0 }
 0x367   : > { %v4277_v33 = vadd.f32 %v4276_v17, %v4275_v13  ;;  %v4377_v22 = vadd.f32 %v4376_v2, %v4375_v11  ;;  %v4129_v59 = vpop.f32.mrf.mxu1  ;;  %v3878_v23 = vadd.f32 %v3877_v3, %v3876_v18  ;;  %v3979_v29 = vadd.f32 %v3978_v46, %v3977_v21 }
 0x368   : > { %4242 = vst.msk [vmem:[%s6981_s29 + $0x28] sm:$0xff] %vm3785_vm1, %v4129_v59  ;;  %v4278_v24 = vsel %vm3785_vm1, %v4129_v59, 0.0  ;;  %v4344_v25 = vmul.f32 %v4129_v59, %v4129_v59  ;;  %v3982_v42 = vsel %vm3785_vm1, %v3920_v16, 0.0  ;;  %v4282_v44 = vsel %vm3785_vm1, %v5087_v15, 0.0 }
 0x369   : > { %v4379_v28 = vadd.f32 %v4378_v19, %v4377_v22  ;;  %v4279_v30 = vadd.f32 %v4278_v24, %v4277_v33  ;;  %v5090_v31 = vpop.f32.mrf.mxu1  ;;  %v3880_v34 = vadd.f32 %v3879_v26, %v3878_v23  ;;  %v3981_v38 = vadd.f32 %v3980_v62, %v3979_v29 }
 0x36a   : > { %v4380_v36 = vsel %vm3785_vm1, %v4344_v25, 0.0  ;;  %4247 = vst.msk [vmem:[%s6981_s29 + $0x50] sm:$0xff] %vm3785_vm1, %v5090_v31  ;;  %v4384_v51 = vsel %vm3785_vm1, %v4346_v35, 0.0  ;;  %v4349_v54 = vmul.f32 %v5090_v31, %v5090_v31  ;;  %v4288_v5 = vsel %vm3785_vm1, %v5090_v31, 0.0 }
 0x36b   : > { %v4281_v39 = vadd.f32 %v4280_v32, %v4279_v30  ;;  %v4381_v40 = vadd.f32 %v4380_v36, %v4379_v28  ;;  %v4142_v41 = vpop.f32.mrf.mxu1  ;;  %v3881_v43 = vrot.slane %v3880_v34, 4  ;;  %v3983_v48 = vadd.f32 %v3982_v42, %v3981_v38 }
 0x36c   : > { %4245 = vst.msk [vmem:[%s6981_s29 + $0x40] sm:$0xff] %vm3785_vm1, %v4142_v41  ;;  %v4347_v45 = vmul.f32 %v4142_v41, %v4142_v41  ;;  %v4284_v52 = vsel %vm3785_vm1, %v4142_v41, 0.0  ;;  %v4390_v11 = vsel %vm3785_vm1, %v4349_v54, 0.0 }
 0x36d   : > { %v4383_v49 = vadd.f32 %v4382_v37, %v4381_v40  ;;  %v4283_v27 = vadd.f32 %v4282_v44, %v4281_v39  ;;  %v5091_v47 = vpop.f32.mrf.mxu1  ;;  %v3882_v50 = vadd.f32 %v3881_v43, %v3880_v34  ;;  %v3984_v53 = vrot.slane %v3983_v48, 4 }
 0x36e   : > { %4248 = vst.msk [vmem:[%s6981_s29 + $0x58] sm:$0xff] %vm3785_vm1, %v5091_v47  ;;  %v4386_v60 = vsel %vm3785_vm1, %v4347_v45, 0.0  ;;  %v4350_v6 = vmul.f32 %v5091_v47, %v5091_v47  ;;  %v4290_v12 = vsel %vm3785_vm1, %v5091_v47, 0.0 }
 0x36f   : > { %v4285_v55 = vadd.f32 %v4284_v52, %v4283_v27  ;;  %v4385_v56 = vadd.f32 %v4384_v51, %v4383_v49  ;;  %v4145_v57 = vpop.f32.mrf.mxu1  ;;  %v3883_v58 = vrot.slane %v3882_v50, 2  ;;  %v3985_v0 = vadd.f32 %v3984_v53, %v3983_v48 }
 0x370   : > { %4246 = vst.msk [vmem:[%s6981_s29 + $0x48] sm:$0xff] %vm3785_vm1, %v4145_v57  ;;  %v4286_v61 = vsel %vm3785_vm1, %v4145_v57, 0.0  ;;  %v4348_v63 = vmul.f32 %v4145_v57, %v4145_v57  ;;  %v4392_v20 = vsel %vm3785_vm1, %v4350_v6, 0.0 }
 0x371   : > { %v4387_v1 = vadd.f32 %v4386_v60, %v4385_v56  ;;  %v4287_v2 = vadd.f32 %v4286_v61, %v4285_v55  ;;  %v5094_v3 = vpop.f32.mrf.mxu1  ;;  %v3884_v4 = vadd.f32 %v3883_v58, %v3882_v50  ;;  %v3986_v62 = vrot.slane %v3985_v0, 2 }
 0x372   : > { %v4388_v7 = vsel %vm3785_vm1, %v4348_v63, 0.0  ;;  %4251 = vst.msk [vmem:[%s6981_s29 + $0x70] sm:$0xff] %vm3785_vm1, %v5094_v3  ;;  %v4353_v46 = vmul.f32 %v5094_v3, %v5094_v3  ;;  %v4296_v32 = vsel %vm3785_vm1, %v5094_v3, 0.0 }
 0x373   : > { %v4289_v8 = vadd.f32 %v4288_v5, %v4287_v2  ;;  %v4389_v9 = vadd.f32 %v4388_v7, %v4387_v1  ;;  %v4158_v10 = vpop.f32.mrf.mxu1  ;;  %v3885_v14 = vrot.slane %v3884_v4, 1  ;;  %v3987_v18 = vadd.f32 %v3986_v62, %v3985_v0 }
 0x374   : > { %4249 = vst.msk [vmem:[%s6981_s29 + $0x60] sm:$0xff] %vm3785_vm1, %v4158_v10  ;;  %v4351_v13 = vmul.f32 %v4158_v10, %v4158_v10  ;;  %v4292_v21 = vsel %vm3785_vm1, %v4158_v10, 0.0  ;;  %v4398_v39 = vsel %vm3785_vm1, %v4353_v46, 0.0 }
 0x375   : > { %v4391_v15 = vadd.f32 %v4390_v11, %v4389_v9  ;;  %v4291_v16 = vadd.f32 %v4290_v12, %v4289_v8  ;;  %v5095_v17 = vpop.f32.mrf.mxu1  ;;  %v3886_v33 = vadd.f32 %v3885_v14, %v3884_v4  ;;  %v3988_v23 = vrot.slane %v3987_v18, 1 }
 0x376   : > { %4252 = vst.msk [vmem:[%s6981_s29 + $0x78] sm:$0xff] %vm3785_vm1, %v5095_v17  ;;  %v4394_v24 = vsel %vm3785_vm1, %v4351_v13, 0.0  ;;  %v4354_v34 = vmul.f32 %v5095_v17, %v5095_v17  ;;  %v4298_v40 = vsel %vm3785_vm1, %v5095_v17, 0.0 }
 0x377   : > { %v4293_v22 = vadd.f32 %v4292_v21, %v4291_v16  ;;  %v4393_v19 = vadd.f32 %v4392_v20, %v4391_v15  ;;  %v4161_v59 = vpop.f32.mrf.mxu1  ;;  %3888 = vst.msk [vmem:[%s255_s12] sm:$0x1] %vm3887_vm3, %v3886_v33  ;;  %v3989_v31 = vadd.f32 %v3988_v23, %v3987_v18 }
 0x378   : > { %4250 = vst.msk [vmem:[%s6981_s29 + $0x68] sm:$0xff] %vm3785_vm1, %v4161_v59  ;;  %v4294_v25 = vsel %vm3785_vm1, %v4161_v59, 0.0  ;;  %v4352_v26 = vmul.f32 %v4161_v59, %v4161_v59 }
 0x379   : > { %v4395_v28 = vadd.f32 %v4394_v24, %v4393_v19  ;;  %v4295_v29 = vadd.f32 %v4294_v25, %v4293_v22  ;;  %v5098_v30 = vpop.f32.mrf.mxu1  ;;  %3990 = vst.msk [vmem:[%s255_s12 + $0x1] sm:$0x1] %vm3887_vm3, %v3989_v31 }
 0x37a   : > { %v4396_v35 = vsel %vm3785_vm1, %v4352_v26, 0.0  ;;  %4255 = vst.msk [vmem:[%s6981_s29 + $0x90] sm:$0xff] %vm3785_vm1, %v5098_v30 }
 0x37b   : > { %v4297_v36 = vadd.f32 %v4296_v32, %v4295_v29  ;;  %v4397_v37 = vadd.f32 %v4396_v35, %v4395_v28  ;;  %v4174_v38 = vpop.f32.mrf.mxu1 }
 0x37c   : > { %4253 = vst.msk [vmem:[%s6981_s29 + $0x80] sm:$0xff] %vm3785_vm1, %v4174_v38  ;;  %v4355_v41 = vmul.f32 %v4174_v38, %v4174_v38 }
 0x37d   : > { %5206 = shalt.err (!%p5203_p3)
}
 0x37e   : > { %s5207_s28 = scalar_lea.hbm %s7075_s17, 32  ;;  %s5211_s16 = scalar_lea.hbm %s7213_s4, 64 }
 0x37f   : > { %p5208_p4 = scmp.ne.s32.totalorder %s7075_s17, %s5207_s28  ;;  %p5212_p9 = scmp.lt.s32.totalorder %s7075_s17, %s7213_s4 }
 0x380   : > { %p5213_p10 = scmp.lt.s32.totalorder %s5211_s16, %s5207_s28 }
 0x381   : > { %p5209_p7 = pnand %p5208_p4, %p5369_p5 }
 0x382   : > { %p5214_p11 = por %p5213_p10, %p5212_p9 }
 0x383   : > { %p5210_p8 = pneg %p5209_p7 }
 0x385   : > { %p5215_p12 = pnand %p5214_p11, %p5210_p8 }
 0x387   : > { %5218 = shalt.err (!%p5215_p12)
}
 0x388   : > { %5115 = dma.vmem_to_hbm [thread:$0]  (%p5369_p5), %s7077_s14, 32, %s7075_s17, %s4447_s18   ;;  %v4399_v42 = vadd.f32 %v4398_v39, %v4397_v37  ;;  %v4299_v43 = vadd.f32 %v4298_v40, %v4297_v36  ;;  %v5099_v44 = vpop.f32.mrf.mxu1  ;;  %v4400_v45 = vsel %vm3785_vm1, %v4354_v34, 0.0  ;;  %v4300_v48 = vsel %vm3785_vm1, %v4174_v38, 0.0 }
 0x389   : > { %4256 = vst.msk [vmem:[%s6981_s29 + $0x98] sm:$0xff] %vm3785_vm1, %v5099_v44  ;;  %v4357_v50 = vmul.f32 %v5098_v30, %v5098_v30  ;;  %v4402_v51 = vsel %vm3785_vm1, %v4355_v41, 0.0  ;;  %v4304_v57 = vsel %vm3785_vm1, %v5098_v30, 0.0  ;;  %v4358_v58 = vmul.f32 %v5099_v44, %v5099_v44  ;;  %s7223_s14 = sshll.u32 %s5352_s25, 5  ;;  %s4457_s13 = scalar_lea.sflag [#allocation6], %s7043_s9 }
 0x38a   : > { %v4301_v49 = vadd.f32 %v4300_v48, %v4299_v43  ;;  %v4401_v27 = vadd.f32 %v4400_v45, %v4399_v42  ;;  %v4177_v47 = vpop.f32.mrf.mxu1  ;;  %v4306_v2 = vsel %vm3785_vm1, %v5099_v44, 0.0  ;;  %s4487_s19 = scalar_lea.hbm %s7215_s6, %s7223_s14 }
 0x38b   : > { %4254 = vst.msk [vmem:[%s6981_s29 + $0x88] sm:$0xff] %vm3785_vm1, %v4177_v47  ;;  %v4302_v52 = vsel %vm3785_vm1, %v4177_v47, 0.0  ;;  %v4356_v53 = vmul.f32 %v4177_v47, %v4177_v47  ;;  %v4406_v1 = vsel %vm3785_vm1, %v4357_v50, 0.0  ;;  %v4408_v7 = vsel %vm3785_vm1, %v4358_v58, 0.0 }
 0x38c   : > { %v4403_v54 = vadd.f32 %v4402_v51, %v4401_v27  ;;  %v4303_v55 = vadd.f32 %v4302_v52, %v4301_v49  ;;  %v5102_v56 = vpop.f32.mrf.mxu1 }
 0x38d   : > { %v4404_v60 = vsel %vm3785_vm1, %v4356_v53, 0.0  ;;  %4259 = vst.msk [vmem:[%s6981_s29 + $0xb0] sm:$0xff] %vm3785_vm1, %v5102_v56  ;;  %v4361_v11 = vmul.f32 %v5102_v56, %v5102_v56  ;;  %v4312_v17 = vsel %vm3785_vm1, %v5102_v56, 0.0 }
 0x38e   : > { %v4305_v61 = vadd.f32 %v4304_v57, %v4303_v55  ;;  %v4405_v63 = vadd.f32 %v4404_v60, %v4403_v54  ;;  %v4190_v0 = vpop.f32.mrf.mxu1 }
 0x38f   : > { %4257 = vst.msk [vmem:[%s6981_s29 + $0xa0] sm:$0xff] %vm3785_vm1, %v4190_v0  ;;  %v4359_v3 = vmul.f32 %v4190_v0, %v4190_v0  ;;  %v4308_v62 = vsel %vm3785_vm1, %v4190_v0, 0.0  ;;  %v4414_v22 = vsel %vm3785_vm1, %v4361_v11, 0.0 }
 0x390   : > { %v4407_v4 = vadd.f32 %v4406_v1, %v4405_v63  ;;  %v4307_v5 = vadd.f32 %v4306_v2, %v4305_v61  ;;  %v5103_v6 = vpop.f32.mrf.mxu1 }
 0x391   : > { %4260 = vst.msk [vmem:[%s6981_s29 + $0xb8] sm:$0xff] %vm3785_vm1, %v5103_v6  ;;  %v4410_v12 = vsel %vm3785_vm1, %v4359_v3, 0.0  ;;  %v4362_v18 = vmul.f32 %v5103_v6, %v5103_v6  ;;  %v4314_v19 = vsel %vm3785_vm1, %v5103_v6, 0.0 }
 0x392   : > { %v4309_v8 = vadd.f32 %v4308_v62, %v4307_v5  ;;  %v4409_v9 = vadd.f32 %v4408_v7, %v4407_v4  ;;  %v4193_v10 = vpop.f32.mrf.mxu1 }
 0x393   : > { %4258 = vst.msk [vmem:[%s6981_s29 + $0xa8] sm:$0xff] %vm3785_vm1, %v4193_v10  ;;  %v4310_v13 = vsel %vm3785_vm1, %v4193_v10, 0.0  ;;  %v4360_v14 = vmul.f32 %v4193_v10, %v4193_v10  ;;  %v4416_v46 = vsel %vm3785_vm1, %v4362_v18, 0.0 }
 0x394   : > { %v4411_v15 = vadd.f32 %v4410_v12, %v4409_v9  ;;  %v4311_v16 = vadd.f32 %v4310_v13, %v4309_v8 }
 0x395   : > { %v4412_v20 = vsel %vm3785_vm1, %v4360_v14, 0.0 }
 0x396   : > { %v4313_v21 = vadd.f32 %v4312_v17, %v4311_v16  ;;  %v4413_v33 = vadd.f32 %v4412_v20, %v4411_v15 }
 0x398   : > { %v4415_v59 = vadd.f32 %v4414_v22, %v4413_v33  ;;  %v4315_v23 = vadd.f32 %v4314_v19, %v4313_v21 }
 0x39a   : > { %v4417_v24 = vadd.f32 %v4416_v46, %v4415_v59 }
 0x39f   : > { %v5106_v25 = vpop.f32.mrf.mxu1 }
 0x3a0   : > { %4263 = vst.msk [vmem:[%s6981_s29 + $0xd0] sm:$0xff] %vm3785_vm1, %v5106_v25  ;;  %v4365_v40 = vmul.f32 %v5106_v25, %v5106_v25  ;;  %v4320_v42 = vsel %vm3785_vm1, %v5106_v25, 0.0 }
 0x3a1   : > { %v4206_v26 = vpop.f32.mrf.mxu1 }
 0x3a2   : > { %4261 = vst.msk [vmem:[%s6981_s29 + $0xc0] sm:$0xff] %vm3785_vm1, %v4206_v26  ;;  %v4363_v30 = vmul.f32 %v4206_v26, %v4206_v26  ;;  %v4316_v31 = vsel %vm3785_vm1, %v4206_v26, 0.0  ;;  %v4422_v45 = vsel %vm3785_vm1, %v4365_v40, 0.0 }
 0x3a3   : > { %v5107_v28 = vpop.f32.mrf.mxu1  ;;  %v4317_v36 = vadd.f32 %v4316_v31, %v4315_v23 }
 0x3a4   : > { %4264 = vst.msk [vmem:[%s6981_s29 + $0xd8] sm:$0xff] %vm3785_vm1, %v5107_v28  ;;  %v4418_v34 = vsel %vm3785_vm1, %v4363_v30, 0.0  ;;  %v4366_v48 = vmul.f32 %v5107_v28, %v5107_v28  ;;  %v4322_v47 = vsel %vm3785_vm1, %v5107_v28, 0.0 }
 0x3a5   : > { %v4209_v29 = vpop.f32.mrf.mxu1  ;;  %v4419_v38 = vadd.f32 %v4418_v34, %v4417_v24 }
 0x3a6   : > { %4262 = vst.msk [vmem:[%s6981_s29 + $0xc8] sm:$0xff] %vm3785_vm1, %v4209_v29  ;;  %v4364_v32 = vmul.f32 %v4209_v29, %v4209_v29  ;;  %v4318_v35 = vsel %vm3785_vm1, %v4209_v29, 0.0  ;;  %v4424_v54 = vsel %vm3785_vm1, %v4366_v48, 0.0 }
 0x3a7   : > { %v4319_v39 = vadd.f32 %v4318_v35, %v4317_v36 }
 0x3a8   : > { %v4420_v37 = vsel %vm3785_vm1, %v4364_v32, 0.0 }
 0x3a9   : > { %v4421_v41 = vadd.f32 %v4420_v37, %v4419_v38  ;;  %v4321_v43 = vadd.f32 %v4320_v42, %v4319_v39 }
 0x3ab   : > { %v4423_v49 = vadd.f32 %v4422_v45, %v4421_v41  ;;  %v4323_v52 = vadd.f32 %v4322_v47, %v4321_v43 }
 0x3ad   : > { %v4425_v57 = vadd.f32 %v4424_v54, %v4423_v49 }
 0x3cf   : > { %v5110_v44 = vpop.f32.mrf.mxu1 }
 0x3d0   : > { %4267 = vst.msk [vmem:[%s6981_s29 + $0xf0] sm:$0xff] %vm3785_vm1, %v5110_v44  ;;  %v4369_v60 = vmul.f32 %v5110_v44, %v5110_v44  ;;  %v4328_v2 = vsel %vm3785_vm1, %v5110_v44, 0.0 }
 0x3d1   : > { %v4222_v27 = vpop.f32.mrf.mxu1 }
 0x3d2   : > { %4265 = vst.msk [vmem:[%s6981_s29 + $0xe0] sm:$0xff] %vm3785_vm1, %v4222_v27  ;;  %v4324_v50 = vsel %vm3785_vm1, %v4222_v27, 0.0  ;;  %v4367_v51 = vmul.f32 %v4222_v27, %v4222_v27  ;;  %v4430_v7 = vsel %vm3785_vm1, %v4369_v60, 0.0 }
 0x3d3   : > { %v5111_v53 = vpop.f32.mrf.mxu1  ;;  %v4325_v56 = vadd.f32 %v4324_v50, %v4323_v52 }
 0x3d4   : > { %v4426_v55 = vsel %vm3785_vm1, %v4367_v51, 0.0  ;;  %4268 = vst.msk [vmem:[%s6981_s29 + $0xf8] sm:$0xff] %vm3785_vm1, %v5111_v53  ;;  %v4370_v3 = vmul.f32 %v5111_v53, %v5111_v53  ;;  %v4330_v62 = vsel %vm3785_vm1, %v5111_v53, 0.0 }
 0x3d5   : > { %v4225_v58 = vpop.f32.mrf.mxu1  ;;  %v4427_v0 = vadd.f32 %v4426_v55, %v4425_v57 }
 0x3d6   : > { %4266 = vst.msk [vmem:[%s6981_s29 + $0xe8] sm:$0xff] %vm3785_vm1, %v4225_v58  ;;  %v4326_v61 = vsel %vm3785_vm1, %v4225_v58, 0.0  ;;  %v4368_v63 = vmul.f32 %v4225_v58, %v4225_v58  ;;  %v4432_v10 = vsel %vm3785_vm1, %v4370_v3, 0.0  ;;  %s269_s29 = scalar_lea.vmem [#allocation5], %s4634_s10  ;;  %s5295_s10 = smov [#allocation5]  }
 0x3d7   : > { %v4327_v1 = vadd.f32 %v4326_v61, %v4325_v56  ;;  %s4489_s11 = sshll.u32 %s269_s29, 4  ;;  %s5223_s28 = sshll.u32 %s5295_s10, 4  ;;  %s4490_s11 = int_to_ptr.vmem [resolvable:$true] %s4489_s11  ;;  %s5224_s28 = int_to_ptr.vmem [resolvable:$false] %s5223_s28 }
 0x3d8   : > { %v4428_v4 = vsel %vm3785_vm1, %v4368_v63, 0.0  ;;  %s5219_s26 = scalar_lea.vmem %s4490_s11, 32  ;;  %s5225_s12 = scalar_lea.vmem %s5224_s28, 64 }
 0x3d9   : > { %v4329_v5 = vadd.f32 %v4328_v2, %v4327_v1  ;;  %v4429_v6 = vadd.f32 %v4428_v4, %v4427_v0  ;;  %p5220_p13 = scmp.ne.s32.totalorder %s4490_s11, %s5219_s26  ;;  %p5226_p2 = scmp.lt.s32.totalorder %s4490_s11, %s5224_s28 }
 0x3da   : > { %p5227_p3 = scmp.lt.s32.totalorder %s5225_s12, %s5219_s26 }
 0x3db   : > { %v4331_v8 = vadd.f32 %v4330_v62, %v4329_v5  ;;  %v4431_v9 = vadd.f32 %v4430_v7, %v4429_v6  ;;  %p5221_p0 = pnand %p5220_p13, %p5369_p5 }
 0x3dc   : > { %p5228_p4 = por %p5227_p3, %p5226_p2 }
 0x3dd   : > { %v4332_v11 = vrot.slane %v4331_v8, 4  ;;  %v4433_v12 = vadd.f32 %v4432_v10, %v4431_v9  ;;  %p5222_p1 = pneg %p5221_p0 }
 0x3df   : > { %v4333_v13 = vadd.f32 %v4332_v11, %v4331_v8  ;;  %v4434_v14 = vrot.slane %v4433_v12, 4  ;;  %p5229_p7 = pnand %p5228_p4, %p5222_p1 }
 0x3e1   : > { %v4334_v15 = vrot.slane %v4333_v13, 2  ;;  %v4435_v16 = vadd.f32 %v4434_v14, %v4433_v12 }
 0x3e3   : > { %v4335_v17 = vadd.f32 %v4334_v15, %v4333_v13  ;;  %v4436_v18 = vrot.slane %v4435_v16, 2 }
 0x3e5   : > { %v4336_v20 = vrot.slane %v4335_v17, 1  ;;  %v4437_v21 = vadd.f32 %v4436_v18, %v4435_v16 }
 0x3e7   : > { %v4337_v33 = vadd.f32 %v4336_v20, %v4335_v17  ;;  %v4438_v22 = vrot.slane %v4437_v21, 1 }
 0x3e9   : > { %4338 = vst.msk [vmem:[%s269_s29] sm:$0x1] %vm3887_vm3, %v4337_v33  ;;  %v4439_v19 = vadd.f32 %v4438_v22, %v4437_v21 }
 0x3eb   : > { %4440 = vst.msk [vmem:[%s269_s29 + $0x1] sm:$0x1] %vm3887_vm3, %v4439_v19 }
 0x3ec   : > { %5232 = shalt.err (!%p5229_p7)
}
 0x3ed   : > { %s5233_s25 = scalar_lea.hbm %s4487_s19, 32  ;;  %s5237_s16 = scalar_lea.hbm %s7215_s6, 64 }
 0x3ee   : > { %p5234_p8 = scmp.ne.s32.totalorder %s4487_s19, %s5233_s25  ;;  %p5238_p11 = scmp.lt.s32.totalorder %s4487_s19, %s7215_s6 }
 0x3ef   : > { %p5239_p12 = scmp.lt.s32.totalorder %s5237_s16, %s5233_s25 }
 0x3f0   : > { %p5235_p9 = pnand %p5234_p8, %p5369_p5 }
 0x3f1   : > { %p5240_p13 = por %p5239_p12, %p5238_p11 }
 0x3f2   : > { %p5236_p10 = pneg %p5235_p9 }
 0x3f4   : > { %p5241_p0 = pnand %p5240_p13, %p5236_p10 }
 0x3f6   : > { %5244 = shalt.err (!%p5241_p0)
}
 0x3f7   : > { %5116 = dma.vmem_to_hbm [thread:$0]  (%p5369_p5), %s4490_s11, 32, %s4487_s19, %s4457_s13  }
 0x3f8 PF: > { %p5126_p1 = scmp.ge.s32.totalorder %s5283_s24, 2  ;;  %s4509_s14 = sand.u32 1, %s5271_s21  }
 0x3f9   : > { %s4510_s17 = scalar_lea.sflag [#allocation4], %s4509_s14 }
 0x3fa   : > { %p5120_p2 = pnand %p5126_p1, %p5373_p6 }
 0x3fc   : > { %p5121_p3 = pneg %p5120_p2 }
 0x3fe   : > { %5262 = dma.done.wait (%p5121_p3), %s4510_s17, 32  }
 0x3ff   : > { %5264 = vsyncadd (%p5121_p3), %s4510_s17, 4294967264  ;;  %s4527_s18 = scalar_lea.sflag [#allocation6], %s4509_s14 }
 0x400   : > { %5266 = dma.done.wait (%p5121_p3), %s4527_s18, 32  }
 0x401   : > { %5268 = vsyncadd (%p5121_p3), %s4527_s18, 4294967264  ;;  %p20_p5 = scmp.ge.s32.totalorder %s5356_s27, 4   ;;  %s7224_s21 = smov %s5275_s22 }
 0x402   : > { %s7225_s22 = smov %s5279_s23  ;;  %s7226_s23 = smov %s5367_s30 }
 0x403   : > { %s7227_s24 = smov %s5356_s27  ;;  %22 = sbr.rel (!%p20_p5) target bundleno = 5 (0x5), region = 110 }
 0x408   :  { %4532 = vsyncpa [#allocation4], 1 }
 0x409   :  { %4534 = vsyncpa [#allocation4 + $0x1], 1 }
 0x40a   :  { %4535 = vsyncpa [#allocation6], 1 }
 0x40b   :  { %4537 = vsyncpa [#allocation6 + $0x1], 1 }

</bundles_post_ra>
